<compile_context>
chip_gen: v7x
topology: tpu7x:2x2x1
jax: 0.10.0
libtpu: 0.0.40
codegen_flags: <defaults>
</compile_context>

<pallas_src>
import jax
import jax.numpy as jnp
import numpy as np
from jax.experimental import pallas as pl
from jax.experimental.pallas import tpu as pltpu

EPS = 1e-3
KH = KW = 5
STRIDE = 2
PAD = 2
C_LANES = 128            # lane-dense channel padding (real C = 72)


def _make_kernel(toh, wo, cp):
    """Build the fused BN+ReLU+depthwise-conv kernel (all sizes are Python ints)."""
    toh2 = 2 * toh
    wp2 = wo + 2          # width of each (even / odd) column plane
    rows = toh2 + 4       # scratch rows per band (2*TOH input rows + 4-row halo)

    def kernel(xe_ref, xeh_ref, xo_ref, xoh_ref, scale_ref, shift_ref, w_ref,
               o_ref, se_ref, so_ref):
        # xe_ref  : (1, 2*TOH, Wp2, Cp)  even-column plane, main band
        # xeh_ref : (1, 4,     Wp2, Cp)  even-column plane, 4-row halo below band
        # xo_ref / xoh_ref : same for the odd-column plane
        # scale/shift : (1, Cp)          folded BN affine
        # w_ref   : (KH*KW, Cp)          depthwise conv taps
        # o_ref   : (1, TOH, Wo, Cp)     output band
        # se_ref / so_ref : (rows, Wp2, Cp) normalized even/odd planes (scratch)
        band = pl.program_id(1)
        nbands = pl.num_programs(1)

        # ---- folded BN affine + ReLU into even/odd column-plane scratch -------
        scale = jnp.broadcast_to(scale_ref[...], (wp2, cp))   # hoisted broadcasts
        shift = jnp.broadcast_to(shift_ref[...], (wp2, cp))
        for r in range(toh2):
            se_ref[r] = jnp.maximum(xe_ref[0, r] * scale + shift, 0.0)
            so_ref[r] = jnp.maximum(xo_ref[0, r] * scale + shift, 0.0)
        for r in range(4):
            se_ref[toh2 + r] = jnp.maximum(xeh_ref[0, r] * scale + shift, 0.0)
            so_ref[toh2 + r] = jnp.maximum(xoh_ref[0, r] * scale + shift, 0.0)

        # ---- re-zero conv padding (pre-padded zeros became relu(shift)) -------
        zcol = jnp.zeros((rows, 1, cp), jnp.float32)
        se_ref[:, 0:1, :] = zcol                    # left pad column of the plane
        se_ref[:, wp2 - 1:wp2, :] = zcol            # right pad column
        so_ref[:, 0:1, :] = zcol
        so_ref[:, wp2 - 1:wp2, :] = zcol

        zrow = jnp.zeros((PAD, wp2, cp), jnp.float32)

        @pl.when(band == 0)
        def _zero_top():                            # top of the image only
            se_ref[0:PAD, :, :] = zrow
            so_ref[0:PAD, :, :] = zrow

        @pl.when(band == nbands - 1)
        def _zero_bottom():                         # bottom of the image only
            se_ref[toh2 + 2:toh2 + 4, :, :] = zrow
            so_ref[toh2 + 2:toh2 + 4, :, :] = zrow

        # ---- depthwise 5x5 / stride-2 conv -------------------------------------
        # Output column ow reads padded column 2*ow + kw:
        #   kw even -> even plane, contiguous slice starting at kw//2
        #   kw odd  -> odd  plane, contiguous slice starting at (kw-1)//2
        wv = w_ref[...]                             # (KH*KW, Cp), loaded once
        for oh in range(toh):
            acc = [jnp.zeros((wo, cp), jnp.float32) for _ in range(4)]
            t = 0
            for kh in range(KH):
                row_e = se_ref[2 * oh + kh]         # (Wp2, Cp)
                row_o = so_ref[2 * oh + kh]
                for kw in range(KW):
                    if kw % 2 == 0:
                        patch = row_e[kw // 2:kw // 2 + wo, :]
                    else:
                        patch = row_o[(kw - 1) // 2:(kw - 1) // 2 + wo, :]
                    acc[t % 4] = acc[t % 4] + patch * wv[kh * KW + kw]
                    t += 1
            o_ref[0, oh] = ((acc[0] + acc[1]) + (acc[2] + acc[3])).astype(o_ref.dtype)

    return kernel


def forward(x_nchw, gamma, beta, weight_oihw):
    """x_nchw: (N, 72, H, W); weight_oihw: (72, 1, 5, 5). Returns NCHW output."""
    N, C, H, W = x_nchw.shape
    assert H % 2 == 0 and W % 2 == 0, "kernel assumes even spatial dims"
    Ho, Wo = H // 2, W // 2
    Cp = C_LANES
    assert C <= Cp

    # BN batch statistics hoisted out of the fused kernel (tiny XLA reduction),
    # folded into a per-channel affine so the kernel does y = x*scale + shift.
    xf = x_nchw.astype(jnp.float32)
    mean = jnp.mean(xf, axis=(0, 2, 3))
    var = jnp.var(xf, axis=(0, 2, 3))               # biased, as torch BN uses
    scale = gamma.astype(jnp.float32) * jax.lax.rsqrt(var + EPS)
    shift = beta.astype(jnp.float32) - mean * scale

    # Layout: NHWC, zero-pad H/W by 2 (conv halo) and C up to 128 lanes, then
    # deinterleave the padded width into even/odd column planes so every
    # stride-2 conv tap is a contiguous slice (no strided ref reads in-kernel).
    # TODO(synk): in a full model keep activations lane-padded NHWC end-to-end
    # so this transpose/pad copy is not on the hot path.
    x_nhwc = jnp.transpose(xf, (0, 2, 3, 1))
    x_pad = jnp.pad(x_nhwc, ((0, 0), (PAD, PAD), (PAD, PAD), (0, Cp - C)))
    Hp = H + 2 * PAD
    Wp2 = Wo + 2
    x_even = x_pad[:, :, 0::2, :]                   # (N, Hp, Wp2, Cp)
    x_odd = x_pad[:, :, 1::2, :]                    # (N, Hp, Wp2, Cp)

    scale_p = jnp.pad(scale, (0, Cp - C)).reshape(1, Cp)
    shift_p = jnp.pad(shift, (0, Cp - C)).reshape(1, Cp)
    w_khwc = jnp.transpose(weight_oihw[:, 0, :, :], (1, 2, 0)).astype(jnp.float32)
    w_flat = jnp.pad(w_khwc, ((0, 0), (0, 0), (0, Cp - C))).reshape(KH * KW, Cp)

    # Band height: even divisor of Ho (halo BlockSpec needs TOH even); prefer
    # >= 2 bands per image so DMA pipelines and both TCs get work on v7x.
    divs = [d for d in range(2, Ho + 1, 2) if Ho % d == 0]
    assert divs, "output height needs an even divisor"
    small = [d for d in divs if d <= max(2, Ho // 2)]
    toh = max(small) if small else divs[0]
    nbands = Ho // toh

    kernel = _make_kernel(toh, Wo, Cp)

    out_nhwc = pl.pallas_call(
        kernel,
        out_shape=jax.ShapeDtypeStruct((N, Ho, Wo, Cp), jnp.float32),
        grid_spec=pltpu.PrefetchScalarGridSpec(
            num_scalar_prefetch=0,
            grid=(N, nbands),
            in_specs=[
                # even plane: main band (2*toh pre-padded rows starting at 2*i*toh)
                pl.BlockSpec((1, 2 * toh, Wp2, Cp), lambda n, i: (n, i, 0, 0)),
                # even plane: 4-row halo right below the band (toh is even)
                pl.BlockSpec((1, 4, Wp2, Cp),
                             lambda n, i: (n, (i + 1) * (toh // 2), 0, 0)),
                # odd plane: main band + halo
                pl.BlockSpec((1, 2 * toh, Wp2, Cp), lambda n, i: (n, i, 0, 0)),
                pl.BlockSpec((1, 4, Wp2, Cp),
                             lambda n, i: (n, (i + 1) * (toh // 2), 0, 0)),
                pl.BlockSpec((1, Cp), lambda n, i: (0, 0)),
                pl.BlockSpec((1, Cp), lambda n, i: (0, 0)),
                pl.BlockSpec((KH * KW, Cp), lambda n, i: (0, 0)),
            ],
            out_specs=pl.BlockSpec((1, toh, Wo, Cp), lambda n, i: (n, i, 0, 0)),
            scratch_shapes=[pltpu.VMEM((2 * toh + 4, Wp2, Cp), jnp.float32),
                            pltpu.VMEM((2 * toh + 4, Wp2, Cp), jnp.float32)],
        ),
        compiler_params=pltpu.CompilerParams(
            dimension_semantics=("parallel", "parallel"),
            vmem_limit_bytes=32 * 1024 * 1024,
        ),
    )(x_even, x_even, x_odd, x_odd, scale_p, shift_p, w_flat)

    out = out_nhwc[:, :, :, :C]
    return jnp.transpose(out, (0, 3, 1, 2))          # back to NCHW


def reference(x_nchw, gamma, beta, weight_oihw):
    """Pure-JAX reference mirroring the PyTorch module (training-mode BN)."""
    x = x_nchw.astype(jnp.float32)
    mean = jnp.mean(x, axis=(0, 2, 3), keepdims=True)
    var = jnp.mean((x - mean) ** 2, axis=(0, 2, 3), keepdims=True)
    y = (x - mean) / jnp.sqrt(var + EPS) * gamma.reshape(1, -1, 1, 1) \
        + beta.reshape(1, -1, 1, 1)
    y = jnp.maximum(y, 0.0)
    return jax.lax.conv_general_dilated(
        y, weight_oihw,
        window_strides=(STRIDE, STRIDE),
        padding=((PAD, PAD), (PAD, PAD)),
        dimension_numbers=("NCHW", "OIHW", "NCHW"),
        feature_group_count=weight_oihw.shape[0],
    )


if __name__ == "__main__":
    # Small shapes consistent with the module (C fixed at 72 by the weights;
    # spatial shrunk 56 -> 16, batch 2 to exercise the (N, band) grid).
    N, C, H, W = 2, 72, 16, 16

    key = jax.random.PRNGKey(0)
    k1, k2, k3, k4 = jax.random.split(key, 4)
    x = jax.random.normal(k1, (N, C, H, W), jnp.float32)
    gamma = 1.0 + 0.1 * jax.random.normal(k2, (C,), jnp.float32)
    beta = 0.1 * jax.random.normal(k3, (C,), jnp.float32)
    w_conv = 0.1 * jax.random.normal(k4, (C, 1, KH, KW), jnp.float32)

    fwd = jax.jit(forward)
    out = jax.block_until_ready(fwd(x, gamma, beta, w_conv))

    ref = reference(x, gamma, beta, w_conv)
    assert out.shape == ref.shape == (N, C, H // 2, W // 2)
    np.testing.assert_allclose(np.asarray(out), np.asarray(ref),
                               atol=2e-3, rtol=2e-3)
    print("KERNEL_OK")
</pallas_src>

<mosaic_0001>
module attributes {stable_mosaic.version = 11 : i64} {
  func.func @kernel(%arg0: i32, %arg1: i32, %arg2: memref<1x8x10x128xf32, #tpu.memory_space<vmem>>, %arg3: memref<1x4x10x128xf32, #tpu.memory_space<vmem>>, %arg4: memref<1x8x10x128xf32, #tpu.memory_space<vmem>>, %arg5: memref<1x4x10x128xf32, #tpu.memory_space<vmem>>, %arg6: memref<1x128xf32, #tpu.memory_space<vmem>>, %arg7: memref<1x128xf32, #tpu.memory_space<vmem>>, %arg8: memref<25x128xf32, #tpu.memory_space<vmem>>, %arg9: memref<1x4x8x128xf32, #tpu.memory_space<vmem>>, %arg10: memref<12x10x128xf32, #tpu.memory_space<vmem>>, %arg11: memref<12x10x128xf32, #tpu.memory_space<vmem>>) attributes {dimension_semantics = [#tpu.dimension_semantics<parallel>, #tpu.dimension_semantics<parallel>], iteration_bounds = array<i64: 2, 2>, scalar_prefetch = 0 : i64, scratch_operands = 2 : i64, tpu.core_type = #tpu.core_type<tc>, window_params = [{transform_indices = @transform_0, window_bounds = array<i64: 1, 8, 10, 128>}, {transform_indices = @transform_1, window_bounds = array<i64: 1, 4, 10, 128>}, {transform_indices = @transform_2, window_bounds = array<i64: 1, 8, 10, 128>}, {transform_indices = @transform_3, window_bounds = array<i64: 1, 4, 10, 128>}, {pipeline_mode = #tpu.pipeline_mode<synchronous>, transform_indices = @transform_4, window_bounds = array<i64: 1, 128>}, {pipeline_mode = #tpu.pipeline_mode<synchronous>, transform_indices = @transform_5, window_bounds = array<i64: 1, 128>}, {pipeline_mode = #tpu.pipeline_mode<synchronous>, transform_indices = @transform_6, window_bounds = array<i64: 25, 128>}, {transform_indices = @transform_7, window_bounds = array<i64: 1, 4, 8, 128>}]} {
    %c0 = arith.constant 0 : index
    %c0_0 = arith.constant 0 : index
    %0 = vector.load %arg6[%c0, %c0_0] : memref<1x128xf32, #tpu.memory_space<vmem>>, vector<1x128xf32>
    %1 = vector.shape_cast %0 : vector<1x128xf32> to vector<1x128xf32>
    %2 = vector.broadcast %1 : vector<1x128xf32> to vector<10x128xf32>
    %c0_1 = arith.constant 0 : index
    %c0_2 = arith.constant 0 : index
    %3 = vector.load %arg7[%c0_1, %c0_2] : memref<1x128xf32, #tpu.memory_space<vmem>>, vector<1x128xf32>
    %4 = vector.shape_cast %3 : vector<1x128xf32> to vector<1x128xf32>
    %5 = vector.broadcast %4 : vector<1x128xf32> to vector<10x128xf32>
    %c0_3 = arith.constant 0 : index
    %c0_4 = arith.constant 0 : index
    %c0_5 = arith.constant 0 : index
    %c0_6 = arith.constant 0 : index
    %6 = vector.load %arg2[%c0_3, %c0_4, %c0_5, %c0_6] : memref<1x8x10x128xf32, #tpu.memory_space<vmem>>, vector<1x1x10x128xf32>
    %7 = vector.shape_cast %6 : vector<1x1x10x128xf32> to vector<10x128xf32>
    %8 = arith.mulf %7, %2 : vector<10x128xf32>
    %9 = arith.addf %8, %5 : vector<10x128xf32>
    %cst = arith.constant 0.000000e+00 : f32
    %10 = vector.broadcast %cst : f32 to vector<10x128xf32>
    %11 = arith.maximumf %9, %10 : vector<10x128xf32>
    %c0_7 = arith.constant 0 : index
    %c0_8 = arith.constant 0 : index
    %c0_9 = arith.constant 0 : index
    %12 = vector.load %arg10[%c0_7, %c0_8, %c0_9] : memref<12x10x128xf32, #tpu.memory_space<vmem>>, vector<1x10x128xf32>
    %13 = vector.shape_cast %12 : vector<1x10x128xf32> to vector<10x128xf32>
    %14 = vector.shape_cast %11 : vector<10x128xf32> to vector<1x10x128xf32>
    tpu.vector_store %arg10[%c0_7, %c0_8, %c0_9], %14 {strides = array<i32>} : memref<12x10x128xf32, #tpu.memory_space<vmem>>, vector<1x10x128xf32>,
    %c0_10 = arith.constant 0 : index
    %c0_11 = arith.constant 0 : index
    %c0_12 = arith.constant 0 : index
    %c0_13 = arith.constant 0 : index
    %15 = vector.load %arg4[%c0_10, %c0_11, %c0_12, %c0_13] : memref<1x8x10x128xf32, #tpu.memory_space<vmem>>, vector<1x1x10x128xf32>
    %16 = vector.shape_cast %15 : vector<1x1x10x128xf32> to vector<10x128xf32>
    %17 = arith.mulf %16, %2 : vector<10x128xf32>
    %18 = arith.addf %17, %5 : vector<10x128xf32>
    %cst_14 = arith.constant 0.000000e+00 : f32
    %19 = vector.broadcast %cst_14 : f32 to vector<10x128xf32>
    %20 = arith.maximumf %18, %19 : vector<10x128xf32>
    %c0_15 = arith.constant 0 : index
    %c0_16 = arith.constant 0 : index
    %c0_17 = arith.constant 0 : index
    %21 = vector.load %arg11[%c0_15, %c0_16, %c0_17] : memref<12x10x128xf32, #tpu.memory_space<vmem>>, vector<1x10x128xf32>
    %22 = vector.shape_cast %21 : vector<1x10x128xf32> to vector<10x128xf32>
    %23 = vector.shape_cast %20 : vector<10x128xf32> to vector<1x10x128xf32>
    tpu.vector_store %arg11[%c0_15, %c0_16, %c0_17], %23 {strides = array<i32>} : memref<12x10x128xf32, #tpu.memory_space<vmem>>, vector<1x10x128xf32>,
    %c0_18 = arith.constant 0 : index
    %c1 = arith.constant 1 : index
    %c0_19 = arith.constant 0 : index
    %c0_20 = arith.constant 0 : index
    %24 = vector.load %arg2[%c0_18, %c1, %c0_19, %c0_20] : memref<1x8x10x128xf32, #tpu.memory_space<vmem>>, vector<1x1x10x128xf32>
    %25 = vector.shape_cast %24 : vector<1x1x10x128xf32> to vector<10x128xf32>
    %26 = arith.mulf %25, %2 : vector<10x128xf32>
    %27 = arith.addf %26, %5 : vector<10x128xf32>
    %cst_21 = arith.constant 0.000000e+00 : f32
    %28 = vector.broadcast %cst_21 : f32 to vector<10x128xf32>
    %29 = arith.maximumf %27, %28 : vector<10x128xf32>
    %c1_22 = arith.constant 1 : index
    %c0_23 = arith.constant 0 : index
    %c0_24 = arith.constant 0 : index
    %30 = vector.load %arg10[%c1_22, %c0_23, %c0_24] : memref<12x10x128xf32, #tpu.memory_space<vmem>>, vector<1x10x128xf32>
    %31 = vector.shape_cast %30 : vector<1x10x128xf32> to vector<10x128xf32>
    %32 = vector.shape_cast %29 : vector<10x128xf32> to vector<1x10x128xf32>
    tpu.vector_store %arg10[%c1_22, %c0_23, %c0_24], %32 {strides = array<i32>} : memref<12x10x128xf32, #tpu.memory_space<vmem>>, vector<1x10x128xf32>,
    %c0_25 = arith.constant 0 : index
    %c1_26 = arith.constant 1 : index
    %c0_27 = arith.constant 0 : index
    %c0_28 = arith.constant 0 : index
    %33 = vector.load %arg4[%c0_25, %c1_26, %c0_27, %c0_28] : memref<1x8x10x128xf32, #tpu.memory_space<vmem>>, vector<1x1x10x128xf32>
    %34 = vector.shape_cast %33 : vector<1x1x10x128xf32> to vector<10x128xf32>
    %35 = arith.mulf %34, %2 : vector<10x128xf32>
    %36 = arith.addf %35, %5 : vector<10x128xf32>
    %cst_29 = arith.constant 0.000000e+00 : f32
    %37 = vector.broadcast %cst_29 : f32 to vector<10x128xf32>
    %38 = arith.maximumf %36, %37 : vector<10x128xf32>
    %c1_30 = arith.constant 1 : index
    %c0_31 = arith.constant 0 : index
    %c0_32 = arith.constant 0 : index
    %39 = vector.load %arg11[%c1_30, %c0_31, %c0_32] : memref<12x10x128xf32, #tpu.memory_space<vmem>>, vector<1x10x128xf32>
    %40 = vector.shape_cast %39 : vector<1x10x128xf32> to vector<10x128xf32>
    %41 = vector.shape_cast %38 : vector<10x128xf32> to vector<1x10x128xf32>
    tpu.vector_store %arg11[%c1_30, %c0_31, %c0_32], %41 {strides = array<i32>} : memref<12x10x128xf32, #tpu.memory_space<vmem>>, vector<1x10x128xf32>,
    %c0_33 = arith.constant 0 : index
    %c2 = arith.constant 2 : index
    %c0_34 = arith.constant 0 : index
    %c0_35 = arith.constant 0 : index
    %42 = vector.load %arg2[%c0_33, %c2, %c0_34, %c0_35] : memref<1x8x10x128xf32, #tpu.memory_space<vmem>>, vector<1x1x10x128xf32>
    %43 = vector.shape_cast %42 : vector<1x1x10x128xf32> to vector<10x128xf32>
    %44 = arith.mulf %43, %2 : vector<10x128xf32>
    %45 = arith.addf %44, %5 : vector<10x128xf32>
    %cst_36 = arith.constant 0.000000e+00 : f32
    %46 = vector.broadcast %cst_36 : f32 to vector<10x128xf32>
    %47 = arith.maximumf %45, %46 : vector<10x128xf32>
    %c2_37 = arith.constant 2 : index
    %c0_38 = arith.constant 0 : index
    %c0_39 = arith.constant 0 : index
    %48 = vector.load %arg10[%c2_37, %c0_38, %c0_39] : memref<12x10x128xf32, #tpu.memory_space<vmem>>, vector<1x10x128xf32>
    %49 = vector.shape_cast %48 : vector<1x10x128xf32> to vector<10x128xf32>
    %50 = vector.shape_cast %47 : vector<10x128xf32> to vector<1x10x128xf32>
    tpu.vector_store %arg10[%c2_37, %c0_38, %c0_39], %50 {strides = array<i32>} : memref<12x10x128xf32, #tpu.memory_space<vmem>>, vector<1x10x128xf32>,
    %c0_40 = arith.constant 0 : index
    %c2_41 = arith.constant 2 : index
    %c0_42 = arith.constant 0 : index
    %c0_43 = arith.constant 0 : index
    %51 = vector.load %arg4[%c0_40, %c2_41, %c0_42, %c0_43] : memref<1x8x10x128xf32, #tpu.memory_space<vmem>>, vector<1x1x10x128xf32>
    %52 = vector.shape_cast %51 : vector<1x1x10x128xf32> to vector<10x128xf32>
    %53 = arith.mulf %52, %2 : vector<10x128xf32>
    %54 = arith.addf %53, %5 : vector<10x128xf32>
    %cst_44 = arith.constant 0.000000e+00 : f32
    %55 = vector.broadcast %cst_44 : f32 to vector<10x128xf32>
    %56 = arith.maximumf %54, %55 : vector<10x128xf32>
    %c2_45 = arith.constant 2 : index
    %c0_46 = arith.constant 0 : index
    %c0_47 = arith.constant 0 : index
    %57 = vector.load %arg11[%c2_45, %c0_46, %c0_47] : memref<12x10x128xf32, #tpu.memory_space<vmem>>, vector<1x10x128xf32>
    %58 = vector.shape_cast %57 : vector<1x10x128xf32> to vector<10x128xf32>
    %59 = vector.shape_cast %56 : vector<10x128xf32> to vector<1x10x128xf32>
    tpu.vector_store %arg11[%c2_45, %c0_46, %c0_47], %59 {strides = array<i32>} : memref<12x10x128xf32, #tpu.memory_space<vmem>>, vector<1x10x128xf32>,
    %c0_48 = arith.constant 0 : index
    %c3 = arith.constant 3 : index
    %c0_49 = arith.constant 0 : index
    %c0_50 = arith.constant 0 : index
    %60 = vector.load %arg2[%c0_48, %c3, %c0_49, %c0_50] : memref<1x8x10x128xf32, #tpu.memory_space<vmem>>, vector<1x1x10x128xf32>
    %61 = vector.shape_cast %60 : vector<1x1x10x128xf32> to vector<10x128xf32>
    %62 = arith.mulf %61, %2 : vector<10x128xf32>
    %63 = arith.addf %62, %5 : vector<10x128xf32>
    %cst_51 = arith.constant 0.000000e+00 : f32
    %64 = vector.broadcast %cst_51 : f32 to vector<10x128xf32>
    %65 = arith.maximumf %63, %64 : vector<10x128xf32>
    %c3_52 = arith.constant 3 : index
    %c0_53 = arith.constant 0 : index
    %c0_54 = arith.constant 0 : index
    %66 = vector.load %arg10[%c3_52, %c0_53, %c0_54] : memref<12x10x128xf32, #tpu.memory_space<vmem>>, vector<1x10x128xf32>
    %67 = vector.shape_cast %66 : vector<1x10x128xf32> to vector<10x128xf32>
    %68 = vector.shape_cast %65 : vector<10x128xf32> to vector<1x10x128xf32>
    tpu.vector_store %arg10[%c3_52, %c0_53, %c0_54], %68 {strides = array<i32>} : memref<12x10x128xf32, #tpu.memory_space<vmem>>, vector<1x10x128xf32>,
    %c0_55 = arith.constant 0 : index
    %c3_56 = arith.constant 3 : index
    %c0_57 = arith.constant 0 : index
    %c0_58 = arith.constant 0 : index
    %69 = vector.load %arg4[%c0_55, %c3_56, %c0_57, %c0_58] : memref<1x8x10x128xf32, #tpu.memory_space<vmem>>, vector<1x1x10x128xf32>
    %70 = vector.shape_cast %69 : vector<1x1x10x128xf32> to vector<10x128xf32>
    %71 = arith.mulf %70, %2 : vector<10x128xf32>
    %72 = arith.addf %71, %5 : vector<10x128xf32>
    %cst_59 = arith.constant 0.000000e+00 : f32
    %73 = vector.broadcast %cst_59 : f32 to vector<10x128xf32>
    %74 = arith.maximumf %72, %73 : vector<10x128xf32>
    %c3_60 = arith.constant 3 : index
    %c0_61 = arith.constant 0 : index
    %c0_62 = arith.constant 0 : index
    %75 = vector.load %arg11[%c3_60, %c0_61, %c0_62] : memref<12x10x128xf32, #tpu.memory_space<vmem>>, vector<1x10x128xf32>
    %76 = vector.shape_cast %75 : vector<1x10x128xf32> to vector<10x128xf32>
    %77 = vector.shape_cast %74 : vector<10x128xf32> to vector<1x10x128xf32>
    tpu.vector_store %arg11[%c3_60, %c0_61, %c0_62], %77 {strides = array<i32>} : memref<12x10x128xf32, #tpu.memory_space<vmem>>, vector<1x10x128xf32>,
    %c0_63 = arith.constant 0 : index
    %c4 = arith.constant 4 : index
    %c0_64 = arith.constant 0 : index
    %c0_65 = arith.constant 0 : index
    %78 = vector.load %arg2[%c0_63, %c4, %c0_64, %c0_65] : memref<1x8x10x128xf32, #tpu.memory_space<vmem>>, vector<1x1x10x128xf32>
    %79 = vector.shape_cast %78 : vector<1x1x10x128xf32> to vector<10x128xf32>
    %80 = arith.mulf %79, %2 : vector<10x128xf32>
    %81 = arith.addf %80, %5 : vector<10x128xf32>
    %cst_66 = arith.constant 0.000000e+00 : f32
    %82 = vector.broadcast %cst_66 : f32 to vector<10x128xf32>
    %83 = arith.maximumf %81, %82 : vector<10x128xf32>
    %c4_67 = arith.constant 4 : index
    %c0_68 = arith.constant 0 : index
    %c0_69 = arith.constant 0 : index
    %84 = vector.load %arg10[%c4_67, %c0_68, %c0_69] : memref<12x10x128xf32, #tpu.memory_space<vmem>>, vector<1x10x128xf32>
    %85 = vector.shape_cast %84 : vector<1x10x128xf32> to vector<10x128xf32>
    %86 = vector.shape_cast %83 : vector<10x128xf32> to vector<1x10x128xf32>
    tpu.vector_store %arg10[%c4_67, %c0_68, %c0_69], %86 {strides = array<i32>} : memref<12x10x128xf32, #tpu.memory_space<vmem>>, vector<1x10x128xf32>,
    %c0_70 = arith.constant 0 : index
    %c4_71 = arith.constant 4 : index
    %c0_72 = arith.constant 0 : index
    %c0_73 = arith.constant 0 : index
    %87 = vector.load %arg4[%c0_70, %c4_71, %c0_72, %c0_73] : memref<1x8x10x128xf32, #tpu.memory_space<vmem>>, vector<1x1x10x128xf32>
    %88 = vector.shape_cast %87 : vector<1x1x10x128xf32> to vector<10x128xf32>
    %89 = arith.mulf %88, %2 : vector<10x128xf32>
    %90 = arith.addf %89, %5 : vector<10x128xf32>
    %cst_74 = arith.constant 0.000000e+00 : f32
    %91 = vector.broadcast %cst_74 : f32 to vector<10x128xf32>
    %92 = arith.maximumf %90, %91 : vector<10x128xf32>
    %c4_75 = arith.constant 4 : index
    %c0_76 = arith.constant 0 : index
    %c0_77 = arith.constant 0 : index
    %93 = vector.load %arg11[%c4_75, %c0_76, %c0_77] : memref<12x10x128xf32, #tpu.memory_space<vmem>>, vector<1x10x128xf32>
    %94 = vector.shape_cast %93 : vector<1x10x128xf32> to vector<10x128xf32>
    %95 = vector.shape_cast %92 : vector<10x128xf32> to vector<1x10x128xf32>
    tpu.vector_store %arg11[%c4_75, %c0_76, %c0_77], %95 {strides = array<i32>} : memref<12x10x128xf32, #tpu.memory_space<vmem>>, vector<1x10x128xf32>,
    %c0_78 = arith.constant 0 : index
    %c5 = arith.constant 5 : index
    %c0_79 = arith.constant 0 : index
    %c0_80 = arith.constant 0 : index
    %96 = vector.load %arg2[%c0_78, %c5, %c0_79, %c0_80] : memref<1x8x10x128xf32, #tpu.memory_space<vmem>>, vector<1x1x10x128xf32>
    %97 = vector.shape_cast %96 : vector<1x1x10x128xf32> to vector<10x128xf32>
    %98 = arith.mulf %97, %2 : vector<10x128xf32>
    %99 = arith.addf %98, %5 : vector<10x128xf32>
    %cst_81 = arith.constant 0.000000e+00 : f32
    %100 = vector.broadcast %cst_81 : f32 to vector<10x128xf32>
    %101 = arith.maximumf %99, %100 : vector<10x128xf32>
    %c5_82 = arith.constant 5 : index
    %c0_83 = arith.constant 0 : index
    %c0_84 = arith.constant 0 : index
    %102 = vector.load %arg10[%c5_82, %c0_83, %c0_84] : memref<12x10x128xf32, #tpu.memory_space<vmem>>, vector<1x10x128xf32>
    %103 = vector.shape_cast %102 : vector<1x10x128xf32> to vector<10x128xf32>
    %104 = vector.shape_cast %101 : vector<10x128xf32> to vector<1x10x128xf32>
    tpu.vector_store %arg10[%c5_82, %c0_83, %c0_84], %104 {strides = array<i32>} : memref<12x10x128xf32, #tpu.memory_space<vmem>>, vector<1x10x128xf32>,
    %c0_85 = arith.constant 0 : index
    %c5_86 = arith.constant 5 : index
    %c0_87 = arith.constant 0 : index
    %c0_88 = arith.constant 0 : index
    %105 = vector.load %arg4[%c0_85, %c5_86, %c0_87, %c0_88] : memref<1x8x10x128xf32, #tpu.memory_space<vmem>>, vector<1x1x10x128xf32>
    %106 = vector.shape_cast %105 : vector<1x1x10x128xf32> to vector<10x128xf32>
    %107 = arith.mulf %106, %2 : vector<10x128xf32>
    %108 = arith.addf %107, %5 : vector<10x128xf32>
    %cst_89 = arith.constant 0.000000e+00 : f32
    %109 = vector.broadcast %cst_89 : f32 to vector<10x128xf32>
    %110 = arith.maximumf %108, %109 : vector<10x128xf32>
    %c5_90 = arith.constant 5 : index
    %c0_91 = arith.constant 0 : index
    %c0_92 = arith.constant 0 : index
    %111 = vector.load %arg11[%c5_90, %c0_91, %c0_92] : memref<12x10x128xf32, #tpu.memory_space<vmem>>, vector<1x10x128xf32>
    %112 = vector.shape_cast %111 : vector<1x10x128xf32> to vector<10x128xf32>
    %113 = vector.shape_cast %110 : vector<10x128xf32> to vector<1x10x128xf32>
    tpu.vector_store %arg11[%c5_90, %c0_91, %c0_92], %113 {strides = array<i32>} : memref<12x10x128xf32, #tpu.memory_space<vmem>>, vector<1x10x128xf32>,
    %c0_93 = arith.constant 0 : index
    %c6 = arith.constant 6 : index
    %c0_94 = arith.constant 0 : index
    %c0_95 = arith.constant 0 : index
    %114 = vector.load %arg2[%c0_93, %c6, %c0_94, %c0_95] : memref<1x8x10x128xf32, #tpu.memory_space<vmem>>, vector<1x1x10x128xf32>
    %115 = vector.shape_cast %114 : vector<1x1x10x128xf32> to vector<10x128xf32>
    %116 = arith.mulf %115, %2 : vector<10x128xf32>
    %117 = arith.addf %116, %5 : vector<10x128xf32>
    %cst_96 = arith.constant 0.000000e+00 : f32
    %118 = vector.broadcast %cst_96 : f32 to vector<10x128xf32>
    %119 = arith.maximumf %117, %118 : vector<10x128xf32>
    %c6_97 = arith.constant 6 : index
    %c0_98 = arith.constant 0 : index
    %c0_99 = arith.constant 0 : index
    %120 = vector.load %arg10[%c6_97, %c0_98, %c0_99] : memref<12x10x128xf32, #tpu.memory_space<vmem>>, vector<1x10x128xf32>
    %121 = vector.shape_cast %120 : vector<1x10x128xf32> to vector<10x128xf32>
    %122 = vector.shape_cast %119 : vector<10x128xf32> to vector<1x10x128xf32>
    tpu.vector_store %arg10[%c6_97, %c0_98, %c0_99], %122 {strides = array<i32>} : memref<12x10x128xf32, #tpu.memory_space<vmem>>, vector<1x10x128xf32>,
    %c0_100 = arith.constant 0 : index
    %c6_101 = arith.constant 6 : index
    %c0_102 = arith.constant 0 : index
    %c0_103 = arith.constant 0 : index
    %123 = vector.load %arg4[%c0_100, %c6_101, %c0_102, %c0_103] : memref<1x8x10x128xf32, #tpu.memory_space<vmem>>, vector<1x1x10x128xf32>
    %124 = vector.shape_cast %123 : vector<1x1x10x128xf32> to vector<10x128xf32>
    %125 = arith.mulf %124, %2 : vector<10x128xf32>
    %126 = arith.addf %125, %5 : vector<10x128xf32>
    %cst_104 = arith.constant 0.000000e+00 : f32
    %127 = vector.broadcast %cst_104 : f32 to vector<10x128xf32>
    %128 = arith.maximumf %126, %127 : vector<10x128xf32>
    %c6_105 = arith.constant 6 : index
    %c0_106 = arith.constant 0 : index
    %c0_107 = arith.constant 0 : index
    %129 = vector.load %arg11[%c6_105, %c0_106, %c0_107] : memref<12x10x128xf32, #tpu.memory_space<vmem>>, vector<1x10x128xf32>
    %130 = vector.shape_cast %129 : vector<1x10x128xf32> to vector<10x128xf32>
    %131 = vector.shape_cast %128 : vector<10x128xf32> to vector<1x10x128xf32>
    tpu.vector_store %arg11[%c6_105, %c0_106, %c0_107], %131 {strides = array<i32>} : memref<12x10x128xf32, #tpu.memory_space<vmem>>, vector<1x10x128xf32>,
    %c0_108 = arith.constant 0 : index
    %c7 = arith.constant 7 : index
    %c0_109 = arith.constant 0 : index
    %c0_110 = arith.constant 0 : index
    %132 = vector.load %arg2[%c0_108, %c7, %c0_109, %c0_110] : memref<1x8x10x128xf32, #tpu.memory_space<vmem>>, vector<1x1x10x128xf32>
    %133 = vector.shape_cast %132 : vector<1x1x10x128xf32> to vector<10x128xf32>
    %134 = arith.mulf %133, %2 : vector<10x128xf32>
    %135 = arith.addf %134, %5 : vector<10x128xf32>
    %cst_111 = arith.constant 0.000000e+00 : f32
    %136 = vector.broadcast %cst_111 : f32 to vector<10x128xf32>
    %137 = arith.maximumf %135, %136 : vector<10x128xf32>
    %c7_112 = arith.constant 7 : index
    %c0_113 = arith.constant 0 : index
    %c0_114 = arith.constant 0 : index
    %138 = vector.load %arg10[%c7_112, %c0_113, %c0_114] : memref<12x10x128xf32, #tpu.memory_space<vmem>>, vector<1x10x128xf32>
    %139 = vector.shape_cast %138 : vector<1x10x128xf32> to vector<10x128xf32>
    %140 = vector.shape_cast %137 : vector<10x128xf32> to vector<1x10x128xf32>
    tpu.vector_store %arg10[%c7_112, %c0_113, %c0_114], %140 {strides = array<i32>} : memref<12x10x128xf32, #tpu.memory_space<vmem>>, vector<1x10x128xf32>,
    %c0_115 = arith.constant 0 : index
    %c7_116 = arith.constant 7 : index
    %c0_117 = arith.constant 0 : index
    %c0_118 = arith.constant 0 : index
    %141 = vector.load %arg4[%c0_115, %c7_116, %c0_117, %c0_118] : memref<1x8x10x128xf32, #tpu.memory_space<vmem>>, vector<1x1x10x128xf32>
    %142 = vector.shape_cast %141 : vector<1x1x10x128xf32> to vector<10x128xf32>
    %143 = arith.mulf %142, %2 : vector<10x128xf32>
    %144 = arith.addf %143, %5 : vector<10x128xf32>
    %cst_119 = arith.constant 0.000000e+00 : f32
    %145 = vector.broadcast %cst_119 : f32 to vector<10x128xf32>
    %146 = arith.maximumf %144, %145 : vector<10x128xf32>
    %c7_120 = arith.constant 7 : index
    %c0_121 = arith.constant 0 : index
    %c0_122 = arith.constant 0 : index
    %147 = vector.load %arg11[%c7_120, %c0_121, %c0_122] : memref<12x10x128xf32, #tpu.memory_space<vmem>>, vector<1x10x128xf32>
    %148 = vector.shape_cast %147 : vector<1x10x128xf32> to vector<10x128xf32>
    %149 = vector.shape_cast %146 : vector<10x128xf32> to vector<1x10x128xf32>
    tpu.vector_store %arg11[%c7_120, %c0_121, %c0_122], %149 {strides = array<i32>} : memref<12x10x128xf32, #tpu.memory_space<vmem>>, vector<1x10x128xf32>,
    %c0_123 = arith.constant 0 : index
    %c0_124 = arith.constant 0 : index
    %c0_125 = arith.constant 0 : index
    %c0_126 = arith.constant 0 : index
    %150 = vector.load %arg3[%c0_123, %c0_124, %c0_125, %c0_126] : memref<1x4x10x128xf32, #tpu.memory_space<vmem>>, vector<1x1x10x128xf32>
    %151 = vector.shape_cast %150 : vector<1x1x10x128xf32> to vector<10x128xf32>
    %152 = arith.mulf %151, %2 : vector<10x128xf32>
    %153 = arith.addf %152, %5 : vector<10x128xf32>
    %cst_127 = arith.constant 0.000000e+00 : f32
    %154 = vector.broadcast %cst_127 : f32 to vector<10x128xf32>
    %155 = arith.maximumf %153, %154 : vector<10x128xf32>
    %c8 = arith.constant 8 : index
    %c0_128 = arith.constant 0 : index
    %c0_129 = arith.constant 0 : index
    %156 = vector.load %arg10[%c8, %c0_128, %c0_129] : memref<12x10x128xf32, #tpu.memory_space<vmem>>, vector<1x10x128xf32>
    %157 = vector.shape_cast %156 : vector<1x10x128xf32> to vector<10x128xf32>
    %158 = vector.shape_cast %155 : vector<10x128xf32> to vector<1x10x128xf32>
    tpu.vector_store %arg10[%c8, %c0_128, %c0_129], %158 {strides = array<i32>} : memref<12x10x128xf32, #tpu.memory_space<vmem>>, vector<1x10x128xf32>,
    %c0_130 = arith.constant 0 : index
    %c0_131 = arith.constant 0 : index
    %c0_132 = arith.constant 0 : index
    %c0_133 = arith.constant 0 : index
    %159 = vector.load %arg5[%c0_130, %c0_131, %c0_132, %c0_133] : memref<1x4x10x128xf32, #tpu.memory_space<vmem>>, vector<1x1x10x128xf32>
    %160 = vector.shape_cast %159 : vector<1x1x10x128xf32> to vector<10x128xf32>
    %161 = arith.mulf %160, %2 : vector<10x128xf32>
    %162 = arith.addf %161, %5 : vector<10x128xf32>
    %cst_134 = arith.constant 0.000000e+00 : f32
    %163 = vector.broadcast %cst_134 : f32 to vector<10x128xf32>
    %164 = arith.maximumf %162, %163 : vector<10x128xf32>
    %c8_135 = arith.constant 8 : index
    %c0_136 = arith.constant 0 : index
    %c0_137 = arith.constant 0 : index
    %165 = vector.load %arg11[%c8_135, %c0_136, %c0_137] : memref<12x10x128xf32, #tpu.memory_space<vmem>>, vector<1x10x128xf32>
    %166 = vector.shape_cast %165 : vector<1x10x128xf32> to vector<10x128xf32>
    %167 = vector.shape_cast %164 : vector<10x128xf32> to vector<1x10x128xf32>
    tpu.vector_store %arg11[%c8_135, %c0_136, %c0_137], %167 {strides = array<i32>} : memref<12x10x128xf32, #tpu.memory_space<vmem>>, vector<1x10x128xf32>,
    %c0_138 = arith.constant 0 : index
    %c1_139 = arith.constant 1 : index
    %c0_140 = arith.constant 0 : index
    %c0_141 = arith.constant 0 : index
    %168 = vector.load %arg3[%c0_138, %c1_139, %c0_140, %c0_141] : memref<1x4x10x128xf32, #tpu.memory_space<vmem>>, vector<1x1x10x128xf32>
    %169 = vector.shape_cast %168 : vector<1x1x10x128xf32> to vector<10x128xf32>
    %170 = arith.mulf %169, %2 : vector<10x128xf32>
    %171 = arith.addf %170, %5 : vector<10x128xf32>
    %cst_142 = arith.constant 0.000000e+00 : f32
    %172 = vector.broadcast %cst_142 : f32 to vector<10x128xf32>
    %173 = arith.maximumf %171, %172 : vector<10x128xf32>
    %c9 = arith.constant 9 : index
    %c0_143 = arith.constant 0 : index
    %c0_144 = arith.constant 0 : index
    %174 = vector.load %arg10[%c9, %c0_143, %c0_144] : memref<12x10x128xf32, #tpu.memory_space<vmem>>, vector<1x10x128xf32>
    %175 = vector.shape_cast %174 : vector<1x10x128xf32> to vector<10x128xf32>
    %176 = vector.shape_cast %173 : vector<10x128xf32> to vector<1x10x128xf32>
    tpu.vector_store %arg10[%c9, %c0_143, %c0_144], %176 {strides = array<i32>} : memref<12x10x128xf32, #tpu.memory_space<vmem>>, vector<1x10x128xf32>,
    %c0_145 = arith.constant 0 : index
    %c1_146 = arith.constant 1 : index
    %c0_147 = arith.constant 0 : index
    %c0_148 = arith.constant 0 : index
    %177 = vector.load %arg5[%c0_145, %c1_146, %c0_147, %c0_148] : memref<1x4x10x128xf32, #tpu.memory_space<vmem>>, vector<1x1x10x128xf32>
    %178 = vector.shape_cast %177 : vector<1x1x10x128xf32> to vector<10x128xf32>
    %179 = arith.mulf %178, %2 : vector<10x128xf32>
    %180 = arith.addf %179, %5 : vector<10x128xf32>
    %cst_149 = arith.constant 0.000000e+00 : f32
    %181 = vector.broadcast %cst_149 : f32 to vector<10x128xf32>
    %182 = arith.maximumf %180, %181 : vector<10x128xf32>
    %c9_150 = arith.constant 9 : index
    %c0_151 = arith.constant 0 : index
    %c0_152 = arith.constant 0 : index
    %183 = vector.load %arg11[%c9_150, %c0_151, %c0_152] : memref<12x10x128xf32, #tpu.memory_space<vmem>>, vector<1x10x128xf32>
    %184 = vector.shape_cast %183 : vector<1x10x128xf32> to vector<10x128xf32>
    %185 = vector.shape_cast %182 : vector<10x128xf32> to vector<1x10x128xf32>
    tpu.vector_store %arg11[%c9_150, %c0_151, %c0_152], %185 {strides = array<i32>} : memref<12x10x128xf32, #tpu.memory_space<vmem>>, vector<1x10x128xf32>,
    %c0_153 = arith.constant 0 : index
    %c2_154 = arith.constant 2 : index
    %c0_155 = arith.constant 0 : index
    %c0_156 = arith.constant 0 : index
    %186 = vector.load %arg3[%c0_153, %c2_154, %c0_155, %c0_156] : memref<1x4x10x128xf32, #tpu.memory_space<vmem>>, vector<1x1x10x128xf32>
    %187 = vector.shape_cast %186 : vector<1x1x10x128xf32> to vector<10x128xf32>
    %188 = arith.mulf %187, %2 : vector<10x128xf32>
    %189 = arith.addf %188, %5 : vector<10x128xf32>
    %cst_157 = arith.constant 0.000000e+00 : f32
    %190 = vector.broadcast %cst_157 : f32 to vector<10x128xf32>
    %191 = arith.maximumf %189, %190 : vector<10x128xf32>
    %c10 = arith.constant 10 : index
    %c0_158 = arith.constant 0 : index
    %c0_159 = arith.constant 0 : index
    %192 = vector.load %arg10[%c10, %c0_158, %c0_159] : memref<12x10x128xf32, #tpu.memory_space<vmem>>, vector<1x10x128xf32>
    %193 = vector.shape_cast %192 : vector<1x10x128xf32> to vector<10x128xf32>
    %194 = vector.shape_cast %191 : vector<10x128xf32> to vector<1x10x128xf32>
    tpu.vector_store %arg10[%c10, %c0_158, %c0_159], %194 {strides = array<i32>} : memref<12x10x128xf32, #tpu.memory_space<vmem>>, vector<1x10x128xf32>,
    %c0_160 = arith.constant 0 : index
    %c2_161 = arith.constant 2 : index
    %c0_162 = arith.constant 0 : index
    %c0_163 = arith.constant 0 : index
    %195 = vector.load %arg5[%c0_160, %c2_161, %c0_162, %c0_163] : memref<1x4x10x128xf32, #tpu.memory_space<vmem>>, vector<1x1x10x128xf32>
    %196 = vector.shape_cast %195 : vector<1x1x10x128xf32> to vector<10x128xf32>
    %197 = arith.mulf %196, %2 : vector<10x128xf32>
    %198 = arith.addf %197, %5 : vector<10x128xf32>
    %cst_164 = arith.constant 0.000000e+00 : f32
    %199 = vector.broadcast %cst_164 : f32 to vector<10x128xf32>
    %200 = arith.maximumf %198, %199 : vector<10x128xf32>
    %c10_165 = arith.constant 10 : index
    %c0_166 = arith.constant 0 : index
    %c0_167 = arith.constant 0 : index
    %201 = vector.load %arg11[%c10_165, %c0_166, %c0_167] : memref<12x10x128xf32, #tpu.memory_space<vmem>>, vector<1x10x128xf32>
    %202 = vector.shape_cast %201 : vector<1x10x128xf32> to vector<10x128xf32>
    %203 = vector.shape_cast %200 : vector<10x128xf32> to vector<1x10x128xf32>
    tpu.vector_store %arg11[%c10_165, %c0_166, %c0_167], %203 {strides = array<i32>} : memref<12x10x128xf32, #tpu.memory_space<vmem>>, vector<1x10x128xf32>,
    %c0_168 = arith.constant 0 : index
    %c3_169 = arith.constant 3 : index
    %c0_170 = arith.constant 0 : index
    %c0_171 = arith.constant 0 : index
    %204 = vector.load %arg3[%c0_168, %c3_169, %c0_170, %c0_171] : memref<1x4x10x128xf32, #tpu.memory_space<vmem>>, vector<1x1x10x128xf32>
    %205 = vector.shape_cast %204 : vector<1x1x10x128xf32> to vector<10x128xf32>
    %206 = arith.mulf %205, %2 : vector<10x128xf32>
    %207 = arith.addf %206, %5 : vector<10x128xf32>
    %cst_172 = arith.constant 0.000000e+00 : f32
    %208 = vector.broadcast %cst_172 : f32 to vector<10x128xf32>
    %209 = arith.maximumf %207, %208 : vector<10x128xf32>
    %c11 = arith.constant 11 : index
    %c0_173 = arith.constant 0 : index
    %c0_174 = arith.constant 0 : index
    %210 = vector.load %arg10[%c11, %c0_173, %c0_174] : memref<12x10x128xf32, #tpu.memory_space<vmem>>, vector<1x10x128xf32>
    %211 = vector.shape_cast %210 : vector<1x10x128xf32> to vector<10x128xf32>
    %212 = vector.shape_cast %209 : vector<10x128xf32> to vector<1x10x128xf32>
    tpu.vector_store %arg10[%c11, %c0_173, %c0_174], %212 {strides = array<i32>} : memref<12x10x128xf32, #tpu.memory_space<vmem>>, vector<1x10x128xf32>,
    %c0_175 = arith.constant 0 : index
    %c3_176 = arith.constant 3 : index
    %c0_177 = arith.constant 0 : index
    %c0_178 = arith.constant 0 : index
    %213 = vector.load %arg5[%c0_175, %c3_176, %c0_177, %c0_178] : memref<1x4x10x128xf32, #tpu.memory_space<vmem>>, vector<1x1x10x128xf32>
    %214 = vector.shape_cast %213 : vector<1x1x10x128xf32> to vector<10x128xf32>
    %215 = arith.mulf %214, %2 : vector<10x128xf32>
    %216 = arith.addf %215, %5 : vector<10x128xf32>
    %cst_179 = arith.constant 0.000000e+00 : f32
    %217 = vector.broadcast %cst_179 : f32 to vector<10x128xf32>
    %218 = arith.maximumf %216, %217 : vector<10x128xf32>
    %c11_180 = arith.constant 11 : index
    %c0_181 = arith.constant 0 : index
    %c0_182 = arith.constant 0 : index
    %219 = vector.load %arg11[%c11_180, %c0_181, %c0_182] : memref<12x10x128xf32, #tpu.memory_space<vmem>>, vector<1x10x128xf32>
    %220 = vector.shape_cast %219 : vector<1x10x128xf32> to vector<10x128xf32>
    %221 = vector.shape_cast %218 : vector<10x128xf32> to vector<1x10x128xf32>
    tpu.vector_store %arg11[%c11_180, %c0_181, %c0_182], %221 {strides = array<i32>} : memref<12x10x128xf32, #tpu.memory_space<vmem>>, vector<1x10x128xf32>,
    %cst_183 = arith.constant 0.000000e+00 : f32
    %222 = vector.broadcast %cst_183 : f32 to vector<12x1x128xf32>
    %c0_184 = arith.constant 0 : index
    %c0_185 = arith.constant 0 : index
    %c0_186 = arith.constant 0 : index
    %223 = vector.load %arg10[%c0_184, %c0_185, %c0_186] : memref<12x10x128xf32, #tpu.memory_space<vmem>>, vector<12x1x128xf32>
    tpu.vector_store %arg10[%c0_184, %c0_185, %c0_186], %222 {strides = array<i32>} : memref<12x10x128xf32, #tpu.memory_space<vmem>>, vector<12x1x128xf32>,
    %c0_187 = arith.constant 0 : index
    %c9_188 = arith.constant 9 : index
    %c0_189 = arith.constant 0 : index
    %224 = vector.load %arg10[%c0_187, %c9_188, %c0_189] : memref<12x10x128xf32, #tpu.memory_space<vmem>>, vector<12x1x128xf32>
    tpu.vector_store %arg10[%c0_187, %c9_188, %c0_189], %222 {strides = array<i32>} : memref<12x10x128xf32, #tpu.memory_space<vmem>>, vector<12x1x128xf32>,
    %c0_190 = arith.constant 0 : index
    %c0_191 = arith.constant 0 : index
    %c0_192 = arith.constant 0 : index
    %225 = vector.load %arg11[%c0_190, %c0_191, %c0_192] : memref<12x10x128xf32, #tpu.memory_space<vmem>>, vector<12x1x128xf32>
    tpu.vector_store %arg11[%c0_190, %c0_191, %c0_192], %222 {strides = array<i32>} : memref<12x10x128xf32, #tpu.memory_space<vmem>>, vector<12x1x128xf32>,
    %c0_193 = arith.constant 0 : index
    %c9_194 = arith.constant 9 : index
    %c0_195 = arith.constant 0 : index
    %226 = vector.load %arg11[%c0_193, %c9_194, %c0_195] : memref<12x10x128xf32, #tpu.memory_space<vmem>>, vector<12x1x128xf32>
    tpu.vector_store %arg11[%c0_193, %c9_194, %c0_195], %222 {strides = array<i32>} : memref<12x10x128xf32, #tpu.memory_space<vmem>>, vector<12x1x128xf32>,
    %cst_196 = arith.constant 0.000000e+00 : f32
    %227 = vector.broadcast %cst_196 : f32 to vector<2x10x128xf32>
    %c0_i32 = arith.constant 0 : i32
    %228 = arith.cmpi eq, %arg1, %c0_i32 : i32
    %229 = arith.extui %228 : i1 to i32
    %c0_i32_197 = arith.constant 0 : i32
    %230 = arith.cmpi ne, %229, %c0_i32_197 : i32
    scf.if %230 {
      %c0_353 = arith.constant 0 : index
      %c0_354 = arith.constant 0 : index
      %c0_355 = arith.constant 0 : index
      %1055 = vector.load %arg10[%c0_353, %c0_354, %c0_355] : memref<12x10x128xf32, #tpu.memory_space<vmem>>, vector<2x10x128xf32>
      tpu.vector_store %arg10[%c0_353, %c0_354, %c0_355], %227 {strides = array<i32>} : memref<12x10x128xf32, #tpu.memory_space<vmem>>, vector<2x10x128xf32>,
      %c0_356 = arith.constant 0 : index
      %c0_357 = arith.constant 0 : index
      %c0_358 = arith.constant 0 : index
      %1056 = vector.load %arg11[%c0_356, %c0_357, %c0_358] : memref<12x10x128xf32, #tpu.memory_space<vmem>>, vector<2x10x128xf32>
      tpu.vector_store %arg11[%c0_356, %c0_357, %c0_358], %227 {strides = array<i32>} : memref<12x10x128xf32, #tpu.memory_space<vmem>>, vector<2x10x128xf32>,
    } else {
    }
    %c1_i32 = arith.constant 1 : i32
    %231 = arith.cmpi eq, %arg1, %c1_i32 : i32
    %232 = arith.extui %231 : i1 to i32
    %c0_i32_198 = arith.constant 0 : i32
    %233 = arith.cmpi ne, %232, %c0_i32_198 : i32
    scf.if %233 {
      %c10_353 = arith.constant 10 : index
      %c0_354 = arith.constant 0 : index
      %c0_355 = arith.constant 0 : index
      %1055 = vector.load %arg10[%c10_353, %c0_354, %c0_355] : memref<12x10x128xf32, #tpu.memory_space<vmem>>, vector<2x10x128xf32>
      tpu.vector_store %arg10[%c10_353, %c0_354, %c0_355], %227 {strides = array<i32>} : memref<12x10x128xf32, #tpu.memory_space<vmem>>, vector<2x10x128xf32>,
      %c10_356 = arith.constant 10 : index
      %c0_357 = arith.constant 0 : index
      %c0_358 = arith.constant 0 : index
      %1056 = vector.load %arg11[%c10_356, %c0_357, %c0_358] : memref<12x10x128xf32, #tpu.memory_space<vmem>>, vector<2x10x128xf32>
      tpu.vector_store %arg11[%c10_356, %c0_357, %c0_358], %227 {strides = array<i32>} : memref<12x10x128xf32, #tpu.memory_space<vmem>>, vector<2x10x128xf32>,
    } else {
    }
    %c0_199 = arith.constant 0 : index
    %c0_200 = arith.constant 0 : index
    %234 = vector.load %arg8[%c0_199, %c0_200] : memref<25x128xf32, #tpu.memory_space<vmem>>, vector<25x128xf32>
    %cst_201 = arith.constant 0.000000e+00 : f32
    %235 = vector.broadcast %cst_201 : f32 to vector<8x128xf32>
    %cst_202 = arith.constant 0.000000e+00 : f32
    %236 = vector.broadcast %cst_202 : f32 to vector<8x128xf32>
    %cst_203 = arith.constant 0.000000e+00 : f32
    %237 = vector.broadcast %cst_203 : f32 to vector<8x128xf32>
    %cst_204 = arith.constant 0.000000e+00 : f32
    %238 = vector.broadcast %cst_204 : f32 to vector<8x128xf32>
    %c0_205 = arith.constant 0 : index
    %c0_206 = arith.constant 0 : index
    %c0_207 = arith.constant 0 : index
    %239 = vector.load %arg10[%c0_205, %c0_206, %c0_207] : memref<12x10x128xf32, #tpu.memory_space<vmem>>, vector<1x10x128xf32>
    %240 = vector.shape_cast %239 : vector<1x10x128xf32> to vector<10x128xf32>
    %c0_208 = arith.constant 0 : index
    %c0_209 = arith.constant 0 : index
    %c0_210 = arith.constant 0 : index
    %241 = vector.load %arg11[%c0_208, %c0_209, %c0_210] : memref<12x10x128xf32, #tpu.memory_space<vmem>>, vector<1x10x128xf32>
    %242 = vector.shape_cast %241 : vector<1x10x128xf32> to vector<10x128xf32>
    %243 = vector.extract_strided_slice %240 {offsets = [0, 0], sizes = [8, 128], strides = [1, 1]} : vector<10x128xf32> to vector<8x128xf32>
    %244 = vector.extract_strided_slice %234 {offsets = [0, 0], sizes = [1, 128], strides = [1, 1]} : vector<25x128xf32> to vector<1x128xf32>
    %245 = vector.shape_cast %244 : vector<1x128xf32> to vector<128xf32>
    %246 = vector.shape_cast %245 : vector<128xf32> to vector<1x128xf32>
    %247 = vector.broadcast %246 : vector<1x128xf32> to vector<8x128xf32>
    %248 = arith.mulf %243, %247 : vector<8x128xf32>
    %249 = arith.addf %235, %248 : vector<8x128xf32>
    %250 = vector.extract_strided_slice %242 {offsets = [0, 0], sizes = [8, 128], strides = [1, 1]} : vector<10x128xf32> to vector<8x128xf32>
    %251 = vector.extract_strided_slice %234 {offsets = [1, 0], sizes = [1, 128], strides = [1, 1]} : vector<25x128xf32> to vector<1x128xf32>
    %252 = vector.shape_cast %251 : vector<1x128xf32> to vector<128xf32>
    %253 = vector.shape_cast %252 : vector<128xf32> to vector<1x128xf32>
    %254 = vector.broadcast %253 : vector<1x128xf32> to vector<8x128xf32>
    %255 = arith.mulf %250, %254 : vector<8x128xf32>
    %256 = arith.addf %236, %255 : vector<8x128xf32>
    %257 = vector.extract_strided_slice %240 {offsets = [1, 0], sizes = [8, 128], strides = [1, 1]} : vector<10x128xf32> to vector<8x128xf32>
    %258 = vector.extract_strided_slice %234 {offsets = [2, 0], sizes = [1, 128], strides = [1, 1]} : vector<25x128xf32> to vector<1x128xf32>
    %259 = vector.shape_cast %258 : vector<1x128xf32> to vector<128xf32>
    %260 = vector.shape_cast %259 : vector<128xf32> to vector<1x128xf32>
    %261 = vector.broadcast %260 : vector<1x128xf32> to vector<8x128xf32>
    %262 = arith.mulf %257, %261 : vector<8x128xf32>
    %263 = arith.addf %237, %262 : vector<8x128xf32>
    %264 = vector.extract_strided_slice %242 {offsets = [1, 0], sizes = [8, 128], strides = [1, 1]} : vector<10x128xf32> to vector<8x128xf32>
    %265 = vector.extract_strided_slice %234 {offsets = [3, 0], sizes = [1, 128], strides = [1, 1]} : vector<25x128xf32> to vector<1x128xf32>
    %266 = vector.shape_cast %265 : vector<1x128xf32> to vector<128xf32>
    %267 = vector.shape_cast %266 : vector<128xf32> to vector<1x128xf32>
    %268 = vector.broadcast %267 : vector<1x128xf32> to vector<8x128xf32>
    %269 = arith.mulf %264, %268 : vector<8x128xf32>
    %270 = arith.addf %238, %269 : vector<8x128xf32>
    %271 = vector.extract_strided_slice %240 {offsets = [2, 0], sizes = [8, 128], strides = [1, 1]} : vector<10x128xf32> to vector<8x128xf32>
    %272 = vector.extract_strided_slice %234 {offsets = [4, 0], sizes = [1, 128], strides = [1, 1]} : vector<25x128xf32> to vector<1x128xf32>
    %273 = vector.shape_cast %272 : vector<1x128xf32> to vector<128xf32>
    %274 = vector.shape_cast %273 : vector<128xf32> to vector<1x128xf32>
    %275 = vector.broadcast %274 : vector<1x128xf32> to vector<8x128xf32>
    %276 = arith.mulf %271, %275 : vector<8x128xf32>
    %277 = arith.addf %249, %276 : vector<8x128xf32>
    %c1_211 = arith.constant 1 : index
    %c0_212 = arith.constant 0 : index
    %c0_213 = arith.constant 0 : index
    %278 = vector.load %arg10[%c1_211, %c0_212, %c0_213] : memref<12x10x128xf32, #tpu.memory_space<vmem>>, vector<1x10x128xf32>
    %279 = vector.shape_cast %278 : vector<1x10x128xf32> to vector<10x128xf32>
    %c1_214 = arith.constant 1 : index
    %c0_215 = arith.constant 0 : index
    %c0_216 = arith.constant 0 : index
    %280 = vector.load %arg11[%c1_214, %c0_215, %c0_216] : memref<12x10x128xf32, #tpu.memory_space<vmem>>, vector<1x10x128xf32>
    %281 = vector.shape_cast %280 : vector<1x10x128xf32> to vector<10x128xf32>
    %282 = vector.extract_strided_slice %279 {offsets = [0, 0], sizes = [8, 128], strides = [1, 1]} : vector<10x128xf32> to vector<8x128xf32>
    %283 = vector.extract_strided_slice %234 {offsets = [5, 0], sizes = [1, 128], strides = [1, 1]} : vector<25x128xf32> to vector<1x128xf32>
    %284 = vector.shape_cast %283 : vector<1x128xf32> to vector<128xf32>
    %285 = vector.shape_cast %284 : vector<128xf32> to vector<1x128xf32>
    %286 = vector.broadcast %285 : vector<1x128xf32> to vector<8x128xf32>
    %287 = arith.mulf %282, %286 : vector<8x128xf32>
    %288 = arith.addf %256, %287 : vector<8x128xf32>
    %289 = vector.extract_strided_slice %281 {offsets = [0, 0], sizes = [8, 128], strides = [1, 1]} : vector<10x128xf32> to vector<8x128xf32>
    %290 = vector.extract_strided_slice %234 {offsets = [6, 0], sizes = [1, 128], strides = [1, 1]} : vector<25x128xf32> to vector<1x128xf32>
    %291 = vector.shape_cast %290 : vector<1x128xf32> to vector<128xf32>
    %292 = vector.shape_cast %291 : vector<128xf32> to vector<1x128xf32>
    %293 = vector.broadcast %292 : vector<1x128xf32> to vector<8x128xf32>
    %294 = arith.mulf %289, %293 : vector<8x128xf32>
    %295 = arith.addf %263, %294 : vector<8x128xf32>
    %296 = vector.extract_strided_slice %279 {offsets = [1, 0], sizes = [8, 128], strides = [1, 1]} : vector<10x128xf32> to vector<8x128xf32>
    %297 = vector.extract_strided_slice %234 {offsets = [7, 0], sizes = [1, 128], strides = [1, 1]} : vector<25x128xf32> to vector<1x128xf32>
    %298 = vector.shape_cast %297 : vector<1x128xf32> to vector<128xf32>
    %299 = vector.shape_cast %298 : vector<128xf32> to vector<1x128xf32>
    %300 = vector.broadcast %299 : vector<1x128xf32> to vector<8x128xf32>
    %301 = arith.mulf %296, %300 : vector<8x128xf32>
    %302 = arith.addf %270, %301 : vector<8x128xf32>
    %303 = vector.extract_strided_slice %281 {offsets = [1, 0], sizes = [8, 128], strides = [1, 1]} : vector<10x128xf32> to vector<8x128xf32>
    %304 = vector.extract_strided_slice %234 {offsets = [8, 0], sizes = [1, 128], strides = [1, 1]} : vector<25x128xf32> to vector<1x128xf32>
    %305 = vector.shape_cast %304 : vector<1x128xf32> to vector<128xf32>
    %306 = vector.shape_cast %305 : vector<128xf32> to vector<1x128xf32>
    %307 = vector.broadcast %306 : vector<1x128xf32> to vector<8x128xf32>
    %308 = arith.mulf %303, %307 : vector<8x128xf32>
    %309 = arith.addf %277, %308 : vector<8x128xf32>
    %310 = vector.extract_strided_slice %279 {offsets = [2, 0], sizes = [8, 128], strides = [1, 1]} : vector<10x128xf32> to vector<8x128xf32>
    %311 = vector.extract_strided_slice %234 {offsets = [9, 0], sizes = [1, 128], strides = [1, 1]} : vector<25x128xf32> to vector<1x128xf32>
    %312 = vector.shape_cast %311 : vector<1x128xf32> to vector<128xf32>
    %313 = vector.shape_cast %312 : vector<128xf32> to vector<1x128xf32>
    %314 = vector.broadcast %313 : vector<1x128xf32> to vector<8x128xf32>
    %315 = arith.mulf %310, %314 : vector<8x128xf32>
    %316 = arith.addf %288, %315 : vector<8x128xf32>
    %c2_217 = arith.constant 2 : index
    %c0_218 = arith.constant 0 : index
    %c0_219 = arith.constant 0 : index
    %317 = vector.load %arg10[%c2_217, %c0_218, %c0_219] : memref<12x10x128xf32, #tpu.memory_space<vmem>>, vector<1x10x128xf32>
    %318 = vector.shape_cast %317 : vector<1x10x128xf32> to vector<10x128xf32>
    %c2_220 = arith.constant 2 : index
    %c0_221 = arith.constant 0 : index
    %c0_222 = arith.constant 0 : index
    %319 = vector.load %arg11[%c2_220, %c0_221, %c0_222] : memref<12x10x128xf32, #tpu.memory_space<vmem>>, vector<1x10x128xf32>
    %320 = vector.shape_cast %319 : vector<1x10x128xf32> to vector<10x128xf32>
    %321 = vector.extract_strided_slice %318 {offsets = [0, 0], sizes = [8, 128], strides = [1, 1]} : vector<10x128xf32> to vector<8x128xf32>
    %322 = vector.extract_strided_slice %234 {offsets = [10, 0], sizes = [1, 128], strides = [1, 1]} : vector<25x128xf32> to vector<1x128xf32>
    %323 = vector.shape_cast %322 : vector<1x128xf32> to vector<128xf32>
    %324 = vector.shape_cast %323 : vector<128xf32> to vector<1x128xf32>
    %325 = vector.broadcast %324 : vector<1x128xf32> to vector<8x128xf32>
    %326 = arith.mulf %321, %325 : vector<8x128xf32>
    %327 = arith.addf %295, %326 : vector<8x128xf32>
    %328 = vector.extract_strided_slice %320 {offsets = [0, 0], sizes = [8, 128], strides = [1, 1]} : vector<10x128xf32> to vector<8x128xf32>
    %329 = vector.extract_strided_slice %234 {offsets = [11, 0], sizes = [1, 128], strides = [1, 1]} : vector<25x128xf32> to vector<1x128xf32>
    %330 = vector.shape_cast %329 : vector<1x128xf32> to vector<128xf32>
    %331 = vector.shape_cast %330 : vector<128xf32> to vector<1x128xf32>
    %332 = vector.broadcast %331 : vector<1x128xf32> to vector<8x128xf32>
    %333 = arith.mulf %328, %332 : vector<8x128xf32>
    %334 = arith.addf %302, %333 : vector<8x128xf32>
    %335 = vector.extract_strided_slice %318 {offsets = [1, 0], sizes = [8, 128], strides = [1, 1]} : vector<10x128xf32> to vector<8x128xf32>
    %336 = vector.extract_strided_slice %234 {offsets = [12, 0], sizes = [1, 128], strides = [1, 1]} : vector<25x128xf32> to vector<1x128xf32>
    %337 = vector.shape_cast %336 : vector<1x128xf32> to vector<128xf32>
    %338 = vector.shape_cast %337 : vector<128xf32> to vector<1x128xf32>
    %339 = vector.broadcast %338 : vector<1x128xf32> to vector<8x128xf32>
    %340 = arith.mulf %335, %339 : vector<8x128xf32>
    %341 = arith.addf %309, %340 : vector<8x128xf32>
    %342 = vector.extract_strided_slice %320 {offsets = [1, 0], sizes = [8, 128], strides = [1, 1]} : vector<10x128xf32> to vector<8x128xf32>
    %343 = vector.extract_strided_slice %234 {offsets = [13, 0], sizes = [1, 128], strides = [1, 1]} : vector<25x128xf32> to vector<1x128xf32>
    %344 = vector.shape_cast %343 : vector<1x128xf32> to vector<128xf32>
    %345 = vector.shape_cast %344 : vector<128xf32> to vector<1x128xf32>
    %346 = vector.broadcast %345 : vector<1x128xf32> to vector<8x128xf32>
    %347 = arith.mulf %342, %346 : vector<8x128xf32>
    %348 = arith.addf %316, %347 : vector<8x128xf32>
    %349 = vector.extract_strided_slice %318 {offsets = [2, 0], sizes = [8, 128], strides = [1, 1]} : vector<10x128xf32> to vector<8x128xf32>
    %350 = vector.extract_strided_slice %234 {offsets = [14, 0], sizes = [1, 128], strides = [1, 1]} : vector<25x128xf32> to vector<1x128xf32>
    %351 = vector.shape_cast %350 : vector<1x128xf32> to vector<128xf32>
    %352 = vector.shape_cast %351 : vector<128xf32> to vector<1x128xf32>
    %353 = vector.broadcast %352 : vector<1x128xf32> to vector<8x128xf32>
    %354 = arith.mulf %349, %353 : vector<8x128xf32>
    %355 = arith.addf %327, %354 : vector<8x128xf32>
    %c3_223 = arith.constant 3 : index
    %c0_224 = arith.constant 0 : index
    %c0_225 = arith.constant 0 : index
    %356 = vector.load %arg10[%c3_223, %c0_224, %c0_225] : memref<12x10x128xf32, #tpu.memory_space<vmem>>, vector<1x10x128xf32>
    %357 = vector.shape_cast %356 : vector<1x10x128xf32> to vector<10x128xf32>
    %c3_226 = arith.constant 3 : index
    %c0_227 = arith.constant 0 : index
    %c0_228 = arith.constant 0 : index
    %358 = vector.load %arg11[%c3_226, %c0_227, %c0_228] : memref<12x10x128xf32, #tpu.memory_space<vmem>>, vector<1x10x128xf32>
    %359 = vector.shape_cast %358 : vector<1x10x128xf32> to vector<10x128xf32>
    %360 = vector.extract_strided_slice %357 {offsets = [0, 0], sizes = [8, 128], strides = [1, 1]} : vector<10x128xf32> to vector<8x128xf32>
    %361 = vector.extract_strided_slice %234 {offsets = [15, 0], sizes = [1, 128], strides = [1, 1]} : vector<25x128xf32> to vector<1x128xf32>
    %362 = vector.shape_cast %361 : vector<1x128xf32> to vector<128xf32>
    %363 = vector.shape_cast %362 : vector<128xf32> to vector<1x128xf32>
    %364 = vector.broadcast %363 : vector<1x128xf32> to vector<8x128xf32>
    %365 = arith.mulf %360, %364 : vector<8x128xf32>
    %366 = arith.addf %334, %365 : vector<8x128xf32>
    %367 = vector.extract_strided_slice %359 {offsets = [0, 0], sizes = [8, 128], strides = [1, 1]} : vector<10x128xf32> to vector<8x128xf32>
    %368 = vector.extract_strided_slice %234 {offsets = [16, 0], sizes = [1, 128], strides = [1, 1]} : vector<25x128xf32> to vector<1x128xf32>
    %369 = vector.shape_cast %368 : vector<1x128xf32> to vector<128xf32>
    %370 = vector.shape_cast %369 : vector<128xf32> to vector<1x128xf32>
    %371 = vector.broadcast %370 : vector<1x128xf32> to vector<8x128xf32>
    %372 = arith.mulf %367, %371 : vector<8x128xf32>
    %373 = arith.addf %341, %372 : vector<8x128xf32>
    %374 = vector.extract_strided_slice %357 {offsets = [1, 0], sizes = [8, 128], strides = [1, 1]} : vector<10x128xf32> to vector<8x128xf32>
    %375 = vector.extract_strided_slice %234 {offsets = [17, 0], sizes = [1, 128], strides = [1, 1]} : vector<25x128xf32> to vector<1x128xf32>
    %376 = vector.shape_cast %375 : vector<1x128xf32> to vector<128xf32>
    %377 = vector.shape_cast %376 : vector<128xf32> to vector<1x128xf32>
    %378 = vector.broadcast %377 : vector<1x128xf32> to vector<8x128xf32>
    %379 = arith.mulf %374, %378 : vector<8x128xf32>
    %380 = arith.addf %348, %379 : vector<8x128xf32>
    %381 = vector.extract_strided_slice %359 {offsets = [1, 0], sizes = [8, 128], strides = [1, 1]} : vector<10x128xf32> to vector<8x128xf32>
    %382 = vector.extract_strided_slice %234 {offsets = [18, 0], sizes = [1, 128], strides = [1, 1]} : vector<25x128xf32> to vector<1x128xf32>
    %383 = vector.shape_cast %382 : vector<1x128xf32> to vector<128xf32>
    %384 = vector.shape_cast %383 : vector<128xf32> to vector<1x128xf32>
    %385 = vector.broadcast %384 : vector<1x128xf32> to vector<8x128xf32>
    %386 = arith.mulf %381, %385 : vector<8x128xf32>
    %387 = arith.addf %355, %386 : vector<8x128xf32>
    %388 = vector.extract_strided_slice %357 {offsets = [2, 0], sizes = [8, 128], strides = [1, 1]} : vector<10x128xf32> to vector<8x128xf32>
    %389 = vector.extract_strided_slice %234 {offsets = [19, 0], sizes = [1, 128], strides = [1, 1]} : vector<25x128xf32> to vector<1x128xf32>
    %390 = vector.shape_cast %389 : vector<1x128xf32> to vector<128xf32>
    %391 = vector.shape_cast %390 : vector<128xf32> to vector<1x128xf32>
    %392 = vector.broadcast %391 : vector<1x128xf32> to vector<8x128xf32>
    %393 = arith.mulf %388, %392 : vector<8x128xf32>
    %394 = arith.addf %366, %393 : vector<8x128xf32>
    %c4_229 = arith.constant 4 : index
    %c0_230 = arith.constant 0 : index
    %c0_231 = arith.constant 0 : index
    %395 = vector.load %arg10[%c4_229, %c0_230, %c0_231] : memref<12x10x128xf32, #tpu.memory_space<vmem>>, vector<1x10x128xf32>
    %396 = vector.shape_cast %395 : vector<1x10x128xf32> to vector<10x128xf32>
    %c4_232 = arith.constant 4 : index
    %c0_233 = arith.constant 0 : index
    %c0_234 = arith.constant 0 : index
    %397 = vector.load %arg11[%c4_232, %c0_233, %c0_234] : memref<12x10x128xf32, #tpu.memory_space<vmem>>, vector<1x10x128xf32>
    %398 = vector.shape_cast %397 : vector<1x10x128xf32> to vector<10x128xf32>
    %399 = vector.extract_strided_slice %396 {offsets = [0, 0], sizes = [8, 128], strides = [1, 1]} : vector<10x128xf32> to vector<8x128xf32>
    %400 = vector.extract_strided_slice %234 {offsets = [20, 0], sizes = [1, 128], strides = [1, 1]} : vector<25x128xf32> to vector<1x128xf32>
    %401 = vector.shape_cast %400 : vector<1x128xf32> to vector<128xf32>
    %402 = vector.shape_cast %401 : vector<128xf32> to vector<1x128xf32>
    %403 = vector.broadcast %402 : vector<1x128xf32> to vector<8x128xf32>
    %404 = arith.mulf %399, %403 : vector<8x128xf32>
    %405 = arith.addf %373, %404 : vector<8x128xf32>
    %406 = vector.extract_strided_slice %398 {offsets = [0, 0], sizes = [8, 128], strides = [1, 1]} : vector<10x128xf32> to vector<8x128xf32>
    %407 = vector.extract_strided_slice %234 {offsets = [21, 0], sizes = [1, 128], strides = [1, 1]} : vector<25x128xf32> to vector<1x128xf32>
    %408 = vector.shape_cast %407 : vector<1x128xf32> to vector<128xf32>
    %409 = vector.shape_cast %408 : vector<128xf32> to vector<1x128xf32>
    %410 = vector.broadcast %409 : vector<1x128xf32> to vector<8x128xf32>
    %411 = arith.mulf %406, %410 : vector<8x128xf32>
    %412 = arith.addf %380, %411 : vector<8x128xf32>
    %413 = vector.extract_strided_slice %396 {offsets = [1, 0], sizes = [8, 128], strides = [1, 1]} : vector<10x128xf32> to vector<8x128xf32>
    %414 = vector.extract_strided_slice %234 {offsets = [22, 0], sizes = [1, 128], strides = [1, 1]} : vector<25x128xf32> to vector<1x128xf32>
    %415 = vector.shape_cast %414 : vector<1x128xf32> to vector<128xf32>
    %416 = vector.shape_cast %415 : vector<128xf32> to vector<1x128xf32>
    %417 = vector.broadcast %416 : vector<1x128xf32> to vector<8x128xf32>
    %418 = arith.mulf %413, %417 : vector<8x128xf32>
    %419 = arith.addf %387, %418 : vector<8x128xf32>
    %420 = vector.extract_strided_slice %398 {offsets = [1, 0], sizes = [8, 128], strides = [1, 1]} : vector<10x128xf32> to vector<8x128xf32>
    %421 = vector.extract_strided_slice %234 {offsets = [23, 0], sizes = [1, 128], strides = [1, 1]} : vector<25x128xf32> to vector<1x128xf32>
    %422 = vector.shape_cast %421 : vector<1x128xf32> to vector<128xf32>
    %423 = vector.shape_cast %422 : vector<128xf32> to vector<1x128xf32>
    %424 = vector.broadcast %423 : vector<1x128xf32> to vector<8x128xf32>
    %425 = arith.mulf %420, %424 : vector<8x128xf32>
    %426 = arith.addf %394, %425 : vector<8x128xf32>
    %427 = vector.extract_strided_slice %396 {offsets = [2, 0], sizes = [8, 128], strides = [1, 1]} : vector<10x128xf32> to vector<8x128xf32>
    %428 = vector.extract_strided_slice %234 {offsets = [24, 0], sizes = [1, 128], strides = [1, 1]} : vector<25x128xf32> to vector<1x128xf32>
    %429 = vector.shape_cast %428 : vector<1x128xf32> to vector<128xf32>
    %430 = vector.shape_cast %429 : vector<128xf32> to vector<1x128xf32>
    %431 = vector.broadcast %430 : vector<1x128xf32> to vector<8x128xf32>
    %432 = arith.mulf %427, %431 : vector<8x128xf32>
    %433 = arith.addf %405, %432 : vector<8x128xf32>
    %434 = arith.addf %433, %412 : vector<8x128xf32>
    %435 = arith.addf %419, %426 : vector<8x128xf32>
    %436 = arith.addf %434, %435 : vector<8x128xf32>
    %c0_235 = arith.constant 0 : index
    %c0_236 = arith.constant 0 : index
    %c0_237 = arith.constant 0 : index
    %c0_238 = arith.constant 0 : index
    %437 = vector.load %arg9[%c0_235, %c0_236, %c0_237, %c0_238] : memref<1x4x8x128xf32, #tpu.memory_space<vmem>>, vector<1x1x8x128xf32>
    %438 = vector.shape_cast %437 : vector<1x1x8x128xf32> to vector<8x128xf32>
    %439 = vector.shape_cast %436 : vector<8x128xf32> to vector<1x1x8x128xf32>
    tpu.vector_store %arg9[%c0_235, %c0_236, %c0_237, %c0_238], %439 {strides = array<i32>} : memref<1x4x8x128xf32, #tpu.memory_space<vmem>>, vector<1x1x8x128xf32>,
    %cst_239 = arith.constant 0.000000e+00 : f32
    %440 = vector.broadcast %cst_239 : f32 to vector<8x128xf32>
    %cst_240 = arith.constant 0.000000e+00 : f32
    %441 = vector.broadcast %cst_240 : f32 to vector<8x128xf32>
    %cst_241 = arith.constant 0.000000e+00 : f32
    %442 = vector.broadcast %cst_241 : f32 to vector<8x128xf32>
    %cst_242 = arith.constant 0.000000e+00 : f32
    %443 = vector.broadcast %cst_242 : f32 to vector<8x128xf32>
    %c2_243 = arith.constant 2 : index
    %c0_244 = arith.constant 0 : index
    %c0_245 = arith.constant 0 : index
    %444 = vector.load %arg10[%c2_243, %c0_244, %c0_245] : memref<12x10x128xf32, #tpu.memory_space<vmem>>, vector<1x10x128xf32>
    %445 = vector.shape_cast %444 : vector<1x10x128xf32> to vector<10x128xf32>
    %c2_246 = arith.constant 2 : index
    %c0_247 = arith.constant 0 : index
    %c0_248 = arith.constant 0 : index
    %446 = vector.load %arg11[%c2_246, %c0_247, %c0_248] : memref<12x10x128xf32, #tpu.memory_space<vmem>>, vector<1x10x128xf32>
    %447 = vector.shape_cast %446 : vector<1x10x128xf32> to vector<10x128xf32>
    %448 = vector.extract_strided_slice %445 {offsets = [0, 0], sizes = [8, 128], strides = [1, 1]} : vector<10x128xf32> to vector<8x128xf32>
    %449 = vector.extract_strided_slice %234 {offsets = [0, 0], sizes = [1, 128], strides = [1, 1]} : vector<25x128xf32> to vector<1x128xf32>
    %450 = vector.shape_cast %449 : vector<1x128xf32> to vector<128xf32>
    %451 = vector.shape_cast %450 : vector<128xf32> to vector<1x128xf32>
    %452 = vector.broadcast %451 : vector<1x128xf32> to vector<8x128xf32>
    %453 = arith.mulf %448, %452 : vector<8x128xf32>
    %454 = arith.addf %440, %453 : vector<8x128xf32>
    %455 = vector.extract_strided_slice %447 {offsets = [0, 0], sizes = [8, 128], strides = [1, 1]} : vector<10x128xf32> to vector<8x128xf32>
    %456 = vector.extract_strided_slice %234 {offsets = [1, 0], sizes = [1, 128], strides = [1, 1]} : vector<25x128xf32> to vector<1x128xf32>
    %457 = vector.shape_cast %456 : vector<1x128xf32> to vector<128xf32>
    %458 = vector.shape_cast %457 : vector<128xf32> to vector<1x128xf32>
    %459 = vector.broadcast %458 : vector<1x128xf32> to vector<8x128xf32>
    %460 = arith.mulf %455, %459 : vector<8x128xf32>
    %461 = arith.addf %441, %460 : vector<8x128xf32>
    %462 = vector.extract_strided_slice %445 {offsets = [1, 0], sizes = [8, 128], strides = [1, 1]} : vector<10x128xf32> to vector<8x128xf32>
    %463 = vector.extract_strided_slice %234 {offsets = [2, 0], sizes = [1, 128], strides = [1, 1]} : vector<25x128xf32> to vector<1x128xf32>
    %464 = vector.shape_cast %463 : vector<1x128xf32> to vector<128xf32>
    %465 = vector.shape_cast %464 : vector<128xf32> to vector<1x128xf32>
    %466 = vector.broadcast %465 : vector<1x128xf32> to vector<8x128xf32>
    %467 = arith.mulf %462, %466 : vector<8x128xf32>
    %468 = arith.addf %442, %467 : vector<8x128xf32>
    %469 = vector.extract_strided_slice %447 {offsets = [1, 0], sizes = [8, 128], strides = [1, 1]} : vector<10x128xf32> to vector<8x128xf32>
    %470 = vector.extract_strided_slice %234 {offsets = [3, 0], sizes = [1, 128], strides = [1, 1]} : vector<25x128xf32> to vector<1x128xf32>
    %471 = vector.shape_cast %470 : vector<1x128xf32> to vector<128xf32>
    %472 = vector.shape_cast %471 : vector<128xf32> to vector<1x128xf32>
    %473 = vector.broadcast %472 : vector<1x128xf32> to vector<8x128xf32>
    %474 = arith.mulf %469, %473 : vector<8x128xf32>
    %475 = arith.addf %443, %474 : vector<8x128xf32>
    %476 = vector.extract_strided_slice %445 {offsets = [2, 0], sizes = [8, 128], strides = [1, 1]} : vector<10x128xf32> to vector<8x128xf32>
    %477 = vector.extract_strided_slice %234 {offsets = [4, 0], sizes = [1, 128], strides = [1, 1]} : vector<25x128xf32> to vector<1x128xf32>
    %478 = vector.shape_cast %477 : vector<1x128xf32> to vector<128xf32>
    %479 = vector.shape_cast %478 : vector<128xf32> to vector<1x128xf32>
    %480 = vector.broadcast %479 : vector<1x128xf32> to vector<8x128xf32>
    %481 = arith.mulf %476, %480 : vector<8x128xf32>
    %482 = arith.addf %454, %481 : vector<8x128xf32>
    %c3_249 = arith.constant 3 : index
    %c0_250 = arith.constant 0 : index
    %c0_251 = arith.constant 0 : index
    %483 = vector.load %arg10[%c3_249, %c0_250, %c0_251] : memref<12x10x128xf32, #tpu.memory_space<vmem>>, vector<1x10x128xf32>
    %484 = vector.shape_cast %483 : vector<1x10x128xf32> to vector<10x128xf32>
    %c3_252 = arith.constant 3 : index
    %c0_253 = arith.constant 0 : index
    %c0_254 = arith.constant 0 : index
    %485 = vector.load %arg11[%c3_252, %c0_253, %c0_254] : memref<12x10x128xf32, #tpu.memory_space<vmem>>, vector<1x10x128xf32>
    %486 = vector.shape_cast %485 : vector<1x10x128xf32> to vector<10x128xf32>
    %487 = vector.extract_strided_slice %484 {offsets = [0, 0], sizes = [8, 128], strides = [1, 1]} : vector<10x128xf32> to vector<8x128xf32>
    %488 = vector.extract_strided_slice %234 {offsets = [5, 0], sizes = [1, 128], strides = [1, 1]} : vector<25x128xf32> to vector<1x128xf32>
    %489 = vector.shape_cast %488 : vector<1x128xf32> to vector<128xf32>
    %490 = vector.shape_cast %489 : vector<128xf32> to vector<1x128xf32>
    %491 = vector.broadcast %490 : vector<1x128xf32> to vector<8x128xf32>
    %492 = arith.mulf %487, %491 : vector<8x128xf32>
    %493 = arith.addf %461, %492 : vector<8x128xf32>
    %494 = vector.extract_strided_slice %486 {offsets = [0, 0], sizes = [8, 128], strides = [1, 1]} : vector<10x128xf32> to vector<8x128xf32>
    %495 = vector.extract_strided_slice %234 {offsets = [6, 0], sizes = [1, 128], strides = [1, 1]} : vector<25x128xf32> to vector<1x128xf32>
    %496 = vector.shape_cast %495 : vector<1x128xf32> to vector<128xf32>
    %497 = vector.shape_cast %496 : vector<128xf32> to vector<1x128xf32>
    %498 = vector.broadcast %497 : vector<1x128xf32> to vector<8x128xf32>
    %499 = arith.mulf %494, %498 : vector<8x128xf32>
    %500 = arith.addf %468, %499 : vector<8x128xf32>
    %501 = vector.extract_strided_slice %484 {offsets = [1, 0], sizes = [8, 128], strides = [1, 1]} : vector<10x128xf32> to vector<8x128xf32>
    %502 = vector.extract_strided_slice %234 {offsets = [7, 0], sizes = [1, 128], strides = [1, 1]} : vector<25x128xf32> to vector<1x128xf32>
    %503 = vector.shape_cast %502 : vector<1x128xf32> to vector<128xf32>
    %504 = vector.shape_cast %503 : vector<128xf32> to vector<1x128xf32>
    %505 = vector.broadcast %504 : vector<1x128xf32> to vector<8x128xf32>
    %506 = arith.mulf %501, %505 : vector<8x128xf32>
    %507 = arith.addf %475, %506 : vector<8x128xf32>
    %508 = vector.extract_strided_slice %486 {offsets = [1, 0], sizes = [8, 128], strides = [1, 1]} : vector<10x128xf32> to vector<8x128xf32>
    %509 = vector.extract_strided_slice %234 {offsets = [8, 0], sizes = [1, 128], strides = [1, 1]} : vector<25x128xf32> to vector<1x128xf32>
    %510 = vector.shape_cast %509 : vector<1x128xf32> to vector<128xf32>
    %511 = vector.shape_cast %510 : vector<128xf32> to vector<1x128xf32>
    %512 = vector.broadcast %511 : vector<1x128xf32> to vector<8x128xf32>
    %513 = arith.mulf %508, %512 : vector<8x128xf32>
    %514 = arith.addf %482, %513 : vector<8x128xf32>
    %515 = vector.extract_strided_slice %484 {offsets = [2, 0], sizes = [8, 128], strides = [1, 1]} : vector<10x128xf32> to vector<8x128xf32>
    %516 = vector.extract_strided_slice %234 {offsets = [9, 0], sizes = [1, 128], strides = [1, 1]} : vector<25x128xf32> to vector<1x128xf32>
    %517 = vector.shape_cast %516 : vector<1x128xf32> to vector<128xf32>
    %518 = vector.shape_cast %517 : vector<128xf32> to vector<1x128xf32>
    %519 = vector.broadcast %518 : vector<1x128xf32> to vector<8x128xf32>
    %520 = arith.mulf %515, %519 : vector<8x128xf32>
    %521 = arith.addf %493, %520 : vector<8x128xf32>
    %c4_255 = arith.constant 4 : index
    %c0_256 = arith.constant 0 : index
    %c0_257 = arith.constant 0 : index
    %522 = vector.load %arg10[%c4_255, %c0_256, %c0_257] : memref<12x10x128xf32, #tpu.memory_space<vmem>>, vector<1x10x128xf32>
    %523 = vector.shape_cast %522 : vector<1x10x128xf32> to vector<10x128xf32>
    %c4_258 = arith.constant 4 : index
    %c0_259 = arith.constant 0 : index
    %c0_260 = arith.constant 0 : index
    %524 = vector.load %arg11[%c4_258, %c0_259, %c0_260] : memref<12x10x128xf32, #tpu.memory_space<vmem>>, vector<1x10x128xf32>
    %525 = vector.shape_cast %524 : vector<1x10x128xf32> to vector<10x128xf32>
    %526 = vector.extract_strided_slice %523 {offsets = [0, 0], sizes = [8, 128], strides = [1, 1]} : vector<10x128xf32> to vector<8x128xf32>
    %527 = vector.extract_strided_slice %234 {offsets = [10, 0], sizes = [1, 128], strides = [1, 1]} : vector<25x128xf32> to vector<1x128xf32>
    %528 = vector.shape_cast %527 : vector<1x128xf32> to vector<128xf32>
    %529 = vector.shape_cast %528 : vector<128xf32> to vector<1x128xf32>
    %530 = vector.broadcast %529 : vector<1x128xf32> to vector<8x128xf32>
    %531 = arith.mulf %526, %530 : vector<8x128xf32>
    %532 = arith.addf %500, %531 : vector<8x128xf32>
    %533 = vector.extract_strided_slice %525 {offsets = [0, 0], sizes = [8, 128], strides = [1, 1]} : vector<10x128xf32> to vector<8x128xf32>
    %534 = vector.extract_strided_slice %234 {offsets = [11, 0], sizes = [1, 128], strides = [1, 1]} : vector<25x128xf32> to vector<1x128xf32>
    %535 = vector.shape_cast %534 : vector<1x128xf32> to vector<128xf32>
    %536 = vector.shape_cast %535 : vector<128xf32> to vector<1x128xf32>
    %537 = vector.broadcast %536 : vector<1x128xf32> to vector<8x128xf32>
    %538 = arith.mulf %533, %537 : vector<8x128xf32>
    %539 = arith.addf %507, %538 : vector<8x128xf32>
    %540 = vector.extract_strided_slice %523 {offsets = [1, 0], sizes = [8, 128], strides = [1, 1]} : vector<10x128xf32> to vector<8x128xf32>
    %541 = vector.extract_strided_slice %234 {offsets = [12, 0], sizes = [1, 128], strides = [1, 1]} : vector<25x128xf32> to vector<1x128xf32>
    %542 = vector.shape_cast %541 : vector<1x128xf32> to vector<128xf32>
    %543 = vector.shape_cast %542 : vector<128xf32> to vector<1x128xf32>
    %544 = vector.broadcast %543 : vector<1x128xf32> to vector<8x128xf32>
    %545 = arith.mulf %540, %544 : vector<8x128xf32>
    %546 = arith.addf %514, %545 : vector<8x128xf32>
    %547 = vector.extract_strided_slice %525 {offsets = [1, 0], sizes = [8, 128], strides = [1, 1]} : vector<10x128xf32> to vector<8x128xf32>
    %548 = vector.extract_strided_slice %234 {offsets = [13, 0], sizes = [1, 128], strides = [1, 1]} : vector<25x128xf32> to vector<1x128xf32>
    %549 = vector.shape_cast %548 : vector<1x128xf32> to vector<128xf32>
    %550 = vector.shape_cast %549 : vector<128xf32> to vector<1x128xf32>
    %551 = vector.broadcast %550 : vector<1x128xf32> to vector<8x128xf32>
    %552 = arith.mulf %547, %551 : vector<8x128xf32>
    %553 = arith.addf %521, %552 : vector<8x128xf32>
    %554 = vector.extract_strided_slice %523 {offsets = [2, 0], sizes = [8, 128], strides = [1, 1]} : vector<10x128xf32> to vector<8x128xf32>
    %555 = vector.extract_strided_slice %234 {offsets = [14, 0], sizes = [1, 128], strides = [1, 1]} : vector<25x128xf32> to vector<1x128xf32>
    %556 = vector.shape_cast %555 : vector<1x128xf32> to vector<128xf32>
    %557 = vector.shape_cast %556 : vector<128xf32> to vector<1x128xf32>
    %558 = vector.broadcast %557 : vector<1x128xf32> to vector<8x128xf32>
    %559 = arith.mulf %554, %558 : vector<8x128xf32>
    %560 = arith.addf %532, %559 : vector<8x128xf32>
    %c5_261 = arith.constant 5 : index
    %c0_262 = arith.constant 0 : index
    %c0_263 = arith.constant 0 : index
    %561 = vector.load %arg10[%c5_261, %c0_262, %c0_263] : memref<12x10x128xf32, #tpu.memory_space<vmem>>, vector<1x10x128xf32>
    %562 = vector.shape_cast %561 : vector<1x10x128xf32> to vector<10x128xf32>
    %c5_264 = arith.constant 5 : index
    %c0_265 = arith.constant 0 : index
    %c0_266 = arith.constant 0 : index
    %563 = vector.load %arg11[%c5_264, %c0_265, %c0_266] : memref<12x10x128xf32, #tpu.memory_space<vmem>>, vector<1x10x128xf32>
    %564 = vector.shape_cast %563 : vector<1x10x128xf32> to vector<10x128xf32>
    %565 = vector.extract_strided_slice %562 {offsets = [0, 0], sizes = [8, 128], strides = [1, 1]} : vector<10x128xf32> to vector<8x128xf32>
    %566 = vector.extract_strided_slice %234 {offsets = [15, 0], sizes = [1, 128], strides = [1, 1]} : vector<25x128xf32> to vector<1x128xf32>
    %567 = vector.shape_cast %566 : vector<1x128xf32> to vector<128xf32>
    %568 = vector.shape_cast %567 : vector<128xf32> to vector<1x128xf32>
    %569 = vector.broadcast %568 : vector<1x128xf32> to vector<8x128xf32>
    %570 = arith.mulf %565, %569 : vector<8x128xf32>
    %571 = arith.addf %539, %570 : vector<8x128xf32>
    %572 = vector.extract_strided_slice %564 {offsets = [0, 0], sizes = [8, 128], strides = [1, 1]} : vector<10x128xf32> to vector<8x128xf32>
    %573 = vector.extract_strided_slice %234 {offsets = [16, 0], sizes = [1, 128], strides = [1, 1]} : vector<25x128xf32> to vector<1x128xf32>
    %574 = vector.shape_cast %573 : vector<1x128xf32> to vector<128xf32>
    %575 = vector.shape_cast %574 : vector<128xf32> to vector<1x128xf32>
    %576 = vector.broadcast %575 : vector<1x128xf32> to vector<8x128xf32>
    %577 = arith.mulf %572, %576 : vector<8x128xf32>
    %578 = arith.addf %546, %577 : vector<8x128xf32>
    %579 = vector.extract_strided_slice %562 {offsets = [1, 0], sizes = [8, 128], strides = [1, 1]} : vector<10x128xf32> to vector<8x128xf32>
    %580 = vector.extract_strided_slice %234 {offsets = [17, 0], sizes = [1, 128], strides = [1, 1]} : vector<25x128xf32> to vector<1x128xf32>
    %581 = vector.shape_cast %580 : vector<1x128xf32> to vector<128xf32>
    %582 = vector.shape_cast %581 : vector<128xf32> to vector<1x128xf32>
    %583 = vector.broadcast %582 : vector<1x128xf32> to vector<8x128xf32>
    %584 = arith.mulf %579, %583 : vector<8x128xf32>
    %585 = arith.addf %553, %584 : vector<8x128xf32>
    %586 = vector.extract_strided_slice %564 {offsets = [1, 0], sizes = [8, 128], strides = [1, 1]} : vector<10x128xf32> to vector<8x128xf32>
    %587 = vector.extract_strided_slice %234 {offsets = [18, 0], sizes = [1, 128], strides = [1, 1]} : vector<25x128xf32> to vector<1x128xf32>
    %588 = vector.shape_cast %587 : vector<1x128xf32> to vector<128xf32>
    %589 = vector.shape_cast %588 : vector<128xf32> to vector<1x128xf32>
    %590 = vector.broadcast %589 : vector<1x128xf32> to vector<8x128xf32>
    %591 = arith.mulf %586, %590 : vector<8x128xf32>
    %592 = arith.addf %560, %591 : vector<8x128xf32>
    %593 = vector.extract_strided_slice %562 {offsets = [2, 0], sizes = [8, 128], strides = [1, 1]} : vector<10x128xf32> to vector<8x128xf32>
    %594 = vector.extract_strided_slice %234 {offsets = [19, 0], sizes = [1, 128], strides = [1, 1]} : vector<25x128xf32> to vector<1x128xf32>
    %595 = vector.shape_cast %594 : vector<1x128xf32> to vector<128xf32>
    %596 = vector.shape_cast %595 : vector<128xf32> to vector<1x128xf32>
    %597 = vector.broadcast %596 : vector<1x128xf32> to vector<8x128xf32>
    %598 = arith.mulf %593, %597 : vector<8x128xf32>
    %599 = arith.addf %571, %598 : vector<8x128xf32>
    %c6_267 = arith.constant 6 : index
    %c0_268 = arith.constant 0 : index
    %c0_269 = arith.constant 0 : index
    %600 = vector.load %arg10[%c6_267, %c0_268, %c0_269] : memref<12x10x128xf32, #tpu.memory_space<vmem>>, vector<1x10x128xf32>
    %601 = vector.shape_cast %600 : vector<1x10x128xf32> to vector<10x128xf32>
    %c6_270 = arith.constant 6 : index
    %c0_271 = arith.constant 0 : index
    %c0_272 = arith.constant 0 : index
    %602 = vector.load %arg11[%c6_270, %c0_271, %c0_272] : memref<12x10x128xf32, #tpu.memory_space<vmem>>, vector<1x10x128xf32>
    %603 = vector.shape_cast %602 : vector<1x10x128xf32> to vector<10x128xf32>
    %604 = vector.extract_strided_slice %601 {offsets = [0, 0], sizes = [8, 128], strides = [1, 1]} : vector<10x128xf32> to vector<8x128xf32>
    %605 = vector.extract_strided_slice %234 {offsets = [20, 0], sizes = [1, 128], strides = [1, 1]} : vector<25x128xf32> to vector<1x128xf32>
    %606 = vector.shape_cast %605 : vector<1x128xf32> to vector<128xf32>
    %607 = vector.shape_cast %606 : vector<128xf32> to vector<1x128xf32>
    %608 = vector.broadcast %607 : vector<1x128xf32> to vector<8x128xf32>
    %609 = arith.mulf %604, %608 : vector<8x128xf32>
    %610 = arith.addf %578, %609 : vector<8x128xf32>
    %611 = vector.extract_strided_slice %603 {offsets = [0, 0], sizes = [8, 128], strides = [1, 1]} : vector<10x128xf32> to vector<8x128xf32>
    %612 = vector.extract_strided_slice %234 {offsets = [21, 0], sizes = [1, 128], strides = [1, 1]} : vector<25x128xf32> to vector<1x128xf32>
    %613 = vector.shape_cast %612 : vector<1x128xf32> to vector<128xf32>
    %614 = vector.shape_cast %613 : vector<128xf32> to vector<1x128xf32>
    %615 = vector.broadcast %614 : vector<1x128xf32> to vector<8x128xf32>
    %616 = arith.mulf %611, %615 : vector<8x128xf32>
    %617 = arith.addf %585, %616 : vector<8x128xf32>
    %618 = vector.extract_strided_slice %601 {offsets = [1, 0], sizes = [8, 128], strides = [1, 1]} : vector<10x128xf32> to vector<8x128xf32>
    %619 = vector.extract_strided_slice %234 {offsets = [22, 0], sizes = [1, 128], strides = [1, 1]} : vector<25x128xf32> to vector<1x128xf32>
    %620 = vector.shape_cast %619 : vector<1x128xf32> to vector<128xf32>
    %621 = vector.shape_cast %620 : vector<128xf32> to vector<1x128xf32>
    %622 = vector.broadcast %621 : vector<1x128xf32> to vector<8x128xf32>
    %623 = arith.mulf %618, %622 : vector<8x128xf32>
    %624 = arith.addf %592, %623 : vector<8x128xf32>
    %625 = vector.extract_strided_slice %603 {offsets = [1, 0], sizes = [8, 128], strides = [1, 1]} : vector<10x128xf32> to vector<8x128xf32>
    %626 = vector.extract_strided_slice %234 {offsets = [23, 0], sizes = [1, 128], strides = [1, 1]} : vector<25x128xf32> to vector<1x128xf32>
    %627 = vector.shape_cast %626 : vector<1x128xf32> to vector<128xf32>
    %628 = vector.shape_cast %627 : vector<128xf32> to vector<1x128xf32>
    %629 = vector.broadcast %628 : vector<1x128xf32> to vector<8x128xf32>
    %630 = arith.mulf %625, %629 : vector<8x128xf32>
    %631 = arith.addf %599, %630 : vector<8x128xf32>
    %632 = vector.extract_strided_slice %601 {offsets = [2, 0], sizes = [8, 128], strides = [1, 1]} : vector<10x128xf32> to vector<8x128xf32>
    %633 = vector.extract_strided_slice %234 {offsets = [24, 0], sizes = [1, 128], strides = [1, 1]} : vector<25x128xf32> to vector<1x128xf32>
    %634 = vector.shape_cast %633 : vector<1x128xf32> to vector<128xf32>
    %635 = vector.shape_cast %634 : vector<128xf32> to vector<1x128xf32>
    %636 = vector.broadcast %635 : vector<1x128xf32> to vector<8x128xf32>
    %637 = arith.mulf %632, %636 : vector<8x128xf32>
    %638 = arith.addf %610, %637 : vector<8x128xf32>
    %639 = arith.addf %638, %617 : vector<8x128xf32>
    %640 = arith.addf %624, %631 : vector<8x128xf32>
    %641 = arith.addf %639, %640 : vector<8x128xf32>
    %c0_273 = arith.constant 0 : index
    %c1_274 = arith.constant 1 : index
    %c0_275 = arith.constant 0 : index
    %c0_276 = arith.constant 0 : index
    %642 = vector.load %arg9[%c0_273, %c1_274, %c0_275, %c0_276] : memref<1x4x8x128xf32, #tpu.memory_space<vmem>>, vector<1x1x8x128xf32>
    %643 = vector.shape_cast %642 : vector<1x1x8x128xf32> to vector<8x128xf32>
    %644 = vector.shape_cast %641 : vector<8x128xf32> to vector<1x1x8x128xf32>
    tpu.vector_store %arg9[%c0_273, %c1_274, %c0_275, %c0_276], %644 {strides = array<i32>} : memref<1x4x8x128xf32, #tpu.memory_space<vmem>>, vector<1x1x8x128xf32>,
    %cst_277 = arith.constant 0.000000e+00 : f32
    %645 = vector.broadcast %cst_277 : f32 to vector<8x128xf32>
    %cst_278 = arith.constant 0.000000e+00 : f32
    %646 = vector.broadcast %cst_278 : f32 to vector<8x128xf32>
    %cst_279 = arith.constant 0.000000e+00 : f32
    %647 = vector.broadcast %cst_279 : f32 to vector<8x128xf32>
    %cst_280 = arith.constant 0.000000e+00 : f32
    %648 = vector.broadcast %cst_280 : f32 to vector<8x128xf32>
    %c4_281 = arith.constant 4 : index
    %c0_282 = arith.constant 0 : index
    %c0_283 = arith.constant 0 : index
    %649 = vector.load %arg10[%c4_281, %c0_282, %c0_283] : memref<12x10x128xf32, #tpu.memory_space<vmem>>, vector<1x10x128xf32>
    %650 = vector.shape_cast %649 : vector<1x10x128xf32> to vector<10x128xf32>
    %c4_284 = arith.constant 4 : index
    %c0_285 = arith.constant 0 : index
    %c0_286 = arith.constant 0 : index
    %651 = vector.load %arg11[%c4_284, %c0_285, %c0_286] : memref<12x10x128xf32, #tpu.memory_space<vmem>>, vector<1x10x128xf32>
    %652 = vector.shape_cast %651 : vector<1x10x128xf32> to vector<10x128xf32>
    %653 = vector.extract_strided_slice %650 {offsets = [0, 0], sizes = [8, 128], strides = [1, 1]} : vector<10x128xf32> to vector<8x128xf32>
    %654 = vector.extract_strided_slice %234 {offsets = [0, 0], sizes = [1, 128], strides = [1, 1]} : vector<25x128xf32> to vector<1x128xf32>
    %655 = vector.shape_cast %654 : vector<1x128xf32> to vector<128xf32>
    %656 = vector.shape_cast %655 : vector<128xf32> to vector<1x128xf32>
    %657 = vector.broadcast %656 : vector<1x128xf32> to vector<8x128xf32>
    %658 = arith.mulf %653, %657 : vector<8x128xf32>
    %659 = arith.addf %645, %658 : vector<8x128xf32>
    %660 = vector.extract_strided_slice %652 {offsets = [0, 0], sizes = [8, 128], strides = [1, 1]} : vector<10x128xf32> to vector<8x128xf32>
    %661 = vector.extract_strided_slice %234 {offsets = [1, 0], sizes = [1, 128], strides = [1, 1]} : vector<25x128xf32> to vector<1x128xf32>
    %662 = vector.shape_cast %661 : vector<1x128xf32> to vector<128xf32>
    %663 = vector.shape_cast %662 : vector<128xf32> to vector<1x128xf32>
    %664 = vector.broadcast %663 : vector<1x128xf32> to vector<8x128xf32>
    %665 = arith.mulf %660, %664 : vector<8x128xf32>
    %666 = arith.addf %646, %665 : vector<8x128xf32>
    %667 = vector.extract_strided_slice %650 {offsets = [1, 0], sizes = [8, 128], strides = [1, 1]} : vector<10x128xf32> to vector<8x128xf32>
    %668 = vector.extract_strided_slice %234 {offsets = [2, 0], sizes = [1, 128], strides = [1, 1]} : vector<25x128xf32> to vector<1x128xf32>
    %669 = vector.shape_cast %668 : vector<1x128xf32> to vector<128xf32>
    %670 = vector.shape_cast %669 : vector<128xf32> to vector<1x128xf32>
    %671 = vector.broadcast %670 : vector<1x128xf32> to vector<8x128xf32>
    %672 = arith.mulf %667, %671 : vector<8x128xf32>
    %673 = arith.addf %647, %672 : vector<8x128xf32>
    %674 = vector.extract_strided_slice %652 {offsets = [1, 0], sizes = [8, 128], strides = [1, 1]} : vector<10x128xf32> to vector<8x128xf32>
    %675 = vector.extract_strided_slice %234 {offsets = [3, 0], sizes = [1, 128], strides = [1, 1]} : vector<25x128xf32> to vector<1x128xf32>
    %676 = vector.shape_cast %675 : vector<1x128xf32> to vector<128xf32>
    %677 = vector.shape_cast %676 : vector<128xf32> to vector<1x128xf32>
    %678 = vector.broadcast %677 : vector<1x128xf32> to vector<8x128xf32>
    %679 = arith.mulf %674, %678 : vector<8x128xf32>
    %680 = arith.addf %648, %679 : vector<8x128xf32>
    %681 = vector.extract_strided_slice %650 {offsets = [2, 0], sizes = [8, 128], strides = [1, 1]} : vector<10x128xf32> to vector<8x128xf32>
    %682 = vector.extract_strided_slice %234 {offsets = [4, 0], sizes = [1, 128], strides = [1, 1]} : vector<25x128xf32> to vector<1x128xf32>
    %683 = vector.shape_cast %682 : vector<1x128xf32> to vector<128xf32>
    %684 = vector.shape_cast %683 : vector<128xf32> to vector<1x128xf32>
    %685 = vector.broadcast %684 : vector<1x128xf32> to vector<8x128xf32>
    %686 = arith.mulf %681, %685 : vector<8x128xf32>
    %687 = arith.addf %659, %686 : vector<8x128xf32>
    %c5_287 = arith.constant 5 : index
    %c0_288 = arith.constant 0 : index
    %c0_289 = arith.constant 0 : index
    %688 = vector.load %arg10[%c5_287, %c0_288, %c0_289] : memref<12x10x128xf32, #tpu.memory_space<vmem>>, vector<1x10x128xf32>
    %689 = vector.shape_cast %688 : vector<1x10x128xf32> to vector<10x128xf32>
    %c5_290 = arith.constant 5 : index
    %c0_291 = arith.constant 0 : index
    %c0_292 = arith.constant 0 : index
    %690 = vector.load %arg11[%c5_290, %c0_291, %c0_292] : memref<12x10x128xf32, #tpu.memory_space<vmem>>, vector<1x10x128xf32>
    %691 = vector.shape_cast %690 : vector<1x10x128xf32> to vector<10x128xf32>
    %692 = vector.extract_strided_slice %689 {offsets = [0, 0], sizes = [8, 128], strides = [1, 1]} : vector<10x128xf32> to vector<8x128xf32>
    %693 = vector.extract_strided_slice %234 {offsets = [5, 0], sizes = [1, 128], strides = [1, 1]} : vector<25x128xf32> to vector<1x128xf32>
    %694 = vector.shape_cast %693 : vector<1x128xf32> to vector<128xf32>
    %695 = vector.shape_cast %694 : vector<128xf32> to vector<1x128xf32>
    %696 = vector.broadcast %695 : vector<1x128xf32> to vector<8x128xf32>
    %697 = arith.mulf %692, %696 : vector<8x128xf32>
    %698 = arith.addf %666, %697 : vector<8x128xf32>
    %699 = vector.extract_strided_slice %691 {offsets = [0, 0], sizes = [8, 128], strides = [1, 1]} : vector<10x128xf32> to vector<8x128xf32>
    %700 = vector.extract_strided_slice %234 {offsets = [6, 0], sizes = [1, 128], strides = [1, 1]} : vector<25x128xf32> to vector<1x128xf32>
    %701 = vector.shape_cast %700 : vector<1x128xf32> to vector<128xf32>
    %702 = vector.shape_cast %701 : vector<128xf32> to vector<1x128xf32>
    %703 = vector.broadcast %702 : vector<1x128xf32> to vector<8x128xf32>
    %704 = arith.mulf %699, %703 : vector<8x128xf32>
    %705 = arith.addf %673, %704 : vector<8x128xf32>
    %706 = vector.extract_strided_slice %689 {offsets = [1, 0], sizes = [8, 128], strides = [1, 1]} : vector<10x128xf32> to vector<8x128xf32>
    %707 = vector.extract_strided_slice %234 {offsets = [7, 0], sizes = [1, 128], strides = [1, 1]} : vector<25x128xf32> to vector<1x128xf32>
    %708 = vector.shape_cast %707 : vector<1x128xf32> to vector<128xf32>
    %709 = vector.shape_cast %708 : vector<128xf32> to vector<1x128xf32>
    %710 = vector.broadcast %709 : vector<1x128xf32> to vector<8x128xf32>
    %711 = arith.mulf %706, %710 : vector<8x128xf32>
    %712 = arith.addf %680, %711 : vector<8x128xf32>
    %713 = vector.extract_strided_slice %691 {offsets = [1, 0], sizes = [8, 128], strides = [1, 1]} : vector<10x128xf32> to vector<8x128xf32>
    %714 = vector.extract_strided_slice %234 {offsets = [8, 0], sizes = [1, 128], strides = [1, 1]} : vector<25x128xf32> to vector<1x128xf32>
    %715 = vector.shape_cast %714 : vector<1x128xf32> to vector<128xf32>
    %716 = vector.shape_cast %715 : vector<128xf32> to vector<1x128xf32>
    %717 = vector.broadcast %716 : vector<1x128xf32> to vector<8x128xf32>
    %718 = arith.mulf %713, %717 : vector<8x128xf32>
    %719 = arith.addf %687, %718 : vector<8x128xf32>
    %720 = vector.extract_strided_slice %689 {offsets = [2, 0], sizes = [8, 128], strides = [1, 1]} : vector<10x128xf32> to vector<8x128xf32>
    %721 = vector.extract_strided_slice %234 {offsets = [9, 0], sizes = [1, 128], strides = [1, 1]} : vector<25x128xf32> to vector<1x128xf32>
    %722 = vector.shape_cast %721 : vector<1x128xf32> to vector<128xf32>
    %723 = vector.shape_cast %722 : vector<128xf32> to vector<1x128xf32>
    %724 = vector.broadcast %723 : vector<1x128xf32> to vector<8x128xf32>
    %725 = arith.mulf %720, %724 : vector<8x128xf32>
    %726 = arith.addf %698, %725 : vector<8x128xf32>
    %c6_293 = arith.constant 6 : index
    %c0_294 = arith.constant 0 : index
    %c0_295 = arith.constant 0 : index
    %727 = vector.load %arg10[%c6_293, %c0_294, %c0_295] : memref<12x10x128xf32, #tpu.memory_space<vmem>>, vector<1x10x128xf32>
    %728 = vector.shape_cast %727 : vector<1x10x128xf32> to vector<10x128xf32>
    %c6_296 = arith.constant 6 : index
    %c0_297 = arith.constant 0 : index
    %c0_298 = arith.constant 0 : index
    %729 = vector.load %arg11[%c6_296, %c0_297, %c0_298] : memref<12x10x128xf32, #tpu.memory_space<vmem>>, vector<1x10x128xf32>
    %730 = vector.shape_cast %729 : vector<1x10x128xf32> to vector<10x128xf32>
    %731 = vector.extract_strided_slice %728 {offsets = [0, 0], sizes = [8, 128], strides = [1, 1]} : vector<10x128xf32> to vector<8x128xf32>
    %732 = vector.extract_strided_slice %234 {offsets = [10, 0], sizes = [1, 128], strides = [1, 1]} : vector<25x128xf32> to vector<1x128xf32>
    %733 = vector.shape_cast %732 : vector<1x128xf32> to vector<128xf32>
    %734 = vector.shape_cast %733 : vector<128xf32> to vector<1x128xf32>
    %735 = vector.broadcast %734 : vector<1x128xf32> to vector<8x128xf32>
    %736 = arith.mulf %731, %735 : vector<8x128xf32>
    %737 = arith.addf %705, %736 : vector<8x128xf32>
    %738 = vector.extract_strided_slice %730 {offsets = [0, 0], sizes = [8, 128], strides = [1, 1]} : vector<10x128xf32> to vector<8x128xf32>
    %739 = vector.extract_strided_slice %234 {offsets = [11, 0], sizes = [1, 128], strides = [1, 1]} : vector<25x128xf32> to vector<1x128xf32>
    %740 = vector.shape_cast %739 : vector<1x128xf32> to vector<128xf32>
    %741 = vector.shape_cast %740 : vector<128xf32> to vector<1x128xf32>
    %742 = vector.broadcast %741 : vector<1x128xf32> to vector<8x128xf32>
    %743 = arith.mulf %738, %742 : vector<8x128xf32>
    %744 = arith.addf %712, %743 : vector<8x128xf32>
    %745 = vector.extract_strided_slice %728 {offsets = [1, 0], sizes = [8, 128], strides = [1, 1]} : vector<10x128xf32> to vector<8x128xf32>
    %746 = vector.extract_strided_slice %234 {offsets = [12, 0], sizes = [1, 128], strides = [1, 1]} : vector<25x128xf32> to vector<1x128xf32>
    %747 = vector.shape_cast %746 : vector<1x128xf32> to vector<128xf32>
    %748 = vector.shape_cast %747 : vector<128xf32> to vector<1x128xf32>
    %749 = vector.broadcast %748 : vector<1x128xf32> to vector<8x128xf32>
    %750 = arith.mulf %745, %749 : vector<8x128xf32>
    %751 = arith.addf %719, %750 : vector<8x128xf32>
    %752 = vector.extract_strided_slice %730 {offsets = [1, 0], sizes = [8, 128], strides = [1, 1]} : vector<10x128xf32> to vector<8x128xf32>
    %753 = vector.extract_strided_slice %234 {offsets = [13, 0], sizes = [1, 128], strides = [1, 1]} : vector<25x128xf32> to vector<1x128xf32>
    %754 = vector.shape_cast %753 : vector<1x128xf32> to vector<128xf32>
    %755 = vector.shape_cast %754 : vector<128xf32> to vector<1x128xf32>
    %756 = vector.broadcast %755 : vector<1x128xf32> to vector<8x128xf32>
    %757 = arith.mulf %752, %756 : vector<8x128xf32>
    %758 = arith.addf %726, %757 : vector<8x128xf32>
    %759 = vector.extract_strided_slice %728 {offsets = [2, 0], sizes = [8, 128], strides = [1, 1]} : vector<10x128xf32> to vector<8x128xf32>
    %760 = vector.extract_strided_slice %234 {offsets = [14, 0], sizes = [1, 128], strides = [1, 1]} : vector<25x128xf32> to vector<1x128xf32>
    %761 = vector.shape_cast %760 : vector<1x128xf32> to vector<128xf32>
    %762 = vector.shape_cast %761 : vector<128xf32> to vector<1x128xf32>
    %763 = vector.broadcast %762 : vector<1x128xf32> to vector<8x128xf32>
    %764 = arith.mulf %759, %763 : vector<8x128xf32>
    %765 = arith.addf %737, %764 : vector<8x128xf32>
    %c7_299 = arith.constant 7 : index
    %c0_300 = arith.constant 0 : index
    %c0_301 = arith.constant 0 : index
    %766 = vector.load %arg10[%c7_299, %c0_300, %c0_301] : memref<12x10x128xf32, #tpu.memory_space<vmem>>, vector<1x10x128xf32>
    %767 = vector.shape_cast %766 : vector<1x10x128xf32> to vector<10x128xf32>
    %c7_302 = arith.constant 7 : index
    %c0_303 = arith.constant 0 : index
    %c0_304 = arith.constant 0 : index
    %768 = vector.load %arg11[%c7_302, %c0_303, %c0_304] : memref<12x10x128xf32, #tpu.memory_space<vmem>>, vector<1x10x128xf32>
    %769 = vector.shape_cast %768 : vector<1x10x128xf32> to vector<10x128xf32>
    %770 = vector.extract_strided_slice %767 {offsets = [0, 0], sizes = [8, 128], strides = [1, 1]} : vector<10x128xf32> to vector<8x128xf32>
    %771 = vector.extract_strided_slice %234 {offsets = [15, 0], sizes = [1, 128], strides = [1, 1]} : vector<25x128xf32> to vector<1x128xf32>
    %772 = vector.shape_cast %771 : vector<1x128xf32> to vector<128xf32>
    %773 = vector.shape_cast %772 : vector<128xf32> to vector<1x128xf32>
    %774 = vector.broadcast %773 : vector<1x128xf32> to vector<8x128xf32>
    %775 = arith.mulf %770, %774 : vector<8x128xf32>
    %776 = arith.addf %744, %775 : vector<8x128xf32>
    %777 = vector.extract_strided_slice %769 {offsets = [0, 0], sizes = [8, 128], strides = [1, 1]} : vector<10x128xf32> to vector<8x128xf32>
    %778 = vector.extract_strided_slice %234 {offsets = [16, 0], sizes = [1, 128], strides = [1, 1]} : vector<25x128xf32> to vector<1x128xf32>
    %779 = vector.shape_cast %778 : vector<1x128xf32> to vector<128xf32>
    %780 = vector.shape_cast %779 : vector<128xf32> to vector<1x128xf32>
    %781 = vector.broadcast %780 : vector<1x128xf32> to vector<8x128xf32>
    %782 = arith.mulf %777, %781 : vector<8x128xf32>
    %783 = arith.addf %751, %782 : vector<8x128xf32>
    %784 = vector.extract_strided_slice %767 {offsets = [1, 0], sizes = [8, 128], strides = [1, 1]} : vector<10x128xf32> to vector<8x128xf32>
    %785 = vector.extract_strided_slice %234 {offsets = [17, 0], sizes = [1, 128], strides = [1, 1]} : vector<25x128xf32> to vector<1x128xf32>
    %786 = vector.shape_cast %785 : vector<1x128xf32> to vector<128xf32>
    %787 = vector.shape_cast %786 : vector<128xf32> to vector<1x128xf32>
    %788 = vector.broadcast %787 : vector<1x128xf32> to vector<8x128xf32>
    %789 = arith.mulf %784, %788 : vector<8x128xf32>
    %790 = arith.addf %758, %789 : vector<8x128xf32>
    %791 = vector.extract_strided_slice %769 {offsets = [1, 0], sizes = [8, 128], strides = [1, 1]} : vector<10x128xf32> to vector<8x128xf32>
    %792 = vector.extract_strided_slice %234 {offsets = [18, 0], sizes = [1, 128], strides = [1, 1]} : vector<25x128xf32> to vector<1x128xf32>
    %793 = vector.shape_cast %792 : vector<1x128xf32> to vector<128xf32>
    %794 = vector.shape_cast %793 : vector<128xf32> to vector<1x128xf32>
    %795 = vector.broadcast %794 : vector<1x128xf32> to vector<8x128xf32>
    %796 = arith.mulf %791, %795 : vector<8x128xf32>
    %797 = arith.addf %765, %796 : vector<8x128xf32>
    %798 = vector.extract_strided_slice %767 {offsets = [2, 0], sizes = [8, 128], strides = [1, 1]} : vector<10x128xf32> to vector<8x128xf32>
    %799 = vector.extract_strided_slice %234 {offsets = [19, 0], sizes = [1, 128], strides = [1, 1]} : vector<25x128xf32> to vector<1x128xf32>
    %800 = vector.shape_cast %799 : vector<1x128xf32> to vector<128xf32>
    %801 = vector.shape_cast %800 : vector<128xf32> to vector<1x128xf32>
    %802 = vector.broadcast %801 : vector<1x128xf32> to vector<8x128xf32>
    %803 = arith.mulf %798, %802 : vector<8x128xf32>
    %804 = arith.addf %776, %803 : vector<8x128xf32>
    %c8_305 = arith.constant 8 : index
    %c0_306 = arith.constant 0 : index
    %c0_307 = arith.constant 0 : index
    %805 = vector.load %arg10[%c8_305, %c0_306, %c0_307] : memref<12x10x128xf32, #tpu.memory_space<vmem>>, vector<1x10x128xf32>
    %806 = vector.shape_cast %805 : vector<1x10x128xf32> to vector<10x128xf32>
    %c8_308 = arith.constant 8 : index
    %c0_309 = arith.constant 0 : index
    %c0_310 = arith.constant 0 : index
    %807 = vector.load %arg11[%c8_308, %c0_309, %c0_310] : memref<12x10x128xf32, #tpu.memory_space<vmem>>, vector<1x10x128xf32>
    %808 = vector.shape_cast %807 : vector<1x10x128xf32> to vector<10x128xf32>
    %809 = vector.extract_strided_slice %806 {offsets = [0, 0], sizes = [8, 128], strides = [1, 1]} : vector<10x128xf32> to vector<8x128xf32>
    %810 = vector.extract_strided_slice %234 {offsets = [20, 0], sizes = [1, 128], strides = [1, 1]} : vector<25x128xf32> to vector<1x128xf32>
    %811 = vector.shape_cast %810 : vector<1x128xf32> to vector<128xf32>
    %812 = vector.shape_cast %811 : vector<128xf32> to vector<1x128xf32>
    %813 = vector.broadcast %812 : vector<1x128xf32> to vector<8x128xf32>
    %814 = arith.mulf %809, %813 : vector<8x128xf32>
    %815 = arith.addf %783, %814 : vector<8x128xf32>
    %816 = vector.extract_strided_slice %808 {offsets = [0, 0], sizes = [8, 128], strides = [1, 1]} : vector<10x128xf32> to vector<8x128xf32>
    %817 = vector.extract_strided_slice %234 {offsets = [21, 0], sizes = [1, 128], strides = [1, 1]} : vector<25x128xf32> to vector<1x128xf32>
    %818 = vector.shape_cast %817 : vector<1x128xf32> to vector<128xf32>
    %819 = vector.shape_cast %818 : vector<128xf32> to vector<1x128xf32>
    %820 = vector.broadcast %819 : vector<1x128xf32> to vector<8x128xf32>
    %821 = arith.mulf %816, %820 : vector<8x128xf32>
    %822 = arith.addf %790, %821 : vector<8x128xf32>
    %823 = vector.extract_strided_slice %806 {offsets = [1, 0], sizes = [8, 128], strides = [1, 1]} : vector<10x128xf32> to vector<8x128xf32>
    %824 = vector.extract_strided_slice %234 {offsets = [22, 0], sizes = [1, 128], strides = [1, 1]} : vector<25x128xf32> to vector<1x128xf32>
    %825 = vector.shape_cast %824 : vector<1x128xf32> to vector<128xf32>
    %826 = vector.shape_cast %825 : vector<128xf32> to vector<1x128xf32>
    %827 = vector.broadcast %826 : vector<1x128xf32> to vector<8x128xf32>
    %828 = arith.mulf %823, %827 : vector<8x128xf32>
    %829 = arith.addf %797, %828 : vector<8x128xf32>
    %830 = vector.extract_strided_slice %808 {offsets = [1, 0], sizes = [8, 128], strides = [1, 1]} : vector<10x128xf32> to vector<8x128xf32>
    %831 = vector.extract_strided_slice %234 {offsets = [23, 0], sizes = [1, 128], strides = [1, 1]} : vector<25x128xf32> to vector<1x128xf32>
    %832 = vector.shape_cast %831 : vector<1x128xf32> to vector<128xf32>
    %833 = vector.shape_cast %832 : vector<128xf32> to vector<1x128xf32>
    %834 = vector.broadcast %833 : vector<1x128xf32> to vector<8x128xf32>
    %835 = arith.mulf %830, %834 : vector<8x128xf32>
    %836 = arith.addf %804, %835 : vector<8x128xf32>
    %837 = vector.extract_strided_slice %806 {offsets = [2, 0], sizes = [8, 128], strides = [1, 1]} : vector<10x128xf32> to vector<8x128xf32>
    %838 = vector.extract_strided_slice %234 {offsets = [24, 0], sizes = [1, 128], strides = [1, 1]} : vector<25x128xf32> to vector<1x128xf32>
    %839 = vector.shape_cast %838 : vector<1x128xf32> to vector<128xf32>
    %840 = vector.shape_cast %839 : vector<128xf32> to vector<1x128xf32>
    %841 = vector.broadcast %840 : vector<1x128xf32> to vector<8x128xf32>
    %842 = arith.mulf %837, %841 : vector<8x128xf32>
    %843 = arith.addf %815, %842 : vector<8x128xf32>
    %844 = arith.addf %843, %822 : vector<8x128xf32>
    %845 = arith.addf %829, %836 : vector<8x128xf32>
    %846 = arith.addf %844, %845 : vector<8x128xf32>
    %c0_311 = arith.constant 0 : index
    %c2_312 = arith.constant 2 : index
    %c0_313 = arith.constant 0 : index
    %c0_314 = arith.constant 0 : index
    %847 = vector.load %arg9[%c0_311, %c2_312, %c0_313, %c0_314] : memref<1x4x8x128xf32, #tpu.memory_space<vmem>>, vector<1x1x8x128xf32>
    %848 = vector.shape_cast %847 : vector<1x1x8x128xf32> to vector<8x128xf32>
    %849 = vector.shape_cast %846 : vector<8x128xf32> to vector<1x1x8x128xf32>
    tpu.vector_store %arg9[%c0_311, %c2_312, %c0_313, %c0_314], %849 {strides = array<i32>} : memref<1x4x8x128xf32, #tpu.memory_space<vmem>>, vector<1x1x8x128xf32>,
    %cst_315 = arith.constant 0.000000e+00 : f32
    %850 = vector.broadcast %cst_315 : f32 to vector<8x128xf32>
    %cst_316 = arith.constant 0.000000e+00 : f32
    %851 = vector.broadcast %cst_316 : f32 to vector<8x128xf32>
    %cst_317 = arith.constant 0.000000e+00 : f32
    %852 = vector.broadcast %cst_317 : f32 to vector<8x128xf32>
    %cst_318 = arith.constant 0.000000e+00 : f32
    %853 = vector.broadcast %cst_318 : f32 to vector<8x128xf32>
    %c6_319 = arith.constant 6 : index
    %c0_320 = arith.constant 0 : index
    %c0_321 = arith.constant 0 : index
    %854 = vector.load %arg10[%c6_319, %c0_320, %c0_321] : memref<12x10x128xf32, #tpu.memory_space<vmem>>, vector<1x10x128xf32>
    %855 = vector.shape_cast %854 : vector<1x10x128xf32> to vector<10x128xf32>
    %c6_322 = arith.constant 6 : index
    %c0_323 = arith.constant 0 : index
    %c0_324 = arith.constant 0 : index
    %856 = vector.load %arg11[%c6_322, %c0_323, %c0_324] : memref<12x10x128xf32, #tpu.memory_space<vmem>>, vector<1x10x128xf32>
    %857 = vector.shape_cast %856 : vector<1x10x128xf32> to vector<10x128xf32>
    %858 = vector.extract_strided_slice %855 {offsets = [0, 0], sizes = [8, 128], strides = [1, 1]} : vector<10x128xf32> to vector<8x128xf32>
    %859 = vector.extract_strided_slice %234 {offsets = [0, 0], sizes = [1, 128], strides = [1, 1]} : vector<25x128xf32> to vector<1x128xf32>
    %860 = vector.shape_cast %859 : vector<1x128xf32> to vector<128xf32>
    %861 = vector.shape_cast %860 : vector<128xf32> to vector<1x128xf32>
    %862 = vector.broadcast %861 : vector<1x128xf32> to vector<8x128xf32>
    %863 = arith.mulf %858, %862 : vector<8x128xf32>
    %864 = arith.addf %850, %863 : vector<8x128xf32>
    %865 = vector.extract_strided_slice %857 {offsets = [0, 0], sizes = [8, 128], strides = [1, 1]} : vector<10x128xf32> to vector<8x128xf32>
    %866 = vector.extract_strided_slice %234 {offsets = [1, 0], sizes = [1, 128], strides = [1, 1]} : vector<25x128xf32> to vector<1x128xf32>
    %867 = vector.shape_cast %866 : vector<1x128xf32> to vector<128xf32>
    %868 = vector.shape_cast %867 : vector<128xf32> to vector<1x128xf32>
    %869 = vector.broadcast %868 : vector<1x128xf32> to vector<8x128xf32>
    %870 = arith.mulf %865, %869 : vector<8x128xf32>
    %871 = arith.addf %851, %870 : vector<8x128xf32>
    %872 = vector.extract_strided_slice %855 {offsets = [1, 0], sizes = [8, 128], strides = [1, 1]} : vector<10x128xf32> to vector<8x128xf32>
    %873 = vector.extract_strided_slice %234 {offsets = [2, 0], sizes = [1, 128], strides = [1, 1]} : vector<25x128xf32> to vector<1x128xf32>
    %874 = vector.shape_cast %873 : vector<1x128xf32> to vector<128xf32>
    %875 = vector.shape_cast %874 : vector<128xf32> to vector<1x128xf32>
    %876 = vector.broadcast %875 : vector<1x128xf32> to vector<8x128xf32>
    %877 = arith.mulf %872, %876 : vector<8x128xf32>
    %878 = arith.addf %852, %877 : vector<8x128xf32>
    %879 = vector.extract_strided_slice %857 {offsets = [1, 0], sizes = [8, 128], strides = [1, 1]} : vector<10x128xf32> to vector<8x128xf32>
    %880 = vector.extract_strided_slice %234 {offsets = [3, 0], sizes = [1, 128], strides = [1, 1]} : vector<25x128xf32> to vector<1x128xf32>
    %881 = vector.shape_cast %880 : vector<1x128xf32> to vector<128xf32>
    %882 = vector.shape_cast %881 : vector<128xf32> to vector<1x128xf32>
    %883 = vector.broadcast %882 : vector<1x128xf32> to vector<8x128xf32>
    %884 = arith.mulf %879, %883 : vector<8x128xf32>
    %885 = arith.addf %853, %884 : vector<8x128xf32>
    %886 = vector.extract_strided_slice %855 {offsets = [2, 0], sizes = [8, 128], strides = [1, 1]} : vector<10x128xf32> to vector<8x128xf32>
    %887 = vector.extract_strided_slice %234 {offsets = [4, 0], sizes = [1, 128], strides = [1, 1]} : vector<25x128xf32> to vector<1x128xf32>
    %888 = vector.shape_cast %887 : vector<1x128xf32> to vector<128xf32>
    %889 = vector.shape_cast %888 : vector<128xf32> to vector<1x128xf32>
    %890 = vector.broadcast %889 : vector<1x128xf32> to vector<8x128xf32>
    %891 = arith.mulf %886, %890 : vector<8x128xf32>
    %892 = arith.addf %864, %891 : vector<8x128xf32>
    %c7_325 = arith.constant 7 : index
    %c0_326 = arith.constant 0 : index
    %c0_327 = arith.constant 0 : index
    %893 = vector.load %arg10[%c7_325, %c0_326, %c0_327] : memref<12x10x128xf32, #tpu.memory_space<vmem>>, vector<1x10x128xf32>
    %894 = vector.shape_cast %893 : vector<1x10x128xf32> to vector<10x128xf32>
    %c7_328 = arith.constant 7 : index
    %c0_329 = arith.constant 0 : index
    %c0_330 = arith.constant 0 : index
    %895 = vector.load %arg11[%c7_328, %c0_329, %c0_330] : memref<12x10x128xf32, #tpu.memory_space<vmem>>, vector<1x10x128xf32>
    %896 = vector.shape_cast %895 : vector<1x10x128xf32> to vector<10x128xf32>
    %897 = vector.extract_strided_slice %894 {offsets = [0, 0], sizes = [8, 128], strides = [1, 1]} : vector<10x128xf32> to vector<8x128xf32>
    %898 = vector.extract_strided_slice %234 {offsets = [5, 0], sizes = [1, 128], strides = [1, 1]} : vector<25x128xf32> to vector<1x128xf32>
    %899 = vector.shape_cast %898 : vector<1x128xf32> to vector<128xf32>
    %900 = vector.shape_cast %899 : vector<128xf32> to vector<1x128xf32>
    %901 = vector.broadcast %900 : vector<1x128xf32> to vector<8x128xf32>
    %902 = arith.mulf %897, %901 : vector<8x128xf32>
    %903 = arith.addf %871, %902 : vector<8x128xf32>
    %904 = vector.extract_strided_slice %896 {offsets = [0, 0], sizes = [8, 128], strides = [1, 1]} : vector<10x128xf32> to vector<8x128xf32>
    %905 = vector.extract_strided_slice %234 {offsets = [6, 0], sizes = [1, 128], strides = [1, 1]} : vector<25x128xf32> to vector<1x128xf32>
    %906 = vector.shape_cast %905 : vector<1x128xf32> to vector<128xf32>
    %907 = vector.shape_cast %906 : vector<128xf32> to vector<1x128xf32>
    %908 = vector.broadcast %907 : vector<1x128xf32> to vector<8x128xf32>
    %909 = arith.mulf %904, %908 : vector<8x128xf32>
    %910 = arith.addf %878, %909 : vector<8x128xf32>
    %911 = vector.extract_strided_slice %894 {offsets = [1, 0], sizes = [8, 128], strides = [1, 1]} : vector<10x128xf32> to vector<8x128xf32>
    %912 = vector.extract_strided_slice %234 {offsets = [7, 0], sizes = [1, 128], strides = [1, 1]} : vector<25x128xf32> to vector<1x128xf32>
    %913 = vector.shape_cast %912 : vector<1x128xf32> to vector<128xf32>
    %914 = vector.shape_cast %913 : vector<128xf32> to vector<1x128xf32>
    %915 = vector.broadcast %914 : vector<1x128xf32> to vector<8x128xf32>
    %916 = arith.mulf %911, %915 : vector<8x128xf32>
    %917 = arith.addf %885, %916 : vector<8x128xf32>
    %918 = vector.extract_strided_slice %896 {offsets = [1, 0], sizes = [8, 128], strides = [1, 1]} : vector<10x128xf32> to vector<8x128xf32>
    %919 = vector.extract_strided_slice %234 {offsets = [8, 0], sizes = [1, 128], strides = [1, 1]} : vector<25x128xf32> to vector<1x128xf32>
    %920 = vector.shape_cast %919 : vector<1x128xf32> to vector<128xf32>
    %921 = vector.shape_cast %920 : vector<128xf32> to vector<1x128xf32>
    %922 = vector.broadcast %921 : vector<1x128xf32> to vector<8x128xf32>
    %923 = arith.mulf %918, %922 : vector<8x128xf32>
    %924 = arith.addf %892, %923 : vector<8x128xf32>
    %925 = vector.extract_strided_slice %894 {offsets = [2, 0], sizes = [8, 128], strides = [1, 1]} : vector<10x128xf32> to vector<8x128xf32>
    %926 = vector.extract_strided_slice %234 {offsets = [9, 0], sizes = [1, 128], strides = [1, 1]} : vector<25x128xf32> to vector<1x128xf32>
    %927 = vector.shape_cast %926 : vector<1x128xf32> to vector<128xf32>
    %928 = vector.shape_cast %927 : vector<128xf32> to vector<1x128xf32>
    %929 = vector.broadcast %928 : vector<1x128xf32> to vector<8x128xf32>
    %930 = arith.mulf %925, %929 : vector<8x128xf32>
    %931 = arith.addf %903, %930 : vector<8x128xf32>
    %c8_331 = arith.constant 8 : index
    %c0_332 = arith.constant 0 : index
    %c0_333 = arith.constant 0 : index
    %932 = vector.load %arg10[%c8_331, %c0_332, %c0_333] : memref<12x10x128xf32, #tpu.memory_space<vmem>>, vector<1x10x128xf32>
    %933 = vector.shape_cast %932 : vector<1x10x128xf32> to vector<10x128xf32>
    %c8_334 = arith.constant 8 : index
    %c0_335 = arith.constant 0 : index
    %c0_336 = arith.constant 0 : index
    %934 = vector.load %arg11[%c8_334, %c0_335, %c0_336] : memref<12x10x128xf32, #tpu.memory_space<vmem>>, vector<1x10x128xf32>
    %935 = vector.shape_cast %934 : vector<1x10x128xf32> to vector<10x128xf32>
    %936 = vector.extract_strided_slice %933 {offsets = [0, 0], sizes = [8, 128], strides = [1, 1]} : vector<10x128xf32> to vector<8x128xf32>
    %937 = vector.extract_strided_slice %234 {offsets = [10, 0], sizes = [1, 128], strides = [1, 1]} : vector<25x128xf32> to vector<1x128xf32>
    %938 = vector.shape_cast %937 : vector<1x128xf32> to vector<128xf32>
    %939 = vector.shape_cast %938 : vector<128xf32> to vector<1x128xf32>
    %940 = vector.broadcast %939 : vector<1x128xf32> to vector<8x128xf32>
    %941 = arith.mulf %936, %940 : vector<8x128xf32>
    %942 = arith.addf %910, %941 : vector<8x128xf32>
    %943 = vector.extract_strided_slice %935 {offsets = [0, 0], sizes = [8, 128], strides = [1, 1]} : vector<10x128xf32> to vector<8x128xf32>
    %944 = vector.extract_strided_slice %234 {offsets = [11, 0], sizes = [1, 128], strides = [1, 1]} : vector<25x128xf32> to vector<1x128xf32>
    %945 = vector.shape_cast %944 : vector<1x128xf32> to vector<128xf32>
    %946 = vector.shape_cast %945 : vector<128xf32> to vector<1x128xf32>
    %947 = vector.broadcast %946 : vector<1x128xf32> to vector<8x128xf32>
    %948 = arith.mulf %943, %947 : vector<8x128xf32>
    %949 = arith.addf %917, %948 : vector<8x128xf32>
    %950 = vector.extract_strided_slice %933 {offsets = [1, 0], sizes = [8, 128], strides = [1, 1]} : vector<10x128xf32> to vector<8x128xf32>
    %951 = vector.extract_strided_slice %234 {offsets = [12, 0], sizes = [1, 128], strides = [1, 1]} : vector<25x128xf32> to vector<1x128xf32>
    %952 = vector.shape_cast %951 : vector<1x128xf32> to vector<128xf32>
    %953 = vector.shape_cast %952 : vector<128xf32> to vector<1x128xf32>
    %954 = vector.broadcast %953 : vector<1x128xf32> to vector<8x128xf32>
    %955 = arith.mulf %950, %954 : vector<8x128xf32>
    %956 = arith.addf %924, %955 : vector<8x128xf32>
    %957 = vector.extract_strided_slice %935 {offsets = [1, 0], sizes = [8, 128], strides = [1, 1]} : vector<10x128xf32> to vector<8x128xf32>
    %958 = vector.extract_strided_slice %234 {offsets = [13, 0], sizes = [1, 128], strides = [1, 1]} : vector<25x128xf32> to vector<1x128xf32>
    %959 = vector.shape_cast %958 : vector<1x128xf32> to vector<128xf32>
    %960 = vector.shape_cast %959 : vector<128xf32> to vector<1x128xf32>
    %961 = vector.broadcast %960 : vector<1x128xf32> to vector<8x128xf32>
    %962 = arith.mulf %957, %961 : vector<8x128xf32>
    %963 = arith.addf %931, %962 : vector<8x128xf32>
    %964 = vector.extract_strided_slice %933 {offsets = [2, 0], sizes = [8, 128], strides = [1, 1]} : vector<10x128xf32> to vector<8x128xf32>
    %965 = vector.extract_strided_slice %234 {offsets = [14, 0], sizes = [1, 128], strides = [1, 1]} : vector<25x128xf32> to vector<1x128xf32>
    %966 = vector.shape_cast %965 : vector<1x128xf32> to vector<128xf32>
    %967 = vector.shape_cast %966 : vector<128xf32> to vector<1x128xf32>
    %968 = vector.broadcast %967 : vector<1x128xf32> to vector<8x128xf32>
    %969 = arith.mulf %964, %968 : vector<8x128xf32>
    %970 = arith.addf %942, %969 : vector<8x128xf32>
    %c9_337 = arith.constant 9 : index
    %c0_338 = arith.constant 0 : index
    %c0_339 = arith.constant 0 : index
    %971 = vector.load %arg10[%c9_337, %c0_338, %c0_339] : memref<12x10x128xf32, #tpu.memory_space<vmem>>, vector<1x10x128xf32>
    %972 = vector.shape_cast %971 : vector<1x10x128xf32> to vector<10x128xf32>
    %c9_340 = arith.constant 9 : index
    %c0_341 = arith.constant 0 : index
    %c0_342 = arith.constant 0 : index
    %973 = vector.load %arg11[%c9_340, %c0_341, %c0_342] : memref<12x10x128xf32, #tpu.memory_space<vmem>>, vector<1x10x128xf32>
    %974 = vector.shape_cast %973 : vector<1x10x128xf32> to vector<10x128xf32>
    %975 = vector.extract_strided_slice %972 {offsets = [0, 0], sizes = [8, 128], strides = [1, 1]} : vector<10x128xf32> to vector<8x128xf32>
    %976 = vector.extract_strided_slice %234 {offsets = [15, 0], sizes = [1, 128], strides = [1, 1]} : vector<25x128xf32> to vector<1x128xf32>
    %977 = vector.shape_cast %976 : vector<1x128xf32> to vector<128xf32>
    %978 = vector.shape_cast %977 : vector<128xf32> to vector<1x128xf32>
    %979 = vector.broadcast %978 : vector<1x128xf32> to vector<8x128xf32>
    %980 = arith.mulf %975, %979 : vector<8x128xf32>
    %981 = arith.addf %949, %980 : vector<8x128xf32>
    %982 = vector.extract_strided_slice %974 {offsets = [0, 0], sizes = [8, 128], strides = [1, 1]} : vector<10x128xf32> to vector<8x128xf32>
    %983 = vector.extract_strided_slice %234 {offsets = [16, 0], sizes = [1, 128], strides = [1, 1]} : vector<25x128xf32> to vector<1x128xf32>
    %984 = vector.shape_cast %983 : vector<1x128xf32> to vector<128xf32>
    %985 = vector.shape_cast %984 : vector<128xf32> to vector<1x128xf32>
    %986 = vector.broadcast %985 : vector<1x128xf32> to vector<8x128xf32>
    %987 = arith.mulf %982, %986 : vector<8x128xf32>
    %988 = arith.addf %956, %987 : vector<8x128xf32>
    %989 = vector.extract_strided_slice %972 {offsets = [1, 0], sizes = [8, 128], strides = [1, 1]} : vector<10x128xf32> to vector<8x128xf32>
    %990 = vector.extract_strided_slice %234 {offsets = [17, 0], sizes = [1, 128], strides = [1, 1]} : vector<25x128xf32> to vector<1x128xf32>
    %991 = vector.shape_cast %990 : vector<1x128xf32> to vector<128xf32>
    %992 = vector.shape_cast %991 : vector<128xf32> to vector<1x128xf32>
    %993 = vector.broadcast %992 : vector<1x128xf32> to vector<8x128xf32>
    %994 = arith.mulf %989, %993 : vector<8x128xf32>
    %995 = arith.addf %963, %994 : vector<8x128xf32>
    %996 = vector.extract_strided_slice %974 {offsets = [1, 0], sizes = [8, 128], strides = [1, 1]} : vector<10x128xf32> to vector<8x128xf32>
    %997 = vector.extract_strided_slice %234 {offsets = [18, 0], sizes = [1, 128], strides = [1, 1]} : vector<25x128xf32> to vector<1x128xf32>
    %998 = vector.shape_cast %997 : vector<1x128xf32> to vector<128xf32>
    %999 = vector.shape_cast %998 : vector<128xf32> to vector<1x128xf32>
    %1000 = vector.broadcast %999 : vector<1x128xf32> to vector<8x128xf32>
    %1001 = arith.mulf %996, %1000 : vector<8x128xf32>
    %1002 = arith.addf %970, %1001 : vector<8x128xf32>
    %1003 = vector.extract_strided_slice %972 {offsets = [2, 0], sizes = [8, 128], strides = [1, 1]} : vector<10x128xf32> to vector<8x128xf32>
    %1004 = vector.extract_strided_slice %234 {offsets = [19, 0], sizes = [1, 128], strides = [1, 1]} : vector<25x128xf32> to vector<1x128xf32>
    %1005 = vector.shape_cast %1004 : vector<1x128xf32> to vector<128xf32>
    %1006 = vector.shape_cast %1005 : vector<128xf32> to vector<1x128xf32>
    %1007 = vector.broadcast %1006 : vector<1x128xf32> to vector<8x128xf32>
    %1008 = arith.mulf %1003, %1007 : vector<8x128xf32>
    %1009 = arith.addf %981, %1008 : vector<8x128xf32>
    %c10_343 = arith.constant 10 : index
    %c0_344 = arith.constant 0 : index
    %c0_345 = arith.constant 0 : index
    %1010 = vector.load %arg10[%c10_343, %c0_344, %c0_345] : memref<12x10x128xf32, #tpu.memory_space<vmem>>, vector<1x10x128xf32>
    %1011 = vector.shape_cast %1010 : vector<1x10x128xf32> to vector<10x128xf32>
    %c10_346 = arith.constant 10 : index
    %c0_347 = arith.constant 0 : index
    %c0_348 = arith.constant 0 : index
    %1012 = vector.load %arg11[%c10_346, %c0_347, %c0_348] : memref<12x10x128xf32, #tpu.memory_space<vmem>>, vector<1x10x128xf32>
    %1013 = vector.shape_cast %1012 : vector<1x10x128xf32> to vector<10x128xf32>
    %1014 = vector.extract_strided_slice %1011 {offsets = [0, 0], sizes = [8, 128], strides = [1, 1]} : vector<10x128xf32> to vector<8x128xf32>
    %1015 = vector.extract_strided_slice %234 {offsets = [20, 0], sizes = [1, 128], strides = [1, 1]} : vector<25x128xf32> to vector<1x128xf32>
    %1016 = vector.shape_cast %1015 : vector<1x128xf32> to vector<128xf32>
    %1017 = vector.shape_cast %1016 : vector<128xf32> to vector<1x128xf32>
    %1018 = vector.broadcast %1017 : vector<1x128xf32> to vector<8x128xf32>
    %1019 = arith.mulf %1014, %1018 : vector<8x128xf32>
    %1020 = arith.addf %988, %1019 : vector<8x128xf32>
    %1021 = vector.extract_strided_slice %1013 {offsets = [0, 0], sizes = [8, 128], strides = [1, 1]} : vector<10x128xf32> to vector<8x128xf32>
    %1022 = vector.extract_strided_slice %234 {offsets = [21, 0], sizes = [1, 128], strides = [1, 1]} : vector<25x128xf32> to vector<1x128xf32>
    %1023 = vector.shape_cast %1022 : vector<1x128xf32> to vector<128xf32>
    %1024 = vector.shape_cast %1023 : vector<128xf32> to vector<1x128xf32>
    %1025 = vector.broadcast %1024 : vector<1x128xf32> to vector<8x128xf32>
    %1026 = arith.mulf %1021, %1025 : vector<8x128xf32>
    %1027 = arith.addf %995, %1026 : vector<8x128xf32>
    %1028 = vector.extract_strided_slice %1011 {offsets = [1, 0], sizes = [8, 128], strides = [1, 1]} : vector<10x128xf32> to vector<8x128xf32>
    %1029 = vector.extract_strided_slice %234 {offsets = [22, 0], sizes = [1, 128], strides = [1, 1]} : vector<25x128xf32> to vector<1x128xf32>
    %1030 = vector.shape_cast %1029 : vector<1x128xf32> to vector<128xf32>
    %1031 = vector.shape_cast %1030 : vector<128xf32> to vector<1x128xf32>
    %1032 = vector.broadcast %1031 : vector<1x128xf32> to vector<8x128xf32>
    %1033 = arith.mulf %1028, %1032 : vector<8x128xf32>
    %1034 = arith.addf %1002, %1033 : vector<8x128xf32>
    %1035 = vector.extract_strided_slice %1013 {offsets = [1, 0], sizes = [8, 128], strides = [1, 1]} : vector<10x128xf32> to vector<8x128xf32>
    %1036 = vector.extract_strided_slice %234 {offsets = [23, 0], sizes = [1, 128], strides = [1, 1]} : vector<25x128xf32> to vector<1x128xf32>
    %1037 = vector.shape_cast %1036 : vector<1x128xf32> to vector<128xf32>
    %1038 = vector.shape_cast %1037 : vector<128xf32> to vector<1x128xf32>
    %1039 = vector.broadcast %1038 : vector<1x128xf32> to vector<8x128xf32>
    %1040 = arith.mulf %1035, %1039 : vector<8x128xf32>
    %1041 = arith.addf %1009, %1040 : vector<8x128xf32>
    %1042 = vector.extract_strided_slice %1011 {offsets = [2, 0], sizes = [8, 128], strides = [1, 1]} : vector<10x128xf32> to vector<8x128xf32>
    %1043 = vector.extract_strided_slice %234 {offsets = [24, 0], sizes = [1, 128], strides = [1, 1]} : vector<25x128xf32> to vector<1x128xf32>
    %1044 = vector.shape_cast %1043 : vector<1x128xf32> to vector<128xf32>
    %1045 = vector.shape_cast %1044 : vector<128xf32> to vector<1x128xf32>
    %1046 = vector.broadcast %1045 : vector<1x128xf32> to vector<8x128xf32>
    %1047 = arith.mulf %1042, %1046 : vector<8x128xf32>
    %1048 = arith.addf %1020, %1047 : vector<8x128xf32>
    %1049 = arith.addf %1048, %1027 : vector<8x128xf32>
    %1050 = arith.addf %1034, %1041 : vector<8x128xf32>
    %1051 = arith.addf %1049, %1050 : vector<8x128xf32>
    %c0_349 = arith.constant 0 : index
    %c3_350 = arith.constant 3 : index
    %c0_351 = arith.constant 0 : index
    %c0_352 = arith.constant 0 : index
    %1052 = vector.load %arg9[%c0_349, %c3_350, %c0_351, %c0_352] : memref<1x4x8x128xf32, #tpu.memory_space<vmem>>, vector<1x1x8x128xf32>
    %1053 = vector.shape_cast %1052 : vector<1x1x8x128xf32> to vector<8x128xf32>
    %1054 = vector.shape_cast %1051 : vector<8x128xf32> to vector<1x1x8x128xf32>
    tpu.vector_store %arg9[%c0_349, %c3_350, %c0_351, %c0_352], %1054 {strides = array<i32>} : memref<1x4x8x128xf32, #tpu.memory_space<vmem>>, vector<1x1x8x128xf32>,
    return
  }
  func.func @transform_0(%arg0: i32, %arg1: i32) -> (i32, i32, i32, i32) {
    %c0_i32 = arith.constant 0 : i32
    %c0_i32_0 = arith.constant 0 : i32
    %c0_i32_1 = arith.constant 0 : i32
    return %arg0, %arg1, %c0_i32, %c0_i32_0 : i32, i32, i32, i32
  }
  func.func @transform_1(%arg0: i32, %arg1: i32) -> (i32, i32, i32, i32) {
    %c1_i32 = arith.constant 1 : i32
    %0 = arith.addi %arg1, %c1_i32 : i32
    %c2_i32 = arith.constant 2 : i32
    %1 = arith.muli %0, %c2_i32 : i32
    %c0_i32 = arith.constant 0 : i32
    %c0_i32_0 = arith.constant 0 : i32
    %c0_i32_1 = arith.constant 0 : i32
    return %arg0, %1, %c0_i32, %c0_i32_0 : i32, i32, i32, i32
  }
  func.func @transform_2(%arg0: i32, %arg1: i32) -> (i32, i32, i32, i32) {
    %c0_i32 = arith.constant 0 : i32
    %c0_i32_0 = arith.constant 0 : i32
    %c0_i32_1 = arith.constant 0 : i32
    return %arg0, %arg1, %c0_i32, %c0_i32_0 : i32, i32, i32, i32
  }
  func.func @transform_3(%arg0: i32, %arg1: i32) -> (i32, i32, i32, i32) {
    %c1_i32 = arith.constant 1 : i32
    %0 = arith.addi %arg1, %c1_i32 : i32
    %c2_i32 = arith.constant 2 : i32
    %1 = arith.muli %0, %c2_i32 : i32
    %c0_i32 = arith.constant 0 : i32
    %c0_i32_0 = arith.constant 0 : i32
    %c0_i32_1 = arith.constant 0 : i32
    return %arg0, %1, %c0_i32, %c0_i32_0 : i32, i32, i32, i32
  }
  func.func @transform_4(%arg0: i32, %arg1: i32) -> (i32, i32) {
    %c0_i32 = arith.constant 0 : i32
    %c0_i32_0 = arith.constant 0 : i32
    %c0_i32_1 = arith.constant 0 : i32
    return %c0_i32, %c0_i32_0 : i32, i32
  }
  func.func @transform_5(%arg0: i32, %arg1: i32) -> (i32, i32) {
    %c0_i32 = arith.constant 0 : i32
    %c0_i32_0 = arith.constant 0 : i32
    %c0_i32_1 = arith.constant 0 : i32
    return %c0_i32, %c0_i32_0 : i32, i32
  }
  func.func @transform_6(%arg0: i32, %arg1: i32) -> (i32, i32) {
    %c0_i32 = arith.constant 0 : i32
    %c0_i32_0 = arith.constant 0 : i32
    %c0_i32_1 = arith.constant 0 : i32
    return %c0_i32, %c0_i32_0 : i32, i32
  }
  func.func @transform_7(%arg0: i32, %arg1: i32) -> (i32, i32, i32, i32) {
    %c0_i32 = arith.constant 0 : i32
    %c0_i32_0 = arith.constant 0 : i32
    %c0_i32_1 = arith.constant 0 : i32
    return %arg0, %arg1, %c0_i32, %c0_i32_0 : i32, i32, i32, i32
  }
}

</mosaic_0001>

<bundles_post_ra>
// kernel: forward.1
= control target key start
LH: loop header
LB: loop body
LE: loop exit
PB: predicated region body
PF: predicated region fallthrough
CT: control target
= control target key end

     0   :  { %s2074_s24 = smov 0   ;;  %s2076_s25 = smov 0   ;;  %s2774_s0 = inlined_call_operand.vmem [shape: f32[2,20,10,128], index: 0, kind: input, shape index: {}, may-alias: {0,1}]   ;;  %s2775_s1 = inlined_call_operand.vmem [shape: f32[2,20,10,128], index: 1, kind: input, shape index: {}, may-alias: {0,1}]   ;;  %s2776_s2 = inlined_call_operand.vmem [shape: f32[2,20,10,128], index: 2, kind: input, shape index: {}, may-alias: {2,3}]   ;;  %s2777_s3 = inlined_call_operand.vmem [shape: f32[2,20,10,128], index: 3, kind: input, shape index: {}, may-alias: {2,3}]   ;;  %s2778_s4 = inlined_call_operand.vmem [shape: f32[1,128], index: 4, kind: input, shape index: {}]   ;;  %s2779_s5 = inlined_call_operand.vmem [shape: f32[1,128], index: 5, kind: input, shape index: {}]   ;;  %s2780_s6 = inlined_call_operand.vmem [shape: f32[25,128], index: 6, kind: input, shape index: {}]   ;;  %s2781_s7 = inlined_call_operand.vmem [shape: f32[2,8,8,128], index: 7, kind: output, shape index: {}]  }
   0x1   :  { %s2078_s26 = smov 0   ;;  %s2080_s27 = smov 0  }
   0x2   :  { %s2082_s28 = smov 0  }
   0x3 LB: > { %s26_s29 = sadd.s32 1, %s2021_s26  ;;  %s29_s30 = sadd.s32 1, %s2025_s27  ;;  %s2029_s28 = sphi %s2082_s28, %s17_s28   ;;  %s2025_s27 = sphi %s2080_s27, %s2786_s27   ;;  %s2021_s26 = sphi %s2078_s26, %s2785_s26   ;;  %s2017_s25 = sphi %s2076_s25, %s2784_s25   ;;  %s2013_s24 = sphi %s2074_s24, %s2783_s24  }
   0x4   : > { %p27_p0 = scmp.ge.s32.totalorder %s26_s29, 2  ;;  %p1861_p1 = scmp.ge.s32.totalorder %s2029_s28, 1 }
   0x5   : > { %p349_p2 = scmp.lt.s32.totalorder %s2029_s28, 5 }
   0x6   : > { %s2788_s29 = smov (%p27_p0, %s26_s29), 0  ;;  %s2790_s30 = smov (!%p27_p0, %s29_s30), %s2025_s27 }
   0x7   : > { %p350_p3 = pnand %p1861_p1, %p349_p2  ;;  %p31_p4 = scmp.ge.s32.totalorder %s2790_s30, 2 }
   0x8   : > { %s1862_s8 = sshll.u32 (!%p350_p3), %s2013_s24, 3  ;;  %p440_p5 = scmp.lt.s32.totalorder (!%p350_p3), %s2017_s25, 1  ;;  %v2117_v0 = vld [vmem:[%s2778_s4] ss:$0 sm:$0xff] (!%p350_p3)  ;;  %v2031_v48 = vmov (!%p350_p3), 0.0  }
   0x9   : > { %s2792_s30 = smov (%p31_p4, %s2790_s30), 0  ;;  %353 = sbr.rel (%p350_p3) target bundleno = 216 (0xd8), region = 48 }
   0xa   : > { %p442_p6 = scmp.lt.s32.totalorder (!%p350_p3), %s1862_s8, 19  ;;  %s1876_s9 = sshll.u32 (!%p350_p3), %s2013_s24, 2  ;;  %v2131_v1 = vld [vmem:[%s2779_s5] ss:$0 sm:$0xff] (!%p350_p3) }
   0xb   : > { %p509_p7 = scmp.lt.s32.totalorder (!%p350_p3), %s1876_s9, 7  ;;  %s1944_s15 = sadd.s32 (!%p350_p3), 8, %s1862_s8 }
   0xc   : > { %p2119_p8 = scmp.lt.s32.totalorder (!%p350_p3), %s1944_s15, 19  ;;  %p1921_p9 = scmp.ne.s32.totalorder (!%p350_p3), %s2013_s24, 0 }
  0x10   : > { %s2794_s25 = smov (!%p440_p5, %s2017_s25), 1  ;;  %s2796_s9 = smov (!%p509_p7, %s1876_s9), 7 }
  0x11   : > { %s443_s10 = scalar_select %p442_p6, %s1862_s8, 19 }
  0x12   : > { %s1947_s11 = smul.u32 40, %s2794_s25  ;;  %s1877_s13 = sshll.u32 %s2794_s25, 3 }
  0x13   : > { %s1863_s12 = sshll.u32 %s443_s10, 1  ;;  %s2798_s15 = smov (!%p2119_p8, %s1944_s15), 19 }
  0x14   : > { %s446_s14 = sadd.s32 %s1947_s11, %s1863_s12  ;;  %s1867_s19 = sshll.u32 %s2798_s15, 1 }
  0x15   : > { %s1864_s16 = sshll.u32 %s446_s14, 3  ;;  %s2213_s15 = sadd.s32 %s1947_s11, %s1867_s19 }
  0x16   : > { %s2126_s22 = scalar_lea.vmem %s2774_s0, %s1864_s16  ;;  %s2136_s14 = scalar_lea.vmem %s2776_s2, %s1864_s16 }
  0x17   : > { %v530_v2 = vld [vmem:[%s2126_s22] sm:$0xff]  ;;  %v531_v3 = vld [vmem:[%s2126_s22 + $0x8] sm:$0x3]  ;;  %v1881_v9 = vld [vmem:[%s2126_s22 + $0x10] sm:$0xff]  ;;  %s512_s16 = sadd.s32 %s1877_s13, %s2796_s9  ;;  %s1868_s25 = sshll.u32 %s2213_s15, 3 }
  0x18   : > { %v540_v4 = vld [vmem:[%s2136_s14] sm:$0xff]  ;;  %v532_v5 = vmul.f32 %v2117_v0, %v530_v2  ;;  %v533_v6 = vmul.f32 %v2117_v0, %v531_v3  ;;  %v541_v8 = vld [vmem:[%s2136_s14 + $0x8] sm:$0x3]  ;;  %v1882_v10 = vld [vmem:[%s2126_s22 + $0x18] sm:$0x3]  ;;  %v553_v12 = vmul.f32 %v1881_v9, %v2117_v0  ;;  %s1878_s17 = sshll.u32 %s512_s16, 3  ;;  %s2253_s21 = scalar_lea.vmem %s2775_s1, %s1868_s25 }
  0x19   : > { %v542_v7 = vmul.f32 %v2117_v0, %v540_v4  ;;  %v543_v11 = vmul.f32 %v2117_v0, %v541_v8  ;;  %v554_v13 = vmul.f32 %v1882_v10, %v2117_v0  ;;  %v1883_v14 = vld [vmem:[%s2136_s14 + $0x10] sm:$0xff]  ;;  %v1884_v15 = vld [vmem:[%s2136_s14 + $0x18] sm:$0x3]  ;;  %v1885_v20 = vld [vmem:[%s2126_s22 + $0x20] sm:$0xff]  ;;  %s2164_s18 = scalar_lea.vmem %s2781_s7, %s1878_s17  ;;  %s2264_s10 = scalar_lea.vmem %s2777_s3, %s1868_s25 }
  0x1a   : > { %v534_v16 = vadd.f32 %v2131_v1, %v532_v5  ;;  %v535_v17 = vadd.f32 %v2131_v1, %v533_v6  ;;  %v565_v19 = vmul.f32 %v1883_v14, %v2117_v0  ;;  %v555_v22 = vadd.f32 %v2131_v1, %v553_v12  ;;  %v1886_v25 = vld [vmem:[%s2126_s22 + $0x28] sm:$0x3]  ;;  %v1887_v26 = vld [vmem:[%s2136_s14 + $0x20] sm:$0xff]  ;;  %v1889_v32 = vld [vmem:[%s2126_s22 + $0x30] sm:$0xff] }
  0x1b   : > { %v544_v18 = vadd.f32 %v2131_v1, %v542_v7  ;;  %v545_v21 = vadd.f32 %v2131_v1, %v543_v11  ;;  %v556_v23 = vadd.f32 %v2131_v1, %v554_v13  ;;  %v566_v24 = vmul.f32 %v1884_v15, %v2117_v0  ;;  %v1888_v27 = vld [vmem:[%s2136_s14 + $0x28] sm:$0x3]  ;;  %v1890_v33 = vld [vmem:[%s2126_s22 + $0x38] sm:$0x3]  ;;  %v1891_v38 = vld [vmem:[%s2136_s14 + $0x30] sm:$0xff] }
  0x1c   : > { %v536_v28 = vmax.f32 %v534_v16, 0.0  ;;  %v537_v29 = vmax.f32 %v535_v17, 0.0  ;;  %v567_v31 = vadd.f32 %v2131_v1, %v565_v19  ;;  %v557_v35 = vmax.f32 %v555_v22, 0.0  ;;  %v1892_v43 = vld [vmem:[%s2136_s14 + $0x38] sm:$0x3]  ;;  %v1893_v53 = vld [vmem:[%s2126_s22 + $0x40] sm:$0xff] }
  0x1d   : > { %v546_v30 = vmax.f32 %v544_v18, 0.0  ;;  %v547_v34 = vmax.f32 %v545_v21, 0.0  ;;  %v558_v36 = vmax.f32 %v556_v23, 0.0  ;;  %v568_v37 = vadd.f32 %v2131_v1, %v566_v24  ;;  %v1894_v58 = vld [vmem:[%s2126_s22 + $0x48] sm:$0x3]  ;;  %v1895_v59 = vld [vmem:[%s2136_s14 + $0x40] sm:$0xff] }
  0x1e   : > { %538 = vst [vmem:[#allocation2] sm:$0xff] %v536_v28  ;;  %539 = vst [vmem:[#allocation2 + $0x8] sm:$0x3] %v537_v29  ;;  %v569_v39 = vmax.f32 %v567_v31, 0.0  ;;  %v577_v40 = vmul.f32 %v1885_v20, %v2117_v0  ;;  %v578_v41 = vmul.f32 %v1886_v25, %v2117_v0  ;;  %v589_v42 = vmul.f32 %v1887_v26, %v2117_v0  ;;  %v1896_v60 = vld [vmem:[%s2136_s14 + $0x48] sm:$0x3] }
  0x1f   : > { %548 = vst [vmem:[#allocation3] sm:$0xff] %v546_v30  ;;  %549 = vst [vmem:[#allocation3 + $0x8] sm:$0x3] %v547_v34  ;;  %v570_v44 = vmax.f32 %v568_v37, 0.0  ;;  %v590_v45 = vmul.f32 %v1888_v27, %v2117_v0  ;;  %v601_v46 = vmul.f32 %v1889_v32, %v2117_v0  ;;  %v602_v47 = vmul.f32 %v1890_v33, %v2117_v0  ;;  %v1897_v3 = vld [vmem:[%s2126_s22 + $0x50] sm:$0xff]  ;;  %v1901_v23 = vld [vmem:[%s2126_s22 + $0x60] sm:$0xff] }
  0x20   : > { %560 = vst [vmem:[#allocation2 + $0x10] sm:$0xff] %v557_v35  ;;  %561 = vst [vmem:[#allocation2 + $0x18] sm:$0x3] %v558_v36  ;;  %v579_v49 = vadd.f32 %v2131_v1, %v577_v40  ;;  %v580_v50 = vadd.f32 %v2131_v1, %v578_v41  ;;  %v591_v51 = vadd.f32 %v2131_v1, %v589_v42  ;;  %v1898_v4 = vld [vmem:[%s2126_s22 + $0x58] sm:$0x3]  ;;  %v1899_v9 = vld [vmem:[%s2136_s14 + $0x50] sm:$0xff] }
  0x21   : > { %812 = vst [vmem:[#allocation2] sm:$0x1] %v2031_v48  ;;  %824 = vst [vmem:[#allocation2 + $0x9] sm:$0x1] %v2031_v48  ;;  %v613_v52 = vmul.f32 %v1891_v38, %v2117_v0  ;;  %v592_v54 = vadd.f32 %v2131_v1, %v590_v45  ;;  %v603_v55 = vadd.f32 %v2131_v1, %v601_v46  ;;  %v1900_v14 = vld [vmem:[%s2136_s14 + $0x58] sm:$0x3] }
  0x22   : > { %836 = vst [vmem:[#allocation3] sm:$0x1] %v2031_v48  ;;  %572 = vst [vmem:[#allocation3 + $0x10] sm:$0xff] %v569_v39  ;;  %v604_v56 = vadd.f32 %v2131_v1, %v602_v47  ;;  %v614_v57 = vmul.f32 %v1892_v43, %v2117_v0  ;;  %v581_v61 = vmax.f32 %v579_v49, 0.0  ;;  %v582_v62 = vmax.f32 %v580_v50, 0.0  ;;  %v1903_v29 = vld [vmem:[%s2136_s14 + $0x60] sm:$0xff] }
  0x23   : > { %813 = vst [vmem:[#allocation2 + $0x10] sm:$0x1] %v2031_v48  ;;  %825 = vst [vmem:[#allocation2 + $0x19] sm:$0x1] %v2031_v48  ;;  %v593_v63 = vmax.f32 %v591_v51, 0.0  ;;  %v615_v2 = vadd.f32 %v2131_v1, %v613_v52  ;;  %v594_v5 = vmax.f32 %v592_v54, 0.0  ;;  %v625_v11 = vmul.f32 %v1893_v53, %v2117_v0 }
  0x24   : > { %848 = vst [vmem:[#allocation3 + $0x9] sm:$0x1] %v2031_v48  ;;  %573 = vst [vmem:[#allocation3 + $0x18] sm:$0x3] %v570_v44  ;;  %v605_v6 = vmax.f32 %v603_v55, 0.0  ;;  %v606_v7 = vmax.f32 %v604_v56, 0.0  ;;  %v616_v8 = vadd.f32 %v2131_v1, %v614_v57  ;;  %v626_v12 = vmul.f32 %v1894_v58, %v2117_v0 }
  0x25   : > { %837 = vst [vmem:[#allocation3 + $0x10] sm:$0x1] %v2031_v48  ;;  %849 = vst [vmem:[#allocation3 + $0x19] sm:$0x1] %v2031_v48  ;;  %v617_v10 = vmax.f32 %v615_v2, 0.0  ;;  %v637_v13 = vmul.f32 %v1895_v59, %v2117_v0  ;;  %v638_v16 = vmul.f32 %v1896_v60, %v2117_v0  ;;  %v649_v17 = vmul.f32 %v1897_v3, %v2117_v0  ;;  %v1905_v35 = vld [vmem:[%s2126_s22 + $0x70] sm:$0xff] }
  0x26   : > { %584 = vst [vmem:[#allocation2 + $0x20] sm:$0xff] %v581_v61  ;;  %585 = vst [vmem:[#allocation2 + $0x28] sm:$0x3] %v582_v62  ;;  %v618_v15 = vmax.f32 %v616_v8, 0.0  ;;  %v650_v18 = vmul.f32 %v1898_v4, %v2117_v0  ;;  %v627_v19 = vadd.f32 %v2131_v1, %v625_v11  ;;  %v628_v20 = vadd.f32 %v2131_v1, %v626_v12  ;;  %v1902_v28 = vld [vmem:[%s2126_s22 + $0x68] sm:$0x3] }
  0x27   : > { %596 = vst [vmem:[#allocation3 + $0x20] sm:$0xff] %v593_v63  ;;  %597 = vst [vmem:[#allocation3 + $0x28] sm:$0x3] %v594_v5  ;;  %v639_v21 = vadd.f32 %v2131_v1, %v637_v13  ;;  %v661_v22 = vmul.f32 %v1899_v9, %v2117_v0  ;;  %v640_v24 = vadd.f32 %v2131_v1, %v638_v16  ;;  %v1904_v30 = vld [vmem:[%s2136_s14 + $0x68] sm:$0x3]  ;;  %v1907_v41 = vld [vmem:[%s2136_s14 + $0x70] sm:$0xff] }
  0x28   : > { %608 = vst [vmem:[#allocation2 + $0x30] sm:$0xff] %v605_v6  ;;  %609 = vst [vmem:[#allocation2 + $0x38] sm:$0x3] %v606_v7  ;;  %v651_v25 = vadd.f32 %v2131_v1, %v649_v17  ;;  %v652_v26 = vadd.f32 %v2131_v1, %v650_v18  ;;  %v662_v27 = vmul.f32 %v1900_v14, %v2117_v0  ;;  %v629_v31 = vmax.f32 %v627_v19, 0.0  ;;  %v1906_v36 = vld [vmem:[%s2126_s22 + $0x78] sm:$0x3] }
  0x29   : > { %814 = vst [vmem:[#allocation2 + $0x20] sm:$0x1] %v2031_v48  ;;  %826 = vst [vmem:[#allocation2 + $0x29] sm:$0x1] %v2031_v48  ;;  %v630_v32 = vmax.f32 %v628_v20, 0.0  ;;  %v641_v33 = vmax.f32 %v639_v21, 0.0  ;;  %v663_v34 = vadd.f32 %v2131_v1, %v661_v22  ;;  %v673_v43 = vmul.f32 %v1901_v23, %v2117_v0 }
  0x2a   : > { %838 = vst [vmem:[#allocation3 + $0x20] sm:$0x1] %v2031_v48  ;;  %620 = vst [vmem:[#allocation3 + $0x30] sm:$0xff] %v617_v10  ;;  %v642_v37 = vmax.f32 %v640_v24, 0.0  ;;  %v653_v38 = vmax.f32 %v651_v25, 0.0  ;;  %v654_v39 = vmax.f32 %v652_v26, 0.0  ;;  %v664_v40 = vadd.f32 %v2131_v1, %v662_v27 }
  0x2b   : > { %815 = vst [vmem:[#allocation2 + $0x30] sm:$0x1] %v2031_v48  ;;  %827 = vst [vmem:[#allocation2 + $0x39] sm:$0x1] %v2031_v48  ;;  %v665_v42 = vmax.f32 %v663_v34, 0.0  ;;  %v674_v44 = vmul.f32 %v1902_v28, %v2117_v0  ;;  %v685_v45 = vmul.f32 %v1903_v29, %v2117_v0  ;;  %v686_v49 = vmul.f32 %v1904_v30, %v2117_v0  ;;  %v718_v56 = vld [vmem:[%s2253_s21] sm:$0xff] }
  0x2c   : > { %850 = vst [vmem:[#allocation3 + $0x29] sm:$0x1] %v2031_v48  ;;  %621 = vst [vmem:[#allocation3 + $0x38] sm:$0x3] %v618_v15  ;;  %v1908_v46 = vld [vmem:[%s2136_s14 + $0x78] sm:$0x3]  ;;  %v697_v50 = vmul.f32 %v1905_v35, %v2117_v0  ;;  %v698_v51 = vmul.f32 %v1906_v36, %v2117_v0  ;;  %v675_v52 = vadd.f32 %v2131_v1, %v673_v43 }
  0x2d   : > { %839 = vst [vmem:[#allocation3 + $0x30] sm:$0x1] %v2031_v48  ;;  %851 = vst [vmem:[#allocation3 + $0x39] sm:$0x1] %v2031_v48  ;;  %v666_v47 = vmax.f32 %v664_v40, 0.0  ;;  %v676_v53 = vadd.f32 %v2131_v1, %v674_v44  ;;  %v687_v54 = vadd.f32 %v2131_v1, %v685_v45  ;;  %v709_v55 = vmul.f32 %v1907_v41, %v2117_v0  ;;  %v729_v62 = vld [vmem:[%s2264_s10] sm:$0xff] }
  0x2e   : > { %632 = vst [vmem:[#allocation2 + $0x40] sm:$0xff] %v629_v31  ;;  %633 = vst [vmem:[#allocation2 + $0x48] sm:$0x3] %v630_v32  ;;  %v688_v57 = vadd.f32 %v2131_v1, %v686_v49  ;;  %v699_v58 = vadd.f32 %v2131_v1, %v697_v50  ;;  %v700_v59 = vadd.f32 %v2131_v1, %v698_v51  ;;  %v719_v61 = vld [vmem:[%s2253_s21 + $0x8] sm:$0x3]  ;;  %v677_v2 = vmax.f32 %v675_v52, 0.0 }
  0x2f   : > { %644 = vst [vmem:[#allocation3 + $0x40] sm:$0xff] %v641_v33  ;;  %645 = vst [vmem:[#allocation3 + $0x48] sm:$0x3] %v642_v37  ;;  %v710_v60 = vmul.f32 %v1908_v46, %v2117_v0  ;;  %v730_v63 = vld [vmem:[%s2264_s10 + $0x8] sm:$0x3]  ;;  %v678_v3 = vmax.f32 %v676_v53, 0.0  ;;  %v711_v5 = vadd.f32 %v2131_v1, %v709_v55  ;;  %v720_v14 = vmul.f32 %v2117_v0, %v718_v56 }
  0x30   : > { %656 = vst [vmem:[#allocation2 + $0x50] sm:$0xff] %v653_v38  ;;  %657 = vst [vmem:[#allocation2 + $0x58] sm:$0x3] %v654_v39  ;;  %v689_v4 = vmax.f32 %v687_v54, 0.0  ;;  %v1909_v6 = vld [vmem:[%s2253_s21 + $0x10] sm:$0xff]  ;;  %v690_v8 = vmax.f32 %v688_v57, 0.0  ;;  %v721_v15 = vmul.f32 %v2117_v0, %v719_v61  ;;  %v731_v16 = vmul.f32 %v2117_v0, %v729_v62 }
  0x31   : > { %816 = vst [vmem:[#allocation2 + $0x40] sm:$0x1] %v2031_v48  ;;  %828 = vst [vmem:[#allocation2 + $0x49] sm:$0x1] %v2031_v48  ;;  %v1910_v7 = vld [vmem:[%s2253_s21 + $0x18] sm:$0x3]  ;;  %v712_v11 = vadd.f32 %v2131_v1, %v710_v60  ;;  %v732_v19 = vmul.f32 %v2117_v0, %v730_v63  ;;  %v743_v20 = vmul.f32 %v1909_v6, %v2117_v0 }
  0x32   : > { %840 = vst [vmem:[#allocation3 + $0x40] sm:$0x1] %v2031_v48  ;;  %668 = vst [vmem:[#allocation3 + $0x50] sm:$0xff] %v665_v42  ;;  %v701_v9 = vmax.f32 %v699_v58, 0.0  ;;  %v702_v10 = vmax.f32 %v700_v59, 0.0  ;;  %v1911_v12 = vld [vmem:[%s2264_s10 + $0x10] sm:$0xff]  ;;  %v744_v21 = vmul.f32 %v1910_v7, %v2117_v0  ;;  %v722_v22 = vadd.f32 %v2131_v1, %v720_v14 }
  0x33   : > { %817 = vst [vmem:[#allocation2 + $0x50] sm:$0x1] %v2031_v48  ;;  %829 = vst [vmem:[#allocation2 + $0x59] sm:$0x1] %v2031_v48  ;;  %v713_v13 = vmax.f32 %v711_v5, 0.0  ;;  %v714_v18 = vmax.f32 %v712_v11, 0.0  ;;  %v723_v23 = vadd.f32 %v2131_v1, %v721_v15  ;;  %v733_v24 = vadd.f32 %v2131_v1, %v731_v16 }
  0x34   : > { %852 = vst [vmem:[#allocation3 + $0x49] sm:$0x1] %v2031_v48  ;;  %669 = vst [vmem:[#allocation3 + $0x58] sm:$0x3] %v666_v47  ;;  %v1912_v17 = vld [vmem:[%s2264_s10 + $0x18] sm:$0x3]  ;;  %v755_v25 = vmul.f32 %v1911_v12, %v2117_v0  ;;  %v734_v27 = vadd.f32 %v2131_v1, %v732_v19  ;;  %v745_v28 = vadd.f32 %v2131_v1, %v743_v20 }
  0x35   : > { %841 = vst [vmem:[#allocation3 + $0x50] sm:$0x1] %v2031_v48  ;;  %853 = vst [vmem:[#allocation3 + $0x59] sm:$0x1] %v2031_v48  ;;  %v1913_v26 = vld [vmem:[%s2253_s21 + $0x20] sm:$0xff]  ;;  %v746_v29 = vadd.f32 %v2131_v1, %v744_v21  ;;  %v756_v30 = vmul.f32 %v1912_v17, %v2117_v0  ;;  %v724_v34 = vmax.f32 %v722_v22, 0.0 }
  0x36   : > { %680 = vst [vmem:[#allocation2 + $0x60] sm:$0xff] %v677_v2  ;;  %681 = vst [vmem:[#allocation2 + $0x68] sm:$0x3] %v678_v3  ;;  %v1914_v31 = vld [vmem:[%s2253_s21 + $0x28] sm:$0x3]  ;;  %v1915_v32 = vld [vmem:[%s2264_s10 + $0x20] sm:$0xff]  ;;  %v757_v37 = vadd.f32 %v2131_v1, %v755_v25  ;;  %v767_v43 = vmul.f32 %v1913_v26, %v2117_v0 }
  0x37   : > { %692 = vst [vmem:[#allocation3 + $0x60] sm:$0xff] %v689_v4  ;;  %693 = vst [vmem:[#allocation3 + $0x68] sm:$0x3] %v690_v8  ;;  %v1916_v33 = vld [vmem:[%s2264_s10 + $0x28] sm:$0x3]  ;;  %v725_v35 = vmax.f32 %v723_v23, 0.0  ;;  %v758_v41 = vadd.f32 %v2131_v1, %v756_v30  ;;  %v768_v44 = vmul.f32 %v1914_v31, %v2117_v0  ;;  %v779_v45 = vmul.f32 %v1915_v32, %v2117_v0 }
  0x38   : > { %704 = vst [vmem:[#allocation2 + $0x70] sm:$0xff] %v701_v9  ;;  %705 = vst [vmem:[#allocation2 + $0x78] sm:$0x3] %v702_v10  ;;  %v735_v36 = vmax.f32 %v733_v24, 0.0  ;;  %v736_v38 = vmax.f32 %v734_v27, 0.0  ;;  %v747_v39 = vmax.f32 %v745_v28, 0.0  ;;  %v780_v47 = vmul.f32 %v1916_v33, %v2117_v0 }
  0x39   : > { %818 = vst [vmem:[#allocation2 + $0x60] sm:$0x1] %v2031_v48  ;;  %830 = vst [vmem:[#allocation2 + $0x69] sm:$0x1] %v2031_v48  ;;  %v748_v40 = vmax.f32 %v746_v29, 0.0  ;;  %v759_v42 = vmax.f32 %v757_v37, 0.0  ;;  %v769_v49 = vadd.f32 %v2131_v1, %v767_v43  ;;  %v770_v50 = vadd.f32 %v2131_v1, %v768_v44 }
  0x3a   : > { %842 = vst [vmem:[#allocation3 + $0x60] sm:$0x1] %v2031_v48  ;;  %716 = vst [vmem:[#allocation3 + $0x70] sm:$0xff] %v713_v13  ;;  %v760_v46 = vmax.f32 %v758_v41, 0.0  ;;  %v781_v51 = vadd.f32 %v2131_v1, %v779_v45  ;;  %v782_v0 = vadd.f32 %v2131_v1, %v780_v47  ;;  %v2032_v1 = vmov (!%p1921_p9), 0.0  }
  0x3b   : > { %819 = vst [vmem:[#allocation2 + $0x70] sm:$0x1] %v2031_v48  ;;  %831 = vst [vmem:[#allocation2 + $0x79] sm:$0x1] %v2031_v48  ;;  %v771_v52 = vmax.f32 %v769_v49, 0.0  ;;  %v772_v53 = vmax.f32 %v770_v50, 0.0 }
  0x3c   : > { %854 = vst [vmem:[#allocation3 + $0x69] sm:$0x1] %v2031_v48  ;;  %717 = vst [vmem:[#allocation3 + $0x78] sm:$0x3] %v714_v18  ;;  %v783_v54 = vmax.f32 %v781_v51, 0.0  ;;  %v784_v55 = vmax.f32 %v782_v0, 0.0 }
  0x3d   : > { %843 = vst [vmem:[#allocation3 + $0x70] sm:$0x1] %v2031_v48  ;;  %855 = vst [vmem:[#allocation3 + $0x79] sm:$0x1] %v2031_v48 }
  0x3e   : > { %727 = vst [vmem:[#allocation2 + $0x80] sm:$0xff] %v724_v34  ;;  %728 = vst [vmem:[#allocation2 + $0x88] sm:$0x3] %v725_v35 }
  0x3f   : > { %738 = vst [vmem:[#allocation3 + $0x80] sm:$0xff] %v735_v36  ;;  %739 = vst [vmem:[#allocation3 + $0x88] sm:$0x3] %v736_v38 }
  0x40   : > { %750 = vst [vmem:[#allocation2 + $0x90] sm:$0xff] %v747_v39  ;;  %751 = vst [vmem:[#allocation2 + $0x98] sm:$0x3] %v748_v40 }
  0x41   : > { %820 = vst [vmem:[#allocation2 + $0x80] sm:$0x1] %v2031_v48  ;;  %832 = vst [vmem:[#allocation2 + $0x89] sm:$0x1] %v2031_v48 }
  0x42   : > { %844 = vst [vmem:[#allocation3 + $0x80] sm:$0x1] %v2031_v48  ;;  %762 = vst [vmem:[#allocation3 + $0x90] sm:$0xff] %v759_v42 }
  0x43   : > { %821 = vst [vmem:[#allocation2 + $0x90] sm:$0x1] %v2031_v48  ;;  %833 = vst [vmem:[#allocation2 + $0x99] sm:$0x1] %v2031_v48  ;;  %863 = sbr.rel (%p1921_p9) target bundleno = 78 (0x4e), region = 52 }
  0x44   : > { %856 = vst [vmem:[#allocation3 + $0x89] sm:$0x1] %v2031_v48  ;;  %763 = vst [vmem:[#allocation3 + $0x98] sm:$0x3] %v760_v46 }
  0x45   : > { %845 = vst [vmem:[#allocation3 + $0x90] sm:$0x1] %v2031_v48  ;;  %857 = vst [vmem:[#allocation3 + $0x99] sm:$0x1] %v2031_v48 }
  0x46   : > { %774 = vst [vmem:[#allocation2 + $0xa0] sm:$0xff] %v771_v52  ;;  %775 = vst [vmem:[#allocation2 + $0xa8] sm:$0x3] %v772_v53 }
  0x47   : > { %786 = vst [vmem:[#allocation3 + $0xa0] sm:$0xff] %v783_v54  ;;  %787 = vst [vmem:[#allocation3 + $0xa8] sm:$0x3] %v784_v55 }
  0x48   : > { %822 = vst [vmem:[#allocation2 + $0xa0] sm:$0x1] %v2031_v48  ;;  %834 = vst [vmem:[#allocation2 + $0xa9] sm:$0x1] %v2031_v48 }
  0x49   : > { %846 = vst [vmem:[#allocation3 + $0xa0] sm:$0x1] %v2031_v48  ;;  %858 = vst [vmem:[#allocation3 + $0xa9] sm:$0x1] %v2031_v48 }
  0x4a   : > { %864 = vst [vmem:[#allocation2] sm:$0xff] %v2032_v1  ;;  %865 = vst [vmem:[#allocation2 + $0x8] sm:$0x3] %v2032_v1 }
  0x4b   : > { %866 = vst [vmem:[#allocation2 + $0x10] sm:$0xff] %v2032_v1  ;;  %867 = vst [vmem:[#allocation2 + $0x18] sm:$0x3] %v2032_v1 }
  0x4c   : > { %868 = vst [vmem:[#allocation3] sm:$0xff] %v2032_v1  ;;  %869 = vst [vmem:[#allocation3 + $0x8] sm:$0x3] %v2032_v1 }
  0x4d   : > { %870 = vst [vmem:[#allocation3 + $0x10] sm:$0xff] %v2032_v1  ;;  %871 = vst [vmem:[#allocation3 + $0x18] sm:$0x3] %v2032_v1 }
  0x4e PF: > { %p1922_p10 = scmp.ne.s32.totalorder %s2013_s24, 1 }
  0x4f   : > { %v2033_v56 = vmov (!%p1922_p10), 0.0  }
  0x50   : > { %875 = sbr.rel (%p1922_p10) target bundleno = 87 (0x57), region = 56  ;;  %876 = vst [vmem:[#allocation2 + $0xa0] sm:$0xff] (!%p1922_p10), %v2033_v56  ;;  %877 = vst [vmem:[#allocation2 + $0xa8] sm:$0x3] (!%p1922_p10), %v2033_v56 }
  0x51   : > { %880 = vst [vmem:[#allocation3 + $0xa0] sm:$0xff] (!%p1922_p10), %v2033_v56  ;;  %881 = vst [vmem:[#allocation3 + $0xa8] sm:$0x3] (!%p1922_p10), %v2033_v56 }
  0x57 PF: > { %v892_v48 = vlaneseq  ;;  %vm928_vm0 = vcmask 1045504   ;;  %v884_v58 = vld [vmem:[%s2780_s6] sm:$0xff]  ;;  %v889_v6 = vld [vmem:[#allocation2 + $0x8] sm:$0x3]  ;;  %vm970_vm1 = vcmask 1046528   ;;  %v934_v14 = vld [vmem:[#allocation2 + $0x10] sm:$0xff] }
  0x58   : > { %v888_v63 = vld [vmem:[#allocation2] sm:$0xff]  ;;  %v891_v8 = vld [vmem:[#allocation3 + $0x8] sm:$0x3]  ;;  %v935_v15 = vld [vmem:[#allocation2 + $0x18] sm:$0x3] }
  0x59   : > { %v893_v57 = vshrl.u32 %v892_v48, 7  ;;  %v890_v7 = vld [vmem:[#allocation3] sm:$0xff]  ;;  %v936_v16 = vld [vmem:[#allocation3 + $0x10] sm:$0xff]  ;;  %v885_v20 = vld [vmem:[%s2780_s6 + $0x8] sm:$0xff] }
  0x5a   : > { %v937_v29 = vld [vmem:[#allocation3 + $0x18] sm:$0x3]  ;;  %v2414_v53 = vld [vmem:[#allocation3 + $0x20] sm:$0xff]  ;;  %v990_v56 = vld [vmem:[#allocation2 + $0x28] sm:$0x3] }
  0x5b   : > { %v2348_v59 = vsub.s32 0, %v893_v57  ;;  %v2350_v60 = vsub.s32 1, %v893_v57  ;;  %v2352_v61 = vsub.s32 2, %v893_v57  ;;  %v2354_v62 = vsub.s32 3, %v893_v57  ;;  %v2419_v1 = vld [vmem:[#allocation2 + $0x20] sm:$0xff] }
  0x5c   : > { %v2356_v2 = vsub.s32 4, %v893_v57  ;;  %v2358_v3 = vsub.s32 5, %v893_v57  ;;  %v2360_v4 = vsub.s32 6, %v893_v57  ;;  %v2362_v5 = vsub.s32 7, %v893_v57 }
  0x5d   : > { %v2365_v9 = vrot.slane %v884_v58, %v2348_v59  ;;  %v2368_v10 = vrot.slane %v884_v58, %v2350_v60  ;;  %v2371_v11 = vrot.slane %v884_v58, %v2352_v61  ;;  %v2374_v12 = vrot.slane %v884_v58, %v2354_v62 }
  0x5e   : > { %v2377_v13 = vrot.slane %v884_v58, %v2356_v2  ;;  %v2380_v17 = vrot.slane %v884_v58, %v2358_v3  ;;  %v2383_v18 = vrot.slane %v884_v58, %v2360_v4  ;;  %v2386_v19 = vrot.slane %v884_v58, %v2362_v5 }
  0x5f   : > { %v896_v21 = vmul.f32 %v2365_v9, %v888_v63  ;;  %v902_v22 = vmul.f32 %v2368_v10, %v890_v7  ;;  %v908_v23 = vmul.f32 %v2371_v11, %v888_v63  ;;  %v909_v24 = vmul.f32 %v2371_v11, %v889_v6 }
  0x60   : > { %v916_v25 = vmul.f32 %v2374_v12, %v890_v7  ;;  %v917_v26 = vmul.f32 %v2374_v12, %v891_v8  ;;  %v924_v27 = vmul.f32 %v2377_v13, %v888_v63  ;;  %v925_v28 = vmul.f32 %v2377_v13, %v889_v6  ;;  %v992_v6 = vld [vmem:[#allocation3 + $0x28] sm:$0x3] }
  0x61   : > { %v942_v30 = vmul.f32 %v2380_v17, %v934_v14  ;;  %v948_v31 = vmul.f32 %v2383_v18, %v936_v16  ;;  %v958_v32 = vmul.f32 %v2386_v19, %v934_v14  ;;  %v959_v33 = vmul.f32 %v2386_v19, %v935_v15 }
  0x62   : > { %v929_v34 = vrot.slane %v924_v27, 2  ;;  %v930_v35 = vrot.slane %v925_v28, 2  ;;  %v2404_v36 = vrot.slane %v885_v20, %v2348_v59  ;;  %v2407_v37 = vrot.slane %v885_v20, %v2350_v60 }
  0x63   : > { %v943_v38 = vadd.f32 %v942_v30, %v902_v22  ;;  %v950_v39 = vrot.slane %v948_v31, 7  ;;  %v960_v40 = vadd.f32 %v958_v32, %v916_v25  ;;  %v961_v41 = vadd.f32 %v959_v33, %v917_v26 }
  0x64   : > { %v931_v42 = vsel %vm928_vm0, %v929_v34, %v930_v35  ;;  %v966_v43 = vmul.f32 %v2404_v36, %v936_v16  ;;  %v967_v44 = vmul.f32 %v2404_v36, %v937_v29  ;;  %v980_v45 = vmul.f32 %v2407_v37, %v934_v14  ;;  %v886_v34 = vld [vmem:[%s2780_s6 + $0x10] sm:$0xff] }
  0x65   : > { %v933_v46 = vadd.f32 %v931_v42, %v896_v21  ;;  %v952_v47 = vadd.f32 %v950_v39, %v908_v23  ;;  %v953_v49 = vadd.f32 %v950_v39, %v909_v24  ;;  %v981_v50 = vmul.f32 %v2407_v37, %v935_v15 }
  0x66   : > { %v971_v51 = vrot.slane %v966_v43, 1  ;;  %v972_v0 = vrot.slane %v967_v44, 1  ;;  %v984_v52 = vrot.slane %v980_v45, 2  ;;  %v2417_v54 = vrot.slane %v885_v20, %v2352_v61  ;;  %v2454_v43 = vld [vmem:[#allocation2 + $0x30] sm:$0xff] }
  0x67   : > { %v985_v55 = vrot.slane %v981_v50, 2  ;;  %v2422_v48 = vrot.slane %v885_v20, %v2354_v62  ;;  %v2425_v57 = vrot.slane %v885_v20, %v2356_v2  ;;  %v2428_v58 = vrot.slane %v885_v20, %v2358_v3 }
  0x68   : > { %v973_v63 = vsel %vm970_vm1, %v971_v51, %v972_v0  ;;  %v997_v7 = vmul.f32 %v2417_v54, %v2419_v1  ;;  %v2434_v8 = vrot.slane %v885_v20, %v2360_v4  ;;  %v2437_v14 = vrot.slane %v885_v20, %v2362_v5 }
  0x69   : > { %v975_v15 = vadd.f32 %v973_v63, %v933_v46  ;;  %v986_v16 = vsel %vm928_vm0, %v984_v52, %v985_v55  ;;  %v1007_v21 = vmul.f32 %v2422_v48, %v2414_v53  ;;  %v1017_v22 = vmul.f32 %v2425_v57, %v2419_v1  ;;  %v1055_v52 = vld [vmem:[#allocation2 + $0x38] sm:$0x3] }
  0x6a   : > { %v988_v23 = vadd.f32 %v986_v16, %v943_v38  ;;  %v999_v24 = vrot.slane %v997_v7, 7  ;;  %v1018_v25 = vmul.f32 %v2425_v57, %v990_v56  ;;  %v1030_v26 = vmul.f32 %v2428_v58, %v2414_v53  ;;  %v1057_v55 = vld [vmem:[#allocation3 + $0x38] sm:$0x3] }
  0x6b   : > { %v1009_v27 = vrot.slane %v1007_v21, 7  ;;  %v1021_v28 = vrot.slane %v1017_v22, 1  ;;  %v1031_v20 = vmul.f32 %v2428_v58, %v992_v6  ;;  %v1043_v29 = vmul.f32 %v2434_v8, %v2419_v1 }
  0x6c   : > { %v1001_v30 = vadd.f32 %v999_v24, %v952_v47  ;;  %v1002_v31 = vadd.f32 %v999_v24, %v953_v49  ;;  %v1022_v32 = vrot.slane %v1018_v25, 1  ;;  %v1034_v33 = vrot.slane %v1030_v26, 1 }
  0x6d   : > { %v1011_v35 = vadd.f32 %v1009_v27, %v960_v40  ;;  %v1012_v38 = vadd.f32 %v1009_v27, %v961_v41  ;;  %v1035_v39 = vrot.slane %v1031_v20, 1  ;;  %v1044_v42 = vmul.f32 %v2434_v8, %v990_v56  ;;  %v2463_v40 = vld [vmem:[#allocation3 + $0x30] sm:$0xff] }
  0x6e   : > { %v1023_v44 = vsel %vm970_vm1, %v1021_v28, %v1022_v32  ;;  %v1047_v45 = vrot.slane %v1043_v29, 1  ;;  %v1062_v46 = vmul.f32 %v2437_v14, %v2454_v43  ;;  %v2460_v47 = vrot.slane %v886_v34, %v2348_v59  ;;  %v1111_v28 = vld [vmem:[#allocation2 + $0x48] sm:$0x3] }
  0x6f   : > { %v1025_v49 = vadd.f32 %v1023_v44, %v975_v15  ;;  %v1036_v50 = vsel %vm970_vm1, %v1034_v33, %v1035_v39  ;;  %v1048_v51 = vrot.slane %v1044_v42, 1  ;;  %v2466_v41 = vrot.slane %v886_v34, %v2350_v60  ;;  %v2506_v42 = vld [vmem:[#allocation3 + $0x40] sm:$0xff] }
  0x70   : > { %v1038_v0 = vadd.f32 %v1036_v50, %v988_v23  ;;  %v1064_v56 = vrot.slane %v1062_v46, 7  ;;  %v1072_v63 = vmul.f32 %v2460_v47, %v2463_v40  ;;  %v2471_v6 = vrot.slane %v886_v34, %v2352_v61 }
  0x71   : > { %v1049_v59 = vsel %vm970_vm1, %v1047_v45, %v1048_v51  ;;  %v1053_v7 = vadd.f32 %v1048_v51, %v1002_v31  ;;  %v1078_v15 = vmul.f32 %v2466_v41, %v2454_v43  ;;  %v1079_v16 = vmul.f32 %v2466_v41, %v1055_v52 }
  0x72   : > { %v1052_v60 = vadd.f32 %v1049_v59, %v1001_v30  ;;  %v1066_v21 = vadd.f32 %v1064_v56, %v1011_v35  ;;  %v1067_v22 = vadd.f32 %v1064_v56, %v1012_v38  ;;  %v1073_v23 = vadd.f32 %v1072_v63, %v1025_v49  ;;  %v2493_v35 = vld [vmem:[#allocation2 + $0x40] sm:$0xff]  ;;  %v1113_v38 = vld [vmem:[#allocation3 + $0x48] sm:$0x3] }
  0x73   : > { %v1082_v24 = vrot.slane %v1078_v15, 1  ;;  %v1083_v25 = vrot.slane %v1079_v16, 1  ;;  %v1091_v26 = vmul.f32 %v2471_v6, %v2463_v40  ;;  %v1092_v61 = vmul.f32 %v2471_v6, %v1057_v55  ;;  %v1167_v16 = vld [vmem:[#allocation2 + $0x28] sm:$0x3] }
  0x74   : > { %v2481_v27 = vrot.slane %v886_v34, %v2354_v62  ;;  %v2484_v20 = vrot.slane %v886_v34, %v2356_v2  ;;  %v2487_v29 = vrot.slane %v886_v34, %v2358_v3  ;;  %v2490_v30 = vrot.slane %v886_v34, %v2360_v4  ;;  %v2501_v2 = vld [vmem:[%s2780_s6 + $0x18] ss:$0 sm:$0xff] }
  0x75   : > { %v1084_v31 = vsel %vm970_vm1, %v1082_v24, %v1083_v25  ;;  %v1093_v32 = vadd.f32 %v1091_v26, %v1052_v60  ;;  %v1094_v33 = vadd.f32 %v1092_v61, %v1053_v7  ;;  %v2496_v62 = vrot.slane %v886_v34, %v2362_v5  ;;  %v1169_v60 = vld [vmem:[#allocation3 + $0x28] sm:$0x3] }
  0x76   : > { %v1086_v3 = vadd.f32 %v1084_v31, %v1038_v0  ;;  %v1099_v4 = vmul.f32 %v2481_v27, %v2454_v43  ;;  %v1100_v39 = vmul.f32 %v2481_v27, %v1055_v52  ;;  %v1118_v44 = vmul.f32 %v2484_v20, %v2493_v35 }
  0x77   : > { %v1124_v5 = vmul.f32 %v2487_v29, %v2506_v42  ;;  %v1130_v34 = vmul.f32 %v2490_v30, %v2493_v35  ;;  %v1131_v45 = vmul.f32 %v2490_v30, %v1111_v28  ;;  %v1138_v46 = vmul.f32 %v2496_v62, %v2506_v42 }
  0x78   : > { %v1103_v49 = vrot.slane %v1099_v4, 1  ;;  %v1104_v50 = vrot.slane %v1100_v39, 1  ;;  %v1119_v51 = vadd.f32 %v1118_v44, %v1073_v23  ;;  %v1139_v0 = vmul.f32 %v2496_v62, %v1113_v38  ;;  %v1192_v44 = vld [vmem:[#allocation2 + $0x38] sm:$0x3] }
  0x79   : > { %v1125_v52 = vadd.f32 %v1124_v5, %v1086_v3  ;;  %v1132_v55 = vadd.f32 %v1130_v34, %v1093_v32  ;;  %v1133_v56 = vadd.f32 %v1131_v45, %v1094_v33  ;;  %v1146_v63 = vmul.f32 %v2501_v2, %v2493_v35 }
  0x7a   : > { %v1105_v59 = vsel %vm970_vm1, %v1103_v49, %v1104_v50  ;;  %v1109_v7 = vadd.f32 %v1104_v50, %v1067_v22  ;;  %v1147_v15 = vmul.f32 %v2501_v2, %v1111_v28  ;;  %v1170_v24 = vmul.f32 %v2419_v1, %v2365_v9 }
  0x7b   : > { %v1108_v25 = vadd.f32 %v1105_v59, %v1066_v21  ;;  %v1150_v23 = vrot.slane %v1146_v63, 2  ;;  %v1172_v26 = vmul.f32 %v2414_v53, %v2368_v10  ;;  %v1174_v61 = vmul.f32 %v2419_v1, %v2371_v11 }
  0x7c   : > { %v1141_v31 = vadd.f32 %v1139_v0, %v1109_v7  ;;  %v1151_v32 = vrot.slane %v1147_v15, 2  ;;  %v1175_v33 = vmul.f32 %v1167_v16, %v2371_v11  ;;  %v1178_v22 = vmul.f32 %v2414_v53, %v2374_v12  ;;  %v1194_v0 = vld [vmem:[#allocation3 + $0x38] sm:$0x3] }
  0x7d   : > { %v1140_v28 = vadd.f32 %v1138_v46, %v1108_v25  ;;  %v1179_v38 = vmul.f32 %v1169_v60, %v2374_v12  ;;  %v1182_v21 = vmul.f32 %v2419_v1, %v2377_v13  ;;  %v1183_v3 = vmul.f32 %v1167_v16, %v2377_v13 }
  0x7e   : > { %v1152_v4 = vsel %vm928_vm0, %v1150_v23, %v1151_v32  ;;  %v1157_v39 = vadd.f32 %v1141_v31, %v1133_v56  ;;  %v1195_v5 = vmul.f32 %v2454_v43, %v2380_v17  ;;  %v1197_v34 = vmul.f32 %v2463_v40, %v2383_v18 }
  0x7f   : > { %v1154_v45 = vadd.f32 %v1152_v4, %v1119_v51  ;;  %v1156_v53 = vadd.f32 %v1140_v28, %v1132_v55  ;;  %v1186_v46 = vrot.slane %v1182_v21, 2  ;;  %v1187_v49 = vrot.slane %v1183_v3, 2  ;;  %v1226_v28 = vld [vmem:[#allocation2 + $0x48] sm:$0x3] }
  0x80   : > { %v1161_v50 = vrot.slane %v1157_v39, 1  ;;  %v1196_v63 = vadd.f32 %v1195_v5, %v1172_v26  ;;  %v1199_v1 = vrot.slane %v1197_v34, 7  ;;  %v1203_v59 = vmul.f32 %v2454_v43, %v2386_v19 }
  0x81   : > { %v1155_v7 = vadd.f32 %v1154_v45, %v1125_v52  ;;  %v1160_v56 = vrot.slane %v1156_v53, 1  ;;  %v1188_v15 = vsel %vm928_vm0, %v1186_v46, %v1187_v49  ;;  %v1204_v16 = vmul.f32 %v1192_v44, %v2386_v19 }
  0x82   : > { %v1190_v60 = vadd.f32 %v1188_v15, %v1170_v24  ;;  %v1201_v25 = vadd.f32 %v1199_v1, %v1174_v61  ;;  %v1202_v51 = vadd.f32 %v1199_v1, %v1175_v33  ;;  %v1205_v55 = vadd.f32 %v1203_v59, %v1178_v22 }
  0x83   : > { %v1162_v23 = vsel %vm970_vm1, %v1160_v56, %v1161_v50  ;;  %v1206_v31 = vadd.f32 %v1204_v16, %v1179_v38  ;;  %v1207_v26 = vmul.f32 %v2463_v40, %v2404_v36  ;;  %v1208_v32 = vmul.f32 %v1194_v0, %v2404_v36 }
  0x84   : > { %v1164_v52 = vadd.f32 %v1162_v23, %v1155_v7  ;;  %v1216_v21 = vmul.f32 %v2454_v43, %v2407_v37  ;;  %v1217_v3 = vmul.f32 %v1192_v44, %v2407_v37  ;;  %v1229_v24 = vmul.f32 %v2493_v35, %v2417_v54  ;;  %v1228_v44 = vld [vmem:[#allocation3 + $0x48] sm:$0x3] }
  0x85   : > { %v1211_v61 = vrot.slane %v1207_v26, 1  ;;  %v1212_v33 = vrot.slane %v1208_v32, 1  ;;  %v1235_v22 = vmul.f32 %v2506_v42, %v2422_v48  ;;  %v1241_v40 = vmul.f32 %v2493_v35, %v2425_v57  ;;  %v2567_v32 = vld [vmem:[#allocation2 + $0x50] sm:$0xff] }
  0x86   : > { %1165 = vst [vmem:[%s2164_s18] sm:$0xff] %v1164_v52  ;;  %v1220_v38 = vrot.slane %v1216_v21, 2  ;;  %v1221_v4 = vrot.slane %v1217_v3, 2  ;;  %v1231_v39 = vrot.slane %v1229_v24, 7  ;;  %v1242_v5 = vmul.f32 %v1226_v28, %v2425_v57  ;;  %v2569_v52 = vld [vmem:[#allocation3 + $0x50] sm:$0xff]  ;;  %v1273_v24 = vld [vmem:[#allocation3 + $0x58] sm:$0x3] }
  0x87   : > { %v1213_v43 = vsel %vm970_vm1, %v1211_v61, %v1212_v33  ;;  %v1237_v34 = vrot.slane %v1235_v22, 7  ;;  %v1245_v45 = vrot.slane %v1241_v40, 1  ;;  %v1250_v53 = vmul.f32 %v2506_v42, %v2428_v58 }
  0x88   : > { %v1215_v46 = vadd.f32 %v1213_v43, %v1190_v60  ;;  %v1222_v49 = vsel %vm928_vm0, %v1220_v38, %v1221_v4  ;;  %v1233_v50 = vadd.f32 %v1231_v39, %v1201_v25  ;;  %v1234_v0 = vadd.f32 %v1231_v39, %v1202_v51 }
  0x89   : > { %v1224_v1 = vadd.f32 %v1222_v49, %v1196_v63  ;;  %v1239_v59 = vadd.f32 %v1237_v34, %v1205_v55  ;;  %v1240_v7 = vadd.f32 %v1237_v34, %v1206_v31  ;;  %v1246_v56 = vrot.slane %v1242_v5, 1 }
  0x8a   : > { %v1251_v15 = vmul.f32 %v1228_v44, %v2428_v58  ;;  %v1254_v16 = vrot.slane %v1250_v53, 1  ;;  %v1259_v23 = vmul.f32 %v2493_v35, %v2434_v8  ;;  %v1260_v26 = vmul.f32 %v1226_v28, %v2434_v8  ;;  %v1271_v28 = vld [vmem:[#allocation2 + $0x58] sm:$0x3] }
  0x8b   : > { %v1247_v60 = vsel %vm970_vm1, %v1245_v45, %v1246_v56  ;;  %v1274_v63 = vmul.f32 %v2567_v32, %v2437_v14  ;;  %v1280_v25 = vmul.f32 %v2569_v52, %v2460_v47  ;;  %v1282_v51 = vmul.f32 %v2567_v32, %v2466_v41 }
  0x8c   : > { %v1249_v55 = vadd.f32 %v1247_v60, %v1215_v46  ;;  %v1255_v31 = vrot.slane %v1251_v15, 1  ;;  %v1263_v21 = vrot.slane %v1259_v23, 1  ;;  %v1264_v3 = vrot.slane %v1260_v26, 1  ;;  %v2587_v15 = vld [vmem:[#allocation2 + $0x60] sm:$0xff]  ;;  %v1307_v23 = vld [vmem:[#allocation2 + $0x68] sm:$0x3] }
  0x8d   : > { %v1276_v61 = vrot.slane %v1274_v63, 7  ;;  %v1283_v33 = vmul.f32 %v1271_v28, %v2466_v41  ;;  %v1286_v22 = vrot.slane %v1282_v51, 1  ;;  %v1291_v40 = vmul.f32 %v2569_v52, %v2471_v6 }
  0x8e   : > { %v1256_v38 = vsel %vm970_vm1, %v1254_v16, %v1255_v31  ;;  %v1265_v4 = vsel %vm970_vm1, %v1263_v21, %v1264_v3  ;;  %v1269_v39 = vadd.f32 %v1264_v3, %v1234_v0  ;;  %v1281_v5 = vadd.f32 %v1280_v25, %v1249_v55  ;;  %v2589_v16 = vld [vmem:[#allocation3 + $0x60] sm:$0xff]  ;;  %v1309_v0 = vld [vmem:[#allocation3 + $0x68] sm:$0x3] }
  0x8f   : > { %v1258_v43 = vadd.f32 %v1256_v38, %v1224_v1  ;;  %v1268_v44 = vadd.f32 %v1265_v4, %v1233_v50  ;;  %v1278_v34 = vadd.f32 %v1276_v61, %v1239_v59  ;;  %v1279_v45 = vadd.f32 %v1276_v61, %v1240_v7  ;;  %v1346_v4 = vld [vmem:[#allocation3 + $0x48] sm:$0x3] }
  0x90   : > { %v1287_v53 = vrot.slane %v1283_v33, 1  ;;  %v1292_v46 = vmul.f32 %v1273_v24, %v2471_v6  ;;  %v1295_v49 = vmul.f32 %v2567_v32, %v2481_v27  ;;  %v1296_v56 = vmul.f32 %v1271_v28, %v2481_v27 }
  0x91   : > { %v1293_v26 = vadd.f32 %v1291_v40, %v1268_v44  ;;  %v1310_v50 = vmul.f32 %v2587_v15, %v2484_v20  ;;  %v1312_v1 = vmul.f32 %v2589_v16, %v2487_v29  ;;  %v1314_v59 = vmul.f32 %v2587_v15, %v2490_v30 }
  0x92   : > { %v1288_v7 = vsel %vm970_vm1, %v1286_v22, %v1287_v53  ;;  %v1294_v60 = vadd.f32 %v1292_v46, %v1269_v39  ;;  %v1299_v63 = vrot.slane %v1295_v49, 1  ;;  %v1300_v25 = vrot.slane %v1296_v56, 1 }
  0x93   : > { %v1290_v51 = vadd.f32 %v1288_v7, %v1258_v43  ;;  %v1311_v55 = vadd.f32 %v1310_v50, %v1281_v5  ;;  %v1315_v31 = vmul.f32 %v1307_v23, %v2490_v30  ;;  %v1316_v21 = vadd.f32 %v1314_v59, %v1293_v26  ;;  %v1344_v43 = vld [vmem:[#allocation2 + $0x48] sm:$0x3]  ;;  %v1369_v7 = vld [vmem:[#allocation2 + $0x58] sm:$0x3] }
  0x94   : > { %v1301_v3 = vsel %vm970_vm1, %v1299_v63, %v1300_v25  ;;  %v1305_v28 = vadd.f32 %v1300_v25, %v1279_v45  ;;  %v1318_v24 = vmul.f32 %v2589_v16, %v2496_v62  ;;  %v1319_v61 = vmul.f32 %v1309_v0, %v2496_v62 }
  0x95   : > { %v1304_v33 = vadd.f32 %v1301_v3, %v1278_v34  ;;  %v1313_v40 = vadd.f32 %v1312_v1, %v1290_v51  ;;  %v1317_v38 = vadd.f32 %v1315_v31, %v1294_v60  ;;  %v1322_v22 = vmul.f32 %v2501_v2, %v2587_v15 }
  0x96   : > { %v1321_v39 = vadd.f32 %v1319_v61, %v1305_v28  ;;  %v1323_v5 = vmul.f32 %v2501_v2, %v1307_v23  ;;  %v1347_v44 = vmul.f32 %v2493_v35, %v2365_v9  ;;  %v1349_v45 = vmul.f32 %v2506_v42, %v2368_v10 }
  0x97   : > { %v1320_v53 = vadd.f32 %v1318_v24, %v1304_v33  ;;  %v1326_v46 = vrot.slane %v1322_v22, 2  ;;  %v1351_v34 = vmul.f32 %v2493_v35, %v2371_v11  ;;  %v1352_v49 = vmul.f32 %v1344_v43, %v2371_v11 }
  0x98   : > { %v1327_v56 = vrot.slane %v1323_v5, 2  ;;  %v1333_v26 = vadd.f32 %v1321_v39, %v1317_v38  ;;  %v1355_v0 = vmul.f32 %v2506_v42, %v2374_v12  ;;  %v1356_v23 = vmul.f32 %v1346_v4, %v2374_v12 }
  0x99   : > { %v1332_v50 = vadd.f32 %v1320_v53, %v1316_v21  ;;  %v1359_v1 = vmul.f32 %v2493_v35, %v2377_v13  ;;  %v1360_v59 = vmul.f32 %v1344_v43, %v2377_v13  ;;  %v1372_v60 = vmul.f32 %v2567_v32, %v2380_v17  ;;  %v1371_v35 = vld [vmem:[#allocation3 + $0x58] sm:$0x3] }
  0x9a   : > { %v1328_v63 = vsel %vm928_vm0, %v1326_v46, %v1327_v56  ;;  %v1337_v25 = vrot.slane %v1333_v26, 1  ;;  %v1374_v51 = vmul.f32 %v2569_v52, %v2383_v18  ;;  %v1380_v42 = vmul.f32 %v2567_v32, %v2386_v19  ;;  %v1403_v56 = vld [vmem:[#allocation2 + $0x68] sm:$0x3] }
  0x9b   : > { %v1330_v31 = vadd.f32 %v1328_v63, %v1311_v55  ;;  %v1336_v21 = vrot.slane %v1332_v50, 1  ;;  %v1363_v3 = vrot.slane %v1359_v1, 2  ;;  %v1364_v28 = vrot.slane %v1360_v59, 2  ;;  %v1405_v1 = vld [vmem:[#allocation3 + $0x68] sm:$0x3] }
  0x9c   : > { %v1373_v24 = vadd.f32 %v1372_v60, %v1349_v45  ;;  %v1376_v61 = vrot.slane %v1374_v51, 7  ;;  %v1381_v33 = vmul.f32 %v1369_v7, %v2386_v19  ;;  %v1382_v38 = vadd.f32 %v1380_v42, %v1355_v0 }
  0x9d   : > { %v1331_v22 = vadd.f32 %v1330_v31, %v1313_v40  ;;  %v1338_v4 = vsel %vm970_vm1, %v1336_v21, %v1337_v25  ;;  %v1365_v39 = vsel %vm928_vm0, %v1363_v3, %v1364_v28  ;;  %v1384_v5 = vmul.f32 %v2569_v52, %v2404_v36 }
  0x9e   : > { %v1367_v43 = vadd.f32 %v1365_v39, %v1347_v44  ;;  %v1378_v55 = vadd.f32 %v1376_v61, %v1351_v34  ;;  %v1379_v53 = vadd.f32 %v1376_v61, %v1352_v49  ;;  %v1383_v46 = vadd.f32 %v1381_v33, %v1356_v23 }
  0x9f   : > { %v1340_v26 = vadd.f32 %v1338_v4, %v1331_v22  ;;  %v1385_v45 = vmul.f32 %v1371_v35, %v2404_v36  ;;  %v1388_v50 = vrot.slane %v1384_v5, 1  ;;  %v1393_v40 = vmul.f32 %v2567_v32, %v2407_v37 }
  0xa0   : > { %v1394_v0 = vmul.f32 %v1369_v7, %v2407_v37  ;;  %v1406_v59 = vmul.f32 %v2587_v15, %v2417_v54  ;;  %v1412_v52 = vmul.f32 %v2589_v16, %v2422_v48  ;;  %v1418_v44 = vmul.f32 %v2587_v15, %v2425_v57 }
  0xa1   : > { %1924 = vst [vmem:[%s2164_s18 + $0x8] sm:$0xff] %v1340_v26  ;;  %v1389_v34 = vrot.slane %v1385_v45, 1  ;;  %v1397_v49 = vrot.slane %v1393_v40, 2  ;;  %v1419_v23 = vmul.f32 %v1403_v56, %v2425_v57  ;;  %v1427_v32 = vmul.f32 %v2589_v16, %v2428_v58  ;;  %v2652_v40 = vld [vmem:[#allocation2 + $0x70] sm:$0xff] }
  0xa2   : > { %v1398_v60 = vrot.slane %v1394_v0, 2  ;;  %v1408_v7 = vrot.slane %v1406_v59, 7  ;;  %v1414_v63 = vrot.slane %v1412_v52, 7  ;;  %v1422_v25 = vrot.slane %v1418_v44, 1  ;;  %v1448_v0 = vld [vmem:[#allocation2 + $0x78] sm:$0x3] }
  0xa3   : > { %v1390_v51 = vsel %vm970_vm1, %v1388_v50, %v1389_v34  ;;  %v1423_v42 = vrot.slane %v1419_v23, 1  ;;  %v1428_v31 = vmul.f32 %v1405_v1, %v2428_v58  ;;  %v1431_v21 = vrot.slane %v1427_v32, 1  ;;  %v1450_v1 = vld [vmem:[#allocation3 + $0x78] sm:$0x3] }
  0xa4   : > { %v1392_v3 = vadd.f32 %v1390_v51, %v1367_v43  ;;  %v1399_v28 = vsel %vm928_vm0, %v1397_v49, %v1398_v60  ;;  %v1410_v35 = vadd.f32 %v1408_v7, %v1378_v55  ;;  %v1411_v61 = vadd.f32 %v1408_v7, %v1379_v53  ;;  %v2654_v43 = vld [vmem:[#allocation3 + $0x70] sm:$0xff] }
  0xa5   : > { %v1401_v33 = vadd.f32 %v1399_v28, %v1373_v24  ;;  %v1416_v22 = vadd.f32 %v1414_v63, %v1382_v38  ;;  %v1417_v4 = vadd.f32 %v1414_v63, %v1383_v46  ;;  %v1424_v39 = vsel %vm970_vm1, %v1422_v25, %v1423_v42 }
  0xa6   : > { %v1426_v5 = vadd.f32 %v1424_v39, %v1392_v3  ;;  %v1432_v26 = vrot.slane %v1428_v31, 1  ;;  %v1436_v45 = vmul.f32 %v2587_v15, %v2434_v8  ;;  %v1437_v50 = vmul.f32 %v1403_v56, %v2434_v8  ;;  %v1484_v3 = vld [vmem:[#allocation2 + $0x88] sm:$0x3] }
  0xa7   : > { %v1451_v24 = vmul.f32 %v2652_v40, %v2437_v14  ;;  %v1457_v38 = vmul.f32 %v2654_v43, %v2460_v47  ;;  %v1459_v55 = vmul.f32 %v2652_v40, %v2466_v41  ;;  %v1460_v53 = vmul.f32 %v1448_v0, %v2466_v41 }
  0xa8   : > { %v1433_v46 = vsel %vm970_vm1, %v1431_v21, %v1432_v26  ;;  %v1440_v56 = vrot.slane %v1436_v45, 1  ;;  %v1441_v59 = vrot.slane %v1437_v50, 1  ;;  %v1468_v52 = vmul.f32 %v2654_v43, %v2471_v6  ;;  %v2670_v21 = vld [vmem:[#allocation2 + $0x80] sm:$0xff] }
  0xa9   : > { %v1435_v44 = vadd.f32 %v1433_v46, %v1401_v33  ;;  %v1453_v34 = vrot.slane %v1451_v24, 7  ;;  %v1458_v49 = vadd.f32 %v1457_v38, %v1426_v5  ;;  %v1463_v23 = vrot.slane %v1459_v55, 1  ;;  %v2674_v5 = vld [vmem:[#allocation3 + $0x80] sm:$0xff] }
  0xaa   : > { %v1442_v32 = vsel %vm970_vm1, %v1440_v56, %v1441_v59  ;;  %v1446_v60 = vadd.f32 %v1441_v59, %v1411_v61  ;;  %v1464_v7 = vrot.slane %v1460_v53, 1  ;;  %v1469_v63 = vmul.f32 %v1450_v1, %v2471_v6  ;;  %v1486_v61 = vld [vmem:[#allocation3 + $0x88] sm:$0x3] }
  0xab   : > { %v1445_v25 = vadd.f32 %v1442_v32, %v1410_v35  ;;  %v1455_v51 = vadd.f32 %v1453_v34, %v1416_v22  ;;  %v1456_v42 = vadd.f32 %v1453_v34, %v1417_v4  ;;  %v1472_v31 = vmul.f32 %v2652_v40, %v2481_v27  ;;  %v1523_v34 = vld [vmem:[#allocation3 + $0x68] sm:$0x3] }
  0xac   : > { %v1465_v28 = vsel %vm970_vm1, %v1463_v23, %v1464_v7  ;;  %v1471_v33 = vadd.f32 %v1469_v63, %v1446_v60  ;;  %v1473_v39 = vmul.f32 %v1448_v0, %v2481_v27  ;;  %v1487_v26 = vmul.f32 %v2670_v21, %v2484_v20  ;;  %v1521_v60 = vld [vmem:[#allocation2 + $0x68] sm:$0x3] }
  0xad   : > { %v1467_v35 = vadd.f32 %v1465_v28, %v1435_v44  ;;  %v1470_v22 = vadd.f32 %v1468_v52, %v1445_v25  ;;  %v1476_v4 = vrot.slane %v1472_v31, 1  ;;  %v1489_v45 = vmul.f32 %v2674_v5, %v2487_v29 }
  0xae   : > { %v1477_v50 = vrot.slane %v1473_v39, 1  ;;  %v1488_v1 = vadd.f32 %v1487_v26, %v1458_v49  ;;  %v1491_v24 = vmul.f32 %v2670_v21, %v2490_v30  ;;  %v1492_v38 = vmul.f32 %v1484_v3, %v2490_v30  ;;  %v1546_v26 = vld [vmem:[#allocation2 + $0x78] sm:$0x3] }
  0xaf   : > { %v1490_v0 = vadd.f32 %v1489_v45, %v1467_v35  ;;  %v1495_v55 = vmul.f32 %v2674_v5, %v2496_v62  ;;  %v1496_v53 = vmul.f32 %v1486_v61, %v2496_v62  ;;  %v1499_v46 = vmul.f32 %v2501_v2, %v2670_v21 }
  0xb0   : > { %v1478_v56 = vsel %vm970_vm1, %v1476_v4, %v1477_v50  ;;  %v1482_v59 = vadd.f32 %v1477_v50, %v1456_v42  ;;  %v1493_v52 = vadd.f32 %v1491_v24, %v1470_v22  ;;  %v1494_v44 = vadd.f32 %v1492_v38, %v1471_v33  ;;  %v1548_v24 = vld [vmem:[#allocation3 + $0x78] sm:$0x3] }
  0xb1   : > { %v1481_v49 = vadd.f32 %v1478_v56, %v1455_v51  ;;  %v1500_v23 = vmul.f32 %v2501_v2, %v1484_v3  ;;  %v1503_v32 = vrot.slane %v1499_v46, 2  ;;  %v1524_v7 = vmul.f32 %v2587_v15, %v2365_v9 }
  0xb2   : > { %v1498_v63 = vadd.f32 %v1496_v53, %v1482_v59  ;;  %v1526_v25 = vmul.f32 %v2589_v16, %v2368_v10  ;;  %v1528_v31 = vmul.f32 %v2587_v15, %v2371_v11  ;;  %v1529_v42 = vmul.f32 %v1521_v60, %v2371_v11 }
  0xb3   : > { %v1497_v28 = vadd.f32 %v1495_v55, %v1481_v49  ;;  %v1504_v33 = vrot.slane %v1500_v23, 2  ;;  %v1532_v51 = vmul.f32 %v2589_v16, %v2374_v12  ;;  %v1533_v3 = vmul.f32 %v1523_v34, %v2374_v12 }
  0xb4   : > { %v1510_v39 = vadd.f32 %v1498_v63, %v1494_v44  ;;  %v1536_v9 = vmul.f32 %v2587_v15, %v2377_v13  ;;  %v1537_v61 = vmul.f32 %v1521_v60, %v2377_v13  ;;  %v1549_v10 = vmul.f32 %v2652_v40, %v2380_v17  ;;  %v1580_v44 = vld [vmem:[#allocation2 + $0x88] sm:$0x3] }
  0xb5   : > { %v1505_v35 = vsel %vm928_vm0, %v1503_v32, %v1504_v33  ;;  %v1509_v11 = vadd.f32 %v1497_v28, %v1493_v52  ;;  %v1551_v22 = vmul.f32 %v2654_v43, %v2383_v18  ;;  %v1557_v16 = vmul.f32 %v2652_v40, %v2386_v19  ;;  %v1582_v60 = vld [vmem:[#allocation3 + $0x88] sm:$0x3] }
  0xb6   : > { %v1507_v12 = vadd.f32 %v1505_v35, %v1488_v1  ;;  %v1514_v4 = vrot.slane %v1510_v39, 1  ;;  %v1540_v45 = vrot.slane %v1536_v9, 2  ;;  %v1541_v50 = vrot.slane %v1537_v61, 2  ;;  %v1624_v9 = vld [vmem:[#allocation2 + $0x90] sm:$0xff] }
  0xb7   : > { %v1513_v15 = vrot.slane %v1509_v11, 1  ;;  %v1550_v13 = vadd.f32 %v1549_v10, %v1526_v25  ;;  %v1553_v38 = vrot.slane %v1551_v22, 7  ;;  %v1558_v55 = vmul.f32 %v1546_v26, %v2386_v19 }
  0xb8   : > { %v1508_v17 = vadd.f32 %v1507_v12, %v1490_v0  ;;  %v1542_v53 = vsel %vm928_vm0, %v1540_v45, %v1541_v50  ;;  %v1559_v46 = vadd.f32 %v1557_v16, %v1532_v51  ;;  %v1561_v18 = vmul.f32 %v2654_v43, %v2404_v36  ;;  %v1626_v16 = vld [vmem:[#allocation3 + $0x90] sm:$0xff]  ;;  %v1627_v45 = vld [vmem:[#allocation3 + $0x98] sm:$0x3] }
  0xb9   : > { %v1515_v56 = vsel %vm970_vm1, %v1513_v15, %v1514_v4  ;;  %v1544_v1 = vadd.f32 %v1542_v53, %v1524_v7  ;;  %v1555_v59 = vadd.f32 %v1553_v38, %v1528_v31  ;;  %v1556_v52 = vadd.f32 %v1553_v38, %v1529_v42 }
  0xba   : > { %v1517_v34 = vadd.f32 %v1515_v56, %v1508_v17  ;;  %v1560_v49 = vadd.f32 %v1558_v55, %v1533_v3  ;;  %v1562_v23 = vmul.f32 %v1548_v24, %v2404_v36  ;;  %v1565_v32 = vrot.slane %v1561_v18, 1 }
  0xbb   : > { %v1570_v19 = vmul.f32 %v2652_v40, %v2407_v37  ;;  %v1571_v0 = vmul.f32 %v1546_v26, %v2407_v37  ;;  %v1583_v43 = vmul.f32 %v2670_v21, %v2417_v54  ;;  %v1589_v7 = vmul.f32 %v2674_v5, %v2422_v48 }
  0xbc   : > { %1925 = vst [vmem:[%s2164_s18 + $0x10] sm:$0xff] %v1517_v34  ;;  %v1566_v63 = vrot.slane %v1562_v23, 1  ;;  %v1595_v25 = vmul.f32 %v2670_v21, %v2425_v57  ;;  %v1596_v36 = vmul.f32 %v1580_v44, %v2425_v57  ;;  %v1604_v31 = vmul.f32 %v2674_v5, %v2428_v58 }
  0xbd   : > { %v1574_v40 = vrot.slane %v1570_v19, 2  ;;  %v1575_v42 = vrot.slane %v1571_v0, 2  ;;  %v1585_v37 = vrot.slane %v1583_v43, 7  ;;  %v1591_v28 = vrot.slane %v1589_v7, 7  ;;  %v1662_v19 = vld [vmem:[#allocation3 + $0xa0] sm:$0xff] }
  0xbe   : > { %v1567_v33 = vsel %vm970_vm1, %v1565_v32, %v1566_v63  ;;  %v1599_v54 = vrot.slane %v1595_v25, 1  ;;  %v1600_v51 = vrot.slane %v1596_v36, 1  ;;  %v1605_v48 = vmul.f32 %v1582_v60, %v2428_v58  ;;  %v1625_v58 = vld [vmem:[#allocation2 + $0x98] sm:$0x3]  ;;  %v1663_v0 = vld [vmem:[#allocation3 + $0xa8] sm:$0x3] }
  0xbf   : > { %v1569_v3 = vadd.f32 %v1567_v33, %v1544_v1  ;;  %v1576_v39 = vsel %vm928_vm0, %v1574_v40, %v1575_v42  ;;  %v1587_v26 = vadd.f32 %v1585_v37, %v1555_v59  ;;  %v1588_v57 = vadd.f32 %v1585_v37, %v1556_v52  ;;  %v1660_v1 = vld [vmem:[#allocation2 + $0xa0] sm:$0xff] }
  0xc0   : > { %v1578_v61 = vadd.f32 %v1576_v39, %v1550_v13  ;;  %v1601_v10 = vsel %vm970_vm1, %v1599_v54, %v1600_v51  ;;  %v1593_v5 = vadd.f32 %v1591_v28, %v1559_v46  ;;  %v1608_v35 = vrot.slane %v1604_v31, 1 }
  0xc1   : > { %v1609_v11 = vrot.slane %v1605_v48, 1  ;;  %v1613_v22 = vmul.f32 %v2670_v21, %v2434_v8  ;;  %v1594_v12 = vadd.f32 %v1591_v28, %v1560_v49  ;;  %v1614_v4 = vmul.f32 %v1580_v44, %v2434_v8  ;;  %v1661_v49 = vld [vmem:[#allocation2 + $0xa8] sm:$0x3] }
  0xc2   : > { %v1628_v50 = vmul.f32 %v1624_v9, %v2437_v14  ;;  %v1636_v15 = vmul.f32 %v1624_v9, %v2466_v41  ;;  %v1603_v24 = vadd.f32 %v1601_v10, %v1569_v3  ;;  %v1637_v55 = vmul.f32 %v1625_v58, %v2466_v41 }
  0xc3   : > { %v1610_v13 = vsel %vm970_vm1, %v1608_v35, %v1609_v11  ;;  %v1617_v38 = vrot.slane %v1613_v22, 1  ;;  %v1618_v17 = vrot.slane %v1614_v4, 1  ;;  %v1634_v21 = vmul.f32 %v1626_v16, %v2460_v47 }
  0xc4   : > { %v1630_v53 = vrot.slane %v1628_v50, 7  ;;  %v1645_v46 = vmul.f32 %v1626_v16, %v2471_v6  ;;  %v1640_v18 = vrot.slane %v1636_v15, 1  ;;  %v1641_v8 = vrot.slane %v1637_v55, 1 }
  0xc5   : > { %v1646_v56 = vmul.f32 %v1627_v45, %v2471_v6  ;;  %v1649_v14 = vmul.f32 %v1624_v9, %v2481_v27  ;;  %v1612_v59 = vadd.f32 %v1610_v13, %v1578_v61  ;;  %v1619_v52 = vsel %vm970_vm1, %v1617_v38, %v1618_v17 }
  0xc6   : > { %v1623_v44 = vadd.f32 %v1618_v17, %v1588_v57  ;;  %v1633_v34 = vadd.f32 %v1630_v53, %v1594_v12  ;;  %v1622_v41 = vadd.f32 %v1619_v52, %v1587_v26  ;;  %v1642_v23 = vsel %vm970_vm1, %v1640_v18, %v1641_v8 }
  0xc7   : > { %v1650_v47 = vmul.f32 %v1625_v58, %v2481_v27  ;;  %v1653_v32 = vrot.slane %v1649_v14, 1  ;;  %v1632_v60 = vadd.f32 %v1630_v53, %v1593_v5  ;;  %v1635_v43 = vadd.f32 %v1634_v21, %v1603_v24 }
  0xc8   : > { %v1648_v6 = vadd.f32 %v1646_v56, %v1623_v44  ;;  %v1664_v7 = vmul.f32 %v1660_v1, %v2484_v20  ;;  %v1647_v63 = vadd.f32 %v1645_v46, %v1622_v41  ;;  %v1668_v36 = vmul.f32 %v1660_v1, %v2490_v30 }
  0xc9   : > { %v1654_v25 = vrot.slane %v1650_v47, 1  ;;  %v1669_v31 = vmul.f32 %v1661_v49, %v2490_v30  ;;  %v1644_v40 = vadd.f32 %v1642_v23, %v1612_v59  ;;  %v1672_v42 = vmul.f32 %v1662_v19, %v2496_v62 }
  0xca   : > { %v1673_v37 = vmul.f32 %v1663_v0, %v2496_v62  ;;  %v1666_v33 = vmul.f32 %v1662_v19, %v2487_v29  ;;  %v1670_v48 = vadd.f32 %v1668_v36, %v1647_v63  ;;  %v1676_v20 = vmul.f32 %v2501_v2, %v1660_v1 }
  0xcb   : > { %v1655_v27 = vsel %vm970_vm1, %v1653_v32, %v1654_v25  ;;  %v1659_v28 = vadd.f32 %v1654_v25, %v1633_v34  ;;  %v1671_v54 = vadd.f32 %v1669_v31, %v1648_v6  ;;  %v1677_v3 = vmul.f32 %v2501_v2, %v1661_v49 }
  0xcc   : > { %v1658_v51 = vadd.f32 %v1655_v27, %v1632_v60  ;;  %v1665_v39 = vadd.f32 %v1664_v7, %v1635_v43  ;;  %v1680_v61 = vrot.slane %v1676_v20, 2  ;;  %v1667_v57 = vadd.f32 %v1666_v33, %v1644_v40 }
  0xcd   : > { %v1675_v30 = vadd.f32 %v1673_v37, %v1659_v28  ;;  %v1681_v26 = vrot.slane %v1677_v3, 2 }
  0xce   : > { %v1674_v9 = vadd.f32 %v1672_v42, %v1658_v51 }
  0xcf   : > { %v1687_v62 = vadd.f32 %v1675_v30, %v1671_v54  ;;  %v1682_v10 = vsel %vm928_vm0, %v1680_v61, %v1681_v26 }
  0xd0   : > { %v1686_v5 = vadd.f32 %v1674_v9, %v1670_v48  ;;  %v1684_v35 = vadd.f32 %v1682_v10, %v1665_v39 }
  0xd1   : > { %v1691_v29 = vrot.slane %v1687_v62, 1 }
  0xd2   : > { %v1690_v11 = vrot.slane %v1686_v5, 1  ;;  %v1685_v22 = vadd.f32 %v1684_v35, %v1667_v57 }
  0xd4   : > { %v1692_v16 = vsel %vm970_vm1, %v1690_v11, %v1691_v29 }
  0xd5   : > { %v1694_v12 = vadd.f32 %v1692_v16, %v1685_v22 }
  0xd7   : > { %1926 = vst [vmem:[%s2164_s18 + $0x18] sm:$0xff] %v1694_v12 }
  0xd8 PF: > { %s17_s28 = sadd.s32 1, %s2029_s28   ;;  %s2783_s24 = smov %s2021_s26 }
  0xd9   : > { %p14_p11 = scmp.ge.s32.totalorder %s17_s28, 6   ;;  %s2784_s25 = smov %s2025_s27 }
  0xda   : > { %s2785_s26 = smov %s2788_s29  ;;  %s2786_s27 = smov %s2792_s30 }
  0xdb   :  { %16 = sbr.rel (!%p14_p11) target bundleno = 3 (0x3), region = 140 }

</bundles_post_ra>
